<compile_context>
chip_gen: v7x
topology: tpu7x:2x2x1
jax: 0.10.0
libtpu: 0.0.40
codegen_flags: <defaults>
</compile_context>

<pallas_src>
import functools

import jax
import jax.numpy as jnp
from jax.experimental import pallas as pl
from jax.experimental.pallas import tpu as pltpu


# ----------------------------- Pallas kernels ------------------------------

def _linear_kernel(x_ref, w_ref, b_ref, o_ref):
    x = x_ref[...].astype(jnp.bfloat16)          # bf16 MXU inputs, f32 accumulation
    acc = jnp.dot(x, w_ref[...], preferred_element_type=jnp.float32)
    o_ref[...] = (acc + b_ref[...]).astype(o_ref.dtype)


def linear(x, w, b, row_tile=512):
    """y = x @ w + b with a row-tiled, pipelined grid.  x:(M,K), w:(K,N), b:(N,)."""
    M, K = x.shape
    N = w.shape[1]
    row_tile = min(row_tile, M)
    grid = (pl.cdiv(M, row_tile),)               # ragged last tile handled by Pallas
    return pl.pallas_call(
        _linear_kernel,
        out_shape=jax.ShapeDtypeStruct((M, N), x.dtype),
        grid=grid,
        in_specs=[pl.BlockSpec((row_tile, K), lambda i: (i, 0)),
                  pl.BlockSpec((K, N), lambda i: (0, 0)),
                  pl.BlockSpec((1, N), lambda i: (0, 0))],
        out_specs=pl.BlockSpec((row_tile, N), lambda i: (i, 0)),
        compiler_params=pltpu.CompilerParams(
            dimension_semantics=("parallel",)),
    )(x, w.astype(jnp.bfloat16), b.reshape(1, N))


def _ln(v, g_ref, b_ref, eps):
    """LayerNorm on an f32 value with (1, D) gain/bias refs."""
    mu = jnp.mean(v, axis=-1, keepdims=True)
    var = jnp.mean(jnp.square(v - mu), axis=-1, keepdims=True)
    y = (v - mu) * jax.lax.rsqrt(var + eps)
    return y * g_ref[...].astype(jnp.float32) + b_ref[...].astype(jnp.float32)


def _rope(x, cos, sin_up, sin_dn):
    """EVA-02 interleaved rotary embed on a head-folded (N, D) f32 tensor.

    rotate_every_two(x)[2i] = -x[2i+1], [2i+1] = x[2i] is realized with two static
    XLU lane rotations (pltpu.roll).  The sin tables are pre-masked by lane parity
    (and sign-flipped on even lanes), which also zeroes the lanes where the cyclic
    roll wraps across head / array boundaries, so no select is needed on the VPU.
    """
    d = x.shape[-1]
    up = pltpu.roll(x, shift=1, axis=1)          # up[j] = x[j-1]
    dn = pltpu.roll(x, shift=d - 1, axis=1)      # dn[j] = x[j+1]
    return x * cos + up * sin_up + dn * sin_dn


def _block_kernel(tok_ref, cos_ref, sup_ref, sdn_ref,
                  n1g, n1b, wq, bq, wk, wv, bv, wp, bp,
                  n2g, n2b, w1g, b1g, w1x, b1x, nmg, nmb, w2, b2,
                  out_ref, *, heads, eps, scale):
    """One full EVA transformer block for one batch element (tokens resident in VMEM)."""
    f32, bf16 = jnp.float32, jnp.bfloat16
    x = tok_ref[0].astype(f32)                       # (N, D) residual stream, f32
    cos = cos_ref[...]                               # (N, D), cls row = 1
    sup = sup_ref[...]                               # (N, D), +sin on odd lanes
    sdn = sdn_ref[...]                               # (N, D), -sin on even lanes

    # ---------------- attention ----------------
    h = _ln(x, n1g, n1b, eps).astype(bf16)
    q = jnp.dot(h, wq[...], preferred_element_type=f32) + bq[...]
    k = jnp.dot(h, wk[...], preferred_element_type=f32)          # EVA-02: no k bias
    v = jnp.dot(h, wv[...], preferred_element_type=f32) + bv[...]

    # RoPE via XLU rolls; fold 1/sqrt(dh) into q once instead of per (N, N) score tile.
    q = (_rope(q, cos, sup, sdn) * scale).astype(bf16)
    k = _rope(k, cos, sup, sdn).astype(bf16)
    v = v.astype(bf16)

    dh = x.shape[-1] // heads
    acc = x + bp[...]                                # residual + proj bias, f32
    for hd in range(heads):                          # static unroll over heads
        sl = slice(hd * dh, (hd + 1) * dh)
        s = jax.lax.dot_general(q[:, sl], k[:, sl], (((1,), (1,)), ((), ())),
                                preferred_element_type=f32)       # (N, N) f32
        m = jnp.max(s, axis=-1, keepdims=True)
        p = jnp.exp(s - m)
        inv_l = pl.reciprocal(jnp.sum(p, axis=-1, keepdims=True), approx=True)
        oh = jnp.dot(p.astype(bf16), v[:, sl], preferred_element_type=f32) * inv_l
        # Fuse the output projection per head: no head-output concat / lane relayout.
        acc = acc + jnp.dot(oh.astype(bf16), wp[pl.ds(hd * dh, dh), :],
                            preferred_element_type=f32)
    x = acc

    # -------- SwiGLU MLP with inner LayerNorm --------
    h2 = _ln(x, n2g, n2b, eps).astype(bf16)
    g1 = jnp.dot(h2, w1g[...], preferred_element_type=f32) + b1g[...]
    u1 = jnp.dot(h2, w1x[...], preferred_element_type=f32) + b1x[...]
    act = _ln(g1 * jax.nn.sigmoid(g1) * u1, nmg, nmb, eps).astype(bf16)
    x = x + jnp.dot(act, w2[...], preferred_element_type=f32) + b2[...]

    out_ref[0] = x.astype(out_ref.dtype)


def eva_block(tok, cos, sin_up, sin_dn, blk, heads, eps=1e-6):
    B, N, D = tok.shape
    dh = D // heads
    bf16 = jnp.bfloat16

    def fullspec(arr):
        nd = arr.ndim
        return pl.BlockSpec(arr.shape, lambda b: (0,) * nd)

    r1 = lambda a: a.reshape(1, -1)
    wcast = lambda a: a.astype(bf16)                 # bf16 weights: MXU-native, half VMEM

    operands = [
        cos, sin_up, sin_dn,
        r1(blk['norm1_g']), r1(blk['norm1_b']),
        wcast(blk['q_w']), r1(blk['q_b']),
        wcast(blk['k_w']),                           # no k bias
        wcast(blk['v_w']), r1(blk['v_b']),
        wcast(blk['proj_w']), r1(blk['proj_b']),
        r1(blk['norm2_g']), r1(blk['norm2_b']),
        wcast(blk['fc1g_w']), r1(blk['fc1g_b']),
        wcast(blk['fc1x_w']), r1(blk['fc1x_b']),
        r1(blk['mlpn_g']), r1(blk['mlpn_b']),
        wcast(blk['fc2_w']), r1(blk['fc2_b']),
    ]
    # Weight / table operands use constant index_maps -> fetched once, kept resident
    # across the batch grid.  TODO(synk): at real scale single-buffer them
    # (pl.Buffered(1)) and K-tile the MLP weights on an extra "arbitrary" grid axis.
    in_specs = ([pl.BlockSpec((1, N, D), lambda b: (b, 0, 0))]
                + [fullspec(a) for a in operands])

    return pl.pallas_call(
        functools.partial(_block_kernel, heads=heads, eps=eps, scale=dh ** -0.5),
        out_shape=jax.ShapeDtypeStruct((B, N, D), tok.dtype),
        grid=(B,),
        in_specs=in_specs,
        out_specs=pl.BlockSpec((1, N, D), lambda b: (b, 0, 0)),
        input_output_aliases={0: 0},                 # block fully overwrites tok
        compiler_params=pltpu.CompilerParams(
            dimension_semantics=("parallel",),
            vmem_limit_bytes=64 * 1024 * 1024),
    )(tok, *operands)


def _head_kernel(tok_ref, g_ref, b_ref, w_ref, hb_ref, o_ref, *, eps):
    x = tok_ref[0].astype(jnp.float32)                       # (N, D)
    pooled = jnp.mean(x[1:, :], axis=0, keepdims=True)       # avg over patch tokens
    y = _ln(pooled, g_ref, b_ref, eps).astype(jnp.bfloat16)
    o_ref[0] = (jnp.dot(y, w_ref[...], preferred_element_type=jnp.float32)
                + hb_ref[...]).astype(o_ref.dtype)


def eva_head(tok, params, eps=1e-6):
    """Avg-pool over patch tokens + fc_norm + classifier head, fused per batch element."""
    B, N, D = tok.shape
    nc = params['head_w'].shape[1]
    out = pl.pallas_call(
        functools.partial(_head_kernel, eps=eps),
        out_shape=jax.ShapeDtypeStruct((B, 1, nc), tok.dtype),
        grid=(B,),
        in_specs=[pl.BlockSpec((1, N, D), lambda b: (b, 0, 0)),
                  pl.BlockSpec((1, D), lambda b: (0, 0)),
                  pl.BlockSpec((1, D), lambda b: (0, 0)),
                  pl.BlockSpec((D, nc), lambda b: (0, 0)),
                  pl.BlockSpec((1, nc), lambda b: (0, 0))],
        out_specs=pl.BlockSpec((1, 1, nc), lambda b: (b, 0, 0)),
        compiler_params=pltpu.CompilerParams(
            dimension_semantics=("parallel",)),
    )(tok, params['fc_norm_g'].reshape(1, D), params['fc_norm_b'].reshape(1, D),
      params['head_w'].astype(jnp.bfloat16), params['head_b'].reshape(1, nc))
    return out.reshape(B, nc)


# ------------------------------ RoPE helpers -------------------------------

def build_rope_tables(grid_size, head_dim, heads, theta=10000.0):
    """EVA-02-style axial 2-D rotary tables over the patch grid, with an identity
    (sin=0, cos=1) row prepended for the cls token and tiled across heads so they
    apply directly to the (N, D) head-folded q/k.  Returns (cos, sin_up, sin_dn)
    where sin_up/sin_dn are parity-masked (+sin on odd lanes / -sin on even lanes)
    so the pair swap can be done with two pltpu.roll lane rotations in-kernel."""
    # TODO(synk): assumes a square patch grid (gh == gw), like the original helper.
    dim_axis = head_dim // 2
    freqs = 1.0 / (theta ** (jnp.arange(0, dim_axis, 2, dtype=jnp.float32) / dim_axis))
    t = jnp.arange(grid_size, dtype=jnp.float32)
    f = jnp.einsum('i,j->ij', t, freqs)                       # (g, dim_axis//2)
    f = jnp.repeat(f, 2, axis=-1)                             # interleaved pairs
    fh = jnp.broadcast_to(f[:, None, :], (grid_size, grid_size, dim_axis))
    fw = jnp.broadcast_to(f[None, :, :], (grid_size, grid_size, dim_axis))
    fr = jnp.concatenate([fh, fw], axis=-1).reshape(grid_size * grid_size, head_dim)
    sin = jnp.concatenate([jnp.zeros((1, head_dim), jnp.float32), jnp.sin(fr)], axis=0)
    cos = jnp.concatenate([jnp.ones((1, head_dim), jnp.float32), jnp.cos(fr)], axis=0)
    sin = jnp.tile(sin, (1, heads))                           # (N, D)
    cos = jnp.tile(cos, (1, heads))                           # (N, D)
    lane = jnp.arange(heads * head_dim)
    odd = (lane % 2 == 1).astype(jnp.float32)
    even = (lane % 2 == 0).astype(jnp.float32)
    sin_up = sin * odd          # multiplies roll(x, +1):  x[2i]   -> lane 2i+1
    sin_dn = -sin * even        # multiplies roll(x, -1):  x[2i+1] -> lane 2i (negated)
    return cos, sin_up, sin_dn


# ---------------------------- Model definition -----------------------------

class Cfg:
    img = 28          # scaled-down (real model: 224)
    patch = 14
    in_chans = 3
    dim = 128         # real: 768 (kept = 1 vreg lane width so RoPE lane rolls stay aligned)
    depth = 2         # real: 12
    heads = 4         # real: 12
    num_classes = 34
    mlp_hidden = int(128 * 4 * 2 / 3)   # timm-style SwiGLU hidden (real model: 2048)


def init_params(key, cfg):
    D, Hd = cfg.dim, cfg.mlp_hidden
    p, C = cfg.patch, cfg.in_chans
    n_tok = (cfg.img // p) ** 2 + 1

    def nrm(k, shape):
        return 0.02 * jax.random.normal(k, shape, jnp.float32)

    keys = iter(jax.random.split(key, 8 + cfg.depth * 12))
    params = {
        'patch_w': nrm(next(keys), (C * p * p, D)),
        'patch_b': jnp.zeros((D,), jnp.float32),
        'cls_token': nrm(next(keys), (1, 1, D)),
        'pos_embed': nrm(next(keys), (1, n_tok, D)),
        'fc_norm_g': jnp.ones((D,), jnp.float32),
        'fc_norm_b': jnp.zeros((D,), jnp.float32),
        'head_w': nrm(next(keys), (D, cfg.num_classes)),
        'head_b': jnp.zeros((cfg.num_classes,), jnp.float32),
        'blocks': [],
    }
    for _ in range(cfg.depth):
        blk = {
            'norm1_g': jnp.ones((D,), jnp.float32), 'norm1_b': jnp.zeros((D,), jnp.float32),
            'q_w': nrm(next(keys), (D, D)), 'q_b': jnp.zeros((D,), jnp.float32),
            'k_w': nrm(next(keys), (D, D)),                       # EVA-02: k has no bias
            'v_w': nrm(next(keys), (D, D)), 'v_b': jnp.zeros((D,), jnp.float32),
            'proj_w': nrm(next(keys), (D, D)), 'proj_b': jnp.zeros((D,), jnp.float32),
            'norm2_g': jnp.ones((D,), jnp.float32), 'norm2_b': jnp.zeros((D,), jnp.float32),
            'fc1g_w': nrm(next(keys), (D, Hd)), 'fc1g_b': jnp.zeros((Hd,), jnp.float32),
            'fc1x_w': nrm(next(keys), (D, Hd)), 'fc1x_b': jnp.zeros((Hd,), jnp.float32),
            'mlpn_g': jnp.ones((Hd,), jnp.float32), 'mlpn_b': jnp.zeros((Hd,), jnp.float32),
            'fc2_w': nrm(next(keys), (Hd, D)), 'fc2_b': jnp.zeros((D,), jnp.float32),
        }
        params['blocks'].append(blk)
    return params


def eva_forward(params, x, cfg=Cfg):
    B, C, H, W = x.shape
    p = cfg.patch
    gh, gw = H // p, W // p
    D, nH = cfg.dim, cfg.heads
    Dh = D // nH

    # Patch embed: conv(kernel=p, stride=p) == unfold into (C*p*p) vectors + matmul.
    patches = (x.reshape(B, C, gh, p, gw, p)
                 .transpose(0, 2, 4, 1, 3, 5)
                 .reshape(B * gh * gw, C * p * p))
    tok = linear(patches, params['patch_w'], params['patch_b']).reshape(B, gh * gw, D)

    cls = jnp.broadcast_to(params['cls_token'], (B, 1, D))
    tok = jnp.concatenate([cls, tok], axis=1) + params['pos_embed']

    # RoPE tables (cls row = identity rotation), parity-masked for the in-kernel rolls.
    cos, sin_up, sin_dn = build_rope_tables(gh, Dh, nH)

    # One fused Pallas kernel per transformer block (gridded over batch).
    for blk in params['blocks']:
        tok = eva_block(tok, cos, sin_up, sin_dn, blk, heads=nH)

    # avg-pool over patch tokens + fc_norm + classifier head (timm Eva default pooling).
    return eva_head(tok, params)


# --------------------------------- driver ----------------------------------

if __name__ == "__main__":
    key = jax.random.PRNGKey(0)
    pkey, xkey = jax.random.split(key)
    params = init_params(pkey, Cfg)
    x = jax.random.normal(xkey, (2, Cfg.in_chans, Cfg.img, Cfg.img), jnp.float32)

    fwd = jax.jit(eva_forward)
    logits = fwd(params, x)
    jax.block_until_ready(logits)
    assert logits.shape == (2, Cfg.num_classes)
    assert bool(jnp.all(jnp.isfinite(logits)))
    print("KERNEL_OK")
</pallas_src>

<mosaic_0001>
module attributes {stable_mosaic.version = 11 : i64} {
  func.func @_linear_kernel(%arg0: i32, %arg1: memref<8x588xf32, #tpu.memory_space<vmem>>, %arg2: memref<588x128xbf16, #tpu.memory_space<vmem>>, %arg3: memref<1x128xf32, #tpu.memory_space<vmem>>, %arg4: memref<8x128xf32, #tpu.memory_space<vmem>>) attributes {dimension_semantics = [#tpu.dimension_semantics<parallel>], iteration_bounds = array<i64: 1>, scalar_prefetch = 0 : i64, scratch_operands = 0 : i64, tpu.core_type = #tpu.core_type<tc>, window_params = [{transform_indices = @transform_0, window_bounds = array<i64: 8, 588>}, {pipeline_mode = #tpu.pipeline_mode<synchronous>, transform_indices = @transform_1, window_bounds = array<i64: 588, 128>}, {pipeline_mode = #tpu.pipeline_mode<synchronous>, transform_indices = @transform_2, window_bounds = array<i64: 1, 128>}, {transform_indices = @transform_3, window_bounds = array<i64: 8, 128>}]} {
    %c0 = arith.constant 0 : index
    %c0_0 = arith.constant 0 : index
    %0 = vector.load %arg1[%c0, %c0_0] : memref<8x588xf32, #tpu.memory_space<vmem>>, vector<8x588xf32>
    %1 = arith.truncf %0 : vector<8x588xf32> to vector<8x588xbf16>
    %c0_1 = arith.constant 0 : index
    %c0_2 = arith.constant 0 : index
    %2 = vector.load %arg2[%c0_1, %c0_2] : memref<588x128xbf16, #tpu.memory_space<vmem>>, vector<588x128xbf16>
    %cst = arith.constant dense<0.000000e+00> : vector<8x128xf32>
    %3 = tpu.matmul %1, %2, %cst {dimension_numbers = #tpu.dot_dimension_numbers<[1], [0], [0], [1], [0, 0, 1, 1], [], []>} : vector<8x588xbf16>, vector<588x128xbf16>, vector<8x128xf32> -> vector<8x128xf32>
    %c0_3 = arith.constant 0 : index
    %c0_4 = arith.constant 0 : index
    %4 = vector.load %arg3[%c0_3, %c0_4] : memref<1x128xf32, #tpu.memory_space<vmem>>, vector<1x128xf32>
    %5 = vector.broadcast %4 : vector<1x128xf32> to vector<8x128xf32>
    %6 = arith.addf %3, %5 : vector<8x128xf32>
    %c0_5 = arith.constant 0 : index
    %c0_6 = arith.constant 0 : index
    %7 = vector.load %arg4[%c0_5, %c0_6] : memref<8x128xf32, #tpu.memory_space<vmem>>, vector<8x128xf32>
    tpu.vector_store %arg4[%c0_5, %c0_6], %6 {strides = array<i32>} : memref<8x128xf32, #tpu.memory_space<vmem>>, vector<8x128xf32>,
    return
  }
  func.func @transform_0(%arg0: i32) -> (i32, i32) {
    %c0_i32 = arith.constant 0 : i32
    %c0_i32_0 = arith.constant 0 : i32
    return %arg0, %c0_i32 : i32, i32
  }
  func.func @transform_1(%arg0: i32) -> (i32, i32) {
    %c0_i32 = arith.constant 0 : i32
    %c0_i32_0 = arith.constant 0 : i32
    %c0_i32_1 = arith.constant 0 : i32
    return %c0_i32, %c0_i32_0 : i32, i32
  }
  func.func @transform_2(%arg0: i32) -> (i32, i32) {
    %c0_i32 = arith.constant 0 : i32
    %c0_i32_0 = arith.constant 0 : i32
    %c0_i32_1 = arith.constant 0 : i32
    return %c0_i32, %c0_i32_0 : i32, i32
  }
  func.func @transform_3(%arg0: i32) -> (i32, i32) {
    %c0_i32 = arith.constant 0 : i32
    %c0_i32_0 = arith.constant 0 : i32
    return %arg0, %c0_i32 : i32, i32
  }
}

module attributes {stable_mosaic.version = 11 : i64} {
  func.func @_block_kernel(%arg0: i32, %arg1: memref<1x5x128xf32, #tpu.memory_space<vmem>>, %arg2: memref<5x128xf32, #tpu.memory_space<vmem>>, %arg3: memref<5x128xf32, #tpu.memory_space<vmem>>, %arg4: memref<5x128xf32, #tpu.memory_space<vmem>>, %arg5: memref<1x128xf32, #tpu.memory_space<vmem>>, %arg6: memref<1x128xf32, #tpu.memory_space<vmem>>, %arg7: memref<128x128xbf16, #tpu.memory_space<vmem>>, %arg8: memref<1x128xf32, #tpu.memory_space<vmem>>, %arg9: memref<128x128xbf16, #tpu.memory_space<vmem>>, %arg10: memref<128x128xbf16, #tpu.memory_space<vmem>>, %arg11: memref<1x128xf32, #tpu.memory_space<vmem>>, %arg12: memref<128x128xbf16, #tpu.memory_space<vmem>>, %arg13: memref<1x128xf32, #tpu.memory_space<vmem>>, %arg14: memref<1x128xf32, #tpu.memory_space<vmem>>, %arg15: memref<1x128xf32, #tpu.memory_space<vmem>>, %arg16: memref<128x341xbf16, #tpu.memory_space<vmem>>, %arg17: memref<1x341xf32, #tpu.memory_space<vmem>>, %arg18: memref<128x341xbf16, #tpu.memory_space<vmem>>, %arg19: memref<1x341xf32, #tpu.memory_space<vmem>>, %arg20: memref<1x341xf32, #tpu.memory_space<vmem>>, %arg21: memref<1x341xf32, #tpu.memory_space<vmem>>, %arg22: memref<341x128xbf16, #tpu.memory_space<vmem>>, %arg23: memref<1x128xf32, #tpu.memory_space<vmem>>, %arg24: memref<1x5x128xf32, #tpu.memory_space<vmem>>) attributes {dimension_semantics = [#tpu.dimension_semantics<parallel>], iteration_bounds = array<i64: 2>, scalar_prefetch = 0 : i64, scratch_operands = 0 : i64, tpu.core_type = #tpu.core_type<tc>, window_params = [{transform_indices = @transform_0, window_bounds = array<i64: 1, 5, 128>}, {pipeline_mode = #tpu.pipeline_mode<synchronous>, transform_indices = @transform_1, window_bounds = array<i64: 5, 128>}, {pipeline_mode = #tpu.pipeline_mode<synchronous>, transform_indices = @transform_2, window_bounds = array<i64: 5, 128>}, {pipeline_mode = #tpu.pipeline_mode<synchronous>, transform_indices = @transform_3, window_bounds = array<i64: 5, 128>}, {pipeline_mode = #tpu.pipeline_mode<synchronous>, transform_indices = @transform_4, window_bounds = array<i64: 1, 128>}, {pipeline_mode = #tpu.pipeline_mode<synchronous>, transform_indices = @transform_5, window_bounds = array<i64: 1, 128>}, {pipeline_mode = #tpu.pipeline_mode<synchronous>, transform_indices = @transform_6, window_bounds = array<i64: 128, 128>}, {pipeline_mode = #tpu.pipeline_mode<synchronous>, transform_indices = @transform_7, window_bounds = array<i64: 1, 128>}, {pipeline_mode = #tpu.pipeline_mode<synchronous>, transform_indices = @transform_8, window_bounds = array<i64: 128, 128>}, {pipeline_mode = #tpu.pipeline_mode<synchronous>, transform_indices = @transform_9, window_bounds = array<i64: 128, 128>}, {pipeline_mode = #tpu.pipeline_mode<synchronous>, transform_indices = @transform_10, window_bounds = array<i64: 1, 128>}, {pipeline_mode = #tpu.pipeline_mode<synchronous>, transform_indices = @transform_11, window_bounds = array<i64: 128, 128>}, {pipeline_mode = #tpu.pipeline_mode<synchronous>, transform_indices = @transform_12, window_bounds = array<i64: 1, 128>}, {pipeline_mode = #tpu.pipeline_mode<synchronous>, transform_indices = @transform_13, window_bounds = array<i64: 1, 128>}, {pipeline_mode = #tpu.pipeline_mode<synchronous>, transform_indices = @transform_14, window_bounds = array<i64: 1, 128>}, {pipeline_mode = #tpu.pipeline_mode<synchronous>, transform_indices = @transform_15, window_bounds = array<i64: 128, 341>}, {pipeline_mode = #tpu.pipeline_mode<synchronous>, transform_indices = @transform_16, window_bounds = array<i64: 1, 341>}, {pipeline_mode = #tpu.pipeline_mode<synchronous>, transform_indices = @transform_17, window_bounds = array<i64: 128, 341>}, {pipeline_mode = #tpu.pipeline_mode<synchronous>, transform_indices = @transform_18, window_bounds = array<i64: 1, 341>}, {pipeline_mode = #tpu.pipeline_mode<synchronous>, transform_indices = @transform_19, window_bounds = array<i64: 1, 341>}, {pipeline_mode = #tpu.pipeline_mode<synchronous>, transform_indices = @transform_20, window_bounds = array<i64: 1, 341>}, {pipeline_mode = #tpu.pipeline_mode<synchronous>, transform_indices = @transform_21, window_bounds = array<i64: 341, 128>}, {pipeline_mode = #tpu.pipeline_mode<synchronous>, transform_indices = @transform_22, window_bounds = array<i64: 1, 128>}, {transform_indices = @transform_23, window_bounds = array<i64: 1, 5, 128>}]} {
    %c0 = arith.constant 0 : index
    %c0_0 = arith.constant 0 : index
    %c0_1 = arith.constant 0 : index
    %0 = vector.load %arg1[%c0, %c0_0, %c0_1] : memref<1x5x128xf32, #tpu.memory_space<vmem>>, vector<1x5x128xf32>
    %1 = vector.shape_cast %0 : vector<1x5x128xf32> to vector<5x128xf32>
    %c0_2 = arith.constant 0 : index
    %c0_3 = arith.constant 0 : index
    %2 = vector.load %arg2[%c0_2, %c0_3] : memref<5x128xf32, #tpu.memory_space<vmem>>, vector<5x128xf32>
    %c0_4 = arith.constant 0 : index
    %c0_5 = arith.constant 0 : index
    %3 = vector.load %arg3[%c0_4, %c0_5] : memref<5x128xf32, #tpu.memory_space<vmem>>, vector<5x128xf32>
    %c0_6 = arith.constant 0 : index
    %c0_7 = arith.constant 0 : index
    %4 = vector.load %arg4[%c0_6, %c0_7] : memref<5x128xf32, #tpu.memory_space<vmem>>, vector<5x128xf32>
    %cst = arith.constant dense<0.000000e+00> : vector<5xf32>
    %5 = vector.multi_reduction <add>, %1, %cst [1] : vector<5x128xf32> to vector<5xf32>
    %6 = vector.shape_cast %5 : vector<5xf32> to vector<5x1xf32>
    %cst_8 = arith.constant 1.280000e+02 : f32
    %7 = vector.broadcast %cst_8 : f32 to vector<5x1xf32>
    %8 = arith.divf %6, %7 : vector<5x1xf32>
    %9 = vector.broadcast %8 : vector<5x1xf32> to vector<5x128xf32>
    %10 = arith.subf %1, %9 : vector<5x128xf32>
    %11 = arith.mulf %10, %10 : vector<5x128xf32>
    %cst_9 = arith.constant dense<0.000000e+00> : vector<5xf32>
    %12 = vector.multi_reduction <add>, %11, %cst_9 [1] : vector<5x128xf32> to vector<5xf32>
    %13 = vector.shape_cast %12 : vector<5xf32> to vector<5x1xf32>
    %cst_10 = arith.constant 1.280000e+02 : f32
    %14 = vector.broadcast %cst_10 : f32 to vector<5x1xf32>
    %15 = arith.divf %13, %14 : vector<5x1xf32>
    %16 = vector.broadcast %8 : vector<5x1xf32> to vector<5x128xf32>
    %17 = arith.subf %1, %16 : vector<5x128xf32>
    %cst_11 = arith.constant 9.99999997E-7 : f32
    %18 = vector.broadcast %cst_11 : f32 to vector<5x1xf32>
    %19 = arith.addf %15, %18 : vector<5x1xf32>
    %20 = math.rsqrt %19 : vector<5x1xf32>
    %21 = vector.broadcast %20 : vector<5x1xf32> to vector<5x128xf32>
    %22 = arith.mulf %17, %21 : vector<5x128xf32>
    %c0_12 = arith.constant 0 : index
    %c0_13 = arith.constant 0 : index
    %23 = vector.load %arg5[%c0_12, %c0_13] : memref<1x128xf32, #tpu.memory_space<vmem>>, vector<1x128xf32>
    %24 = vector.broadcast %23 : vector<1x128xf32> to vector<5x128xf32>
    %25 = arith.mulf %22, %24 : vector<5x128xf32>
    %c0_14 = arith.constant 0 : index
    %c0_15 = arith.constant 0 : index
    %26 = vector.load %arg6[%c0_14, %c0_15] : memref<1x128xf32, #tpu.memory_space<vmem>>, vector<1x128xf32>
    %27 = vector.broadcast %26 : vector<1x128xf32> to vector<5x128xf32>
    %28 = arith.addf %25, %27 : vector<5x128xf32>
    %29 = arith.truncf %28 : vector<5x128xf32> to vector<5x128xbf16>
    %c0_16 = arith.constant 0 : index
    %c0_17 = arith.constant 0 : index
    %30 = vector.load %arg7[%c0_16, %c0_17] : memref<128x128xbf16, #tpu.memory_space<vmem>>, vector<128x128xbf16>
    %cst_18 = arith.constant dense<0.000000e+00> : vector<5x128xf32>
    %31 = tpu.matmul %29, %30, %cst_18 {dimension_numbers = #tpu.dot_dimension_numbers<[1], [0], [0], [1], [0, 0, 1, 1], [], []>} : vector<5x128xbf16>, vector<128x128xbf16>, vector<5x128xf32> -> vector<5x128xf32>
    %c0_19 = arith.constant 0 : index
    %c0_20 = arith.constant 0 : index
    %32 = vector.load %arg8[%c0_19, %c0_20] : memref<1x128xf32, #tpu.memory_space<vmem>>, vector<1x128xf32>
    %33 = vector.broadcast %32 : vector<1x128xf32> to vector<5x128xf32>
    %34 = arith.addf %31, %33 : vector<5x128xf32>
    %c0_21 = arith.constant 0 : index
    %c0_22 = arith.constant 0 : index
    %35 = vector.load %arg9[%c0_21, %c0_22] : memref<128x128xbf16, #tpu.memory_space<vmem>>, vector<128x128xbf16>
    %cst_23 = arith.constant dense<0.000000e+00> : vector<5x128xf32>
    %36 = tpu.matmul %29, %35, %cst_23 {dimension_numbers = #tpu.dot_dimension_numbers<[1], [0], [0], [1], [0, 0, 1, 1], [], []>} : vector<5x128xbf16>, vector<128x128xbf16>, vector<5x128xf32> -> vector<5x128xf32>
    %c0_24 = arith.constant 0 : index
    %c0_25 = arith.constant 0 : index
    %37 = vector.load %arg10[%c0_24, %c0_25] : memref<128x128xbf16, #tpu.memory_space<vmem>>, vector<128x128xbf16>
    %cst_26 = arith.constant dense<0.000000e+00> : vector<5x128xf32>
    %38 = tpu.matmul %29, %37, %cst_26 {dimension_numbers = #tpu.dot_dimension_numbers<[1], [0], [0], [1], [0, 0, 1, 1], [], []>} : vector<5x128xbf16>, vector<128x128xbf16>, vector<5x128xf32> -> vector<5x128xf32>
    %c0_27 = arith.constant 0 : index
    %c0_28 = arith.constant 0 : index
    %39 = vector.load %arg11[%c0_27, %c0_28] : memref<1x128xf32, #tpu.memory_space<vmem>>, vector<1x128xf32>
    %40 = vector.broadcast %39 : vector<1x128xf32> to vector<5x128xf32>
    %41 = arith.addf %38, %40 : vector<5x128xf32>
    %c1_i32 = arith.constant 1 : i32
    %42 = tpu.dynamic_rotate %34 by %c1_i32 dim 1 : vector<5x128xf32>, i32 -> vector<5x128xf32>
    %c127_i32 = arith.constant 127 : i32
    %43 = tpu.dynamic_rotate %34 by %c127_i32 dim 1 : vector<5x128xf32>, i32 -> vector<5x128xf32>
    %44 = arith.mulf %34, %2 : vector<5x128xf32>
    %45 = arith.mulf %42, %3 : vector<5x128xf32>
    %46 = arith.addf %44, %45 : vector<5x128xf32>
    %47 = arith.mulf %43, %4 : vector<5x128xf32>
    %48 = arith.addf %46, %47 : vector<5x128xf32>
    %cst_29 = arith.constant 0.176776692 : f32
    %49 = vector.broadcast %cst_29 : f32 to vector<5x128xf32>
    %50 = arith.mulf %48, %49 : vector<5x128xf32>
    %51 = arith.truncf %50 : vector<5x128xf32> to vector<5x128xbf16>
    %c1_i32_30 = arith.constant 1 : i32
    %52 = tpu.dynamic_rotate %36 by %c1_i32_30 dim 1 : vector<5x128xf32>, i32 -> vector<5x128xf32>
    %c127_i32_31 = arith.constant 127 : i32
    %53 = tpu.dynamic_rotate %36 by %c127_i32_31 dim 1 : vector<5x128xf32>, i32 -> vector<5x128xf32>
    %54 = arith.mulf %36, %2 : vector<5x128xf32>
    %55 = arith.mulf %52, %3 : vector<5x128xf32>
    %56 = arith.addf %54, %55 : vector<5x128xf32>
    %57 = arith.mulf %53, %4 : vector<5x128xf32>
    %58 = arith.addf %56, %57 : vector<5x128xf32>
    %59 = arith.truncf %58 : vector<5x128xf32> to vector<5x128xbf16>
    %60 = arith.truncf %41 : vector<5x128xf32> to vector<5x128xbf16>
    %c0_32 = arith.constant 0 : index
    %c0_33 = arith.constant 0 : index
    %61 = vector.load %arg13[%c0_32, %c0_33] : memref<1x128xf32, #tpu.memory_space<vmem>>, vector<1x128xf32>
    %62 = vector.broadcast %61 : vector<1x128xf32> to vector<5x128xf32>
    %63 = arith.addf %1, %62 : vector<5x128xf32>
    %64 = vector.extract_strided_slice %51 {offsets = [0, 0], sizes = [5, 32], strides = [1, 1]} : vector<5x128xbf16> to vector<5x32xbf16>
    %65 = vector.extract_strided_slice %59 {offsets = [0, 0], sizes = [5, 32], strides = [1, 1]} : vector<5x128xbf16> to vector<5x32xbf16>
    %cst_34 = arith.constant dense<0.000000e+00> : vector<5x5xf32>
    %66 = tpu.matmul %64, %65, %cst_34 {dimension_numbers = #tpu.dot_dimension_numbers<[1], [1], [0], [0], [0, 0, 1, 0], [], []>} : vector<5x32xbf16>, vector<5x32xbf16>, vector<5x5xf32> -> vector<5x5xf32>
    %cst_35 = arith.constant dense<0xFF800000> : vector<5xf32>
    %67 = vector.multi_reduction <maximumf>, %66, %cst_35 [1] : vector<5x5xf32> to vector<5xf32>
    %68 = vector.shape_cast %67 : vector<5xf32> to vector<5x1xf32>
    %69 = vector.broadcast %68 : vector<5x1xf32> to vector<5x5xf32>
    %70 = arith.subf %66, %69 : vector<5x5xf32>
    %71 = math.exp %70 : vector<5x5xf32>
    %cst_36 = arith.constant dense<0.000000e+00> : vector<5xf32>
    %72 = vector.multi_reduction <add>, %71, %cst_36 [1] : vector<5x5xf32> to vector<5xf32>
    %73 = vector.shape_cast %72 : vector<5xf32> to vector<5x1xf32>
    %74 = tpu.reciprocal %73 {approx = true} : vector<5x1xf32> -> vector<5x1xf32>
    %75 = arith.truncf %71 : vector<5x5xf32> to vector<5x5xbf16>
    %76 = vector.extract_strided_slice %60 {offsets = [0, 0], sizes = [5, 32], strides = [1, 1]} : vector<5x128xbf16> to vector<5x32xbf16>
    %cst_37 = arith.constant dense<0.000000e+00> : vector<5x32xf32>
    %77 = tpu.matmul %75, %76, %cst_37 {dimension_numbers = #tpu.dot_dimension_numbers<[1], [0], [0], [1], [0, 0, 1, 1], [], []>} : vector<5x5xbf16>, vector<5x32xbf16>, vector<5x32xf32> -> vector<5x32xf32>
    %78 = vector.broadcast %74 : vector<5x1xf32> to vector<5x32xf32>
    %79 = arith.mulf %77, %78 : vector<5x32xf32>
    %80 = arith.truncf %79 : vector<5x32xf32> to vector<5x32xbf16>
    %c0_38 = arith.constant 0 : index
    %c0_39 = arith.constant 0 : index
    %81 = vector.load %arg12[%c0_38, %c0_39] : memref<128x128xbf16, #tpu.memory_space<vmem>>, vector<32x128xbf16>
    %cst_40 = arith.constant dense<0.000000e+00> : vector<5x128xf32>
    %82 = tpu.matmul %80, %81, %cst_40 {dimension_numbers = #tpu.dot_dimension_numbers<[1], [0], [0], [1], [0, 0, 1, 1], [], []>} : vector<5x32xbf16>, vector<32x128xbf16>, vector<5x128xf32> -> vector<5x128xf32>
    %83 = arith.addf %63, %82 : vector<5x128xf32>
    %84 = vector.extract_strided_slice %51 {offsets = [0, 32], sizes = [5, 32], strides = [1, 1]} : vector<5x128xbf16> to vector<5x32xbf16>
    %85 = vector.extract_strided_slice %59 {offsets = [0, 32], sizes = [5, 32], strides = [1, 1]} : vector<5x128xbf16> to vector<5x32xbf16>
    %cst_41 = arith.constant dense<0.000000e+00> : vector<5x5xf32>
    %86 = tpu.matmul %84, %85, %cst_41 {dimension_numbers = #tpu.dot_dimension_numbers<[1], [1], [0], [0], [0, 0, 1, 0], [], []>} : vector<5x32xbf16>, vector<5x32xbf16>, vector<5x5xf32> -> vector<5x5xf32>
    %cst_42 = arith.constant dense<0xFF800000> : vector<5xf32>
    %87 = vector.multi_reduction <maximumf>, %86, %cst_42 [1] : vector<5x5xf32> to vector<5xf32>
    %88 = vector.shape_cast %87 : vector<5xf32> to vector<5x1xf32>
    %89 = vector.broadcast %88 : vector<5x1xf32> to vector<5x5xf32>
    %90 = arith.subf %86, %89 : vector<5x5xf32>
    %91 = math.exp %90 : vector<5x5xf32>
    %cst_43 = arith.constant dense<0.000000e+00> : vector<5xf32>
    %92 = vector.multi_reduction <add>, %91, %cst_43 [1] : vector<5x5xf32> to vector<5xf32>
    %93 = vector.shape_cast %92 : vector<5xf32> to vector<5x1xf32>
    %94 = tpu.reciprocal %93 {approx = true} : vector<5x1xf32> -> vector<5x1xf32>
    %95 = arith.truncf %91 : vector<5x5xf32> to vector<5x5xbf16>
    %96 = vector.extract_strided_slice %60 {offsets = [0, 32], sizes = [5, 32], strides = [1, 1]} : vector<5x128xbf16> to vector<5x32xbf16>
    %cst_44 = arith.constant dense<0.000000e+00> : vector<5x32xf32>
    %97 = tpu.matmul %95, %96, %cst_44 {dimension_numbers = #tpu.dot_dimension_numbers<[1], [0], [0], [1], [0, 0, 1, 1], [], []>} : vector<5x5xbf16>, vector<5x32xbf16>, vector<5x32xf32> -> vector<5x32xf32>
    %98 = vector.broadcast %94 : vector<5x1xf32> to vector<5x32xf32>
    %99 = arith.mulf %97, %98 : vector<5x32xf32>
    %100 = arith.truncf %99 : vector<5x32xf32> to vector<5x32xbf16>
    %c32 = arith.constant 32 : index
    %c0_45 = arith.constant 0 : index
    %101 = vector.load %arg12[%c32, %c0_45] : memref<128x128xbf16, #tpu.memory_space<vmem>>, vector<32x128xbf16>
    %cst_46 = arith.constant dense<0.000000e+00> : vector<5x128xf32>
    %102 = tpu.matmul %100, %101, %cst_46 {dimension_numbers = #tpu.dot_dimension_numbers<[1], [0], [0], [1], [0, 0, 1, 1], [], []>} : vector<5x32xbf16>, vector<32x128xbf16>, vector<5x128xf32> -> vector<5x128xf32>
    %103 = arith.addf %83, %102 : vector<5x128xf32>
    %104 = vector.extract_strided_slice %51 {offsets = [0, 64], sizes = [5, 32], strides = [1, 1]} : vector<5x128xbf16> to vector<5x32xbf16>
    %105 = vector.extract_strided_slice %59 {offsets = [0, 64], sizes = [5, 32], strides = [1, 1]} : vector<5x128xbf16> to vector<5x32xbf16>
    %cst_47 = arith.constant dense<0.000000e+00> : vector<5x5xf32>
    %106 = tpu.matmul %104, %105, %cst_47 {dimension_numbers = #tpu.dot_dimension_numbers<[1], [1], [0], [0], [0, 0, 1, 0], [], []>} : vector<5x32xbf16>, vector<5x32xbf16>, vector<5x5xf32> -> vector<5x5xf32>
    %cst_48 = arith.constant dense<0xFF800000> : vector<5xf32>
    %107 = vector.multi_reduction <maximumf>, %106, %cst_48 [1] : vector<5x5xf32> to vector<5xf32>
    %108 = vector.shape_cast %107 : vector<5xf32> to vector<5x1xf32>
    %109 = vector.broadcast %108 : vector<5x1xf32> to vector<5x5xf32>
    %110 = arith.subf %106, %109 : vector<5x5xf32>
    %111 = math.exp %110 : vector<5x5xf32>
    %cst_49 = arith.constant dense<0.000000e+00> : vector<5xf32>
    %112 = vector.multi_reduction <add>, %111, %cst_49 [1] : vector<5x5xf32> to vector<5xf32>
    %113 = vector.shape_cast %112 : vector<5xf32> to vector<5x1xf32>
    %114 = tpu.reciprocal %113 {approx = true} : vector<5x1xf32> -> vector<5x1xf32>
    %115 = arith.truncf %111 : vector<5x5xf32> to vector<5x5xbf16>
    %116 = vector.extract_strided_slice %60 {offsets = [0, 64], sizes = [5, 32], strides = [1, 1]} : vector<5x128xbf16> to vector<5x32xbf16>
    %cst_50 = arith.constant dense<0.000000e+00> : vector<5x32xf32>
    %117 = tpu.matmul %115, %116, %cst_50 {dimension_numbers = #tpu.dot_dimension_numbers<[1], [0], [0], [1], [0, 0, 1, 1], [], []>} : vector<5x5xbf16>, vector<5x32xbf16>, vector<5x32xf32> -> vector<5x32xf32>
    %118 = vector.broadcast %114 : vector<5x1xf32> to vector<5x32xf32>
    %119 = arith.mulf %117, %118 : vector<5x32xf32>
    %120 = arith.truncf %119 : vector<5x32xf32> to vector<5x32xbf16>
    %c64 = arith.constant 64 : index
    %c0_51 = arith.constant 0 : index
    %121 = vector.load %arg12[%c64, %c0_51] : memref<128x128xbf16, #tpu.memory_space<vmem>>, vector<32x128xbf16>
    %cst_52 = arith.constant dense<0.000000e+00> : vector<5x128xf32>
    %122 = tpu.matmul %120, %121, %cst_52 {dimension_numbers = #tpu.dot_dimension_numbers<[1], [0], [0], [1], [0, 0, 1, 1], [], []>} : vector<5x32xbf16>, vector<32x128xbf16>, vector<5x128xf32> -> vector<5x128xf32>
    %123 = arith.addf %103, %122 : vector<5x128xf32>
    %124 = vector.extract_strided_slice %51 {offsets = [0, 96], sizes = [5, 32], strides = [1, 1]} : vector<5x128xbf16> to vector<5x32xbf16>
    %125 = vector.extract_strided_slice %59 {offsets = [0, 96], sizes = [5, 32], strides = [1, 1]} : vector<5x128xbf16> to vector<5x32xbf16>
    %cst_53 = arith.constant dense<0.000000e+00> : vector<5x5xf32>
    %126 = tpu.matmul %124, %125, %cst_53 {dimension_numbers = #tpu.dot_dimension_numbers<[1], [1], [0], [0], [0, 0, 1, 0], [], []>} : vector<5x32xbf16>, vector<5x32xbf16>, vector<5x5xf32> -> vector<5x5xf32>
    %cst_54 = arith.constant dense<0xFF800000> : vector<5xf32>
    %127 = vector.multi_reduction <maximumf>, %126, %cst_54 [1] : vector<5x5xf32> to vector<5xf32>
    %128 = vector.shape_cast %127 : vector<5xf32> to vector<5x1xf32>
    %129 = vector.broadcast %128 : vector<5x1xf32> to vector<5x5xf32>
    %130 = arith.subf %126, %129 : vector<5x5xf32>
    %131 = math.exp %130 : vector<5x5xf32>
    %cst_55 = arith.constant dense<0.000000e+00> : vector<5xf32>
    %132 = vector.multi_reduction <add>, %131, %cst_55 [1] : vector<5x5xf32> to vector<5xf32>
    %133 = vector.shape_cast %132 : vector<5xf32> to vector<5x1xf32>
    %134 = tpu.reciprocal %133 {approx = true} : vector<5x1xf32> -> vector<5x1xf32>
    %135 = arith.truncf %131 : vector<5x5xf32> to vector<5x5xbf16>
    %136 = vector.extract_strided_slice %60 {offsets = [0, 96], sizes = [5, 32], strides = [1, 1]} : vector<5x128xbf16> to vector<5x32xbf16>
    %cst_56 = arith.constant dense<0.000000e+00> : vector<5x32xf32>
    %137 = tpu.matmul %135, %136, %cst_56 {dimension_numbers = #tpu.dot_dimension_numbers<[1], [0], [0], [1], [0, 0, 1, 1], [], []>} : vector<5x5xbf16>, vector<5x32xbf16>, vector<5x32xf32> -> vector<5x32xf32>
    %138 = vector.broadcast %134 : vector<5x1xf32> to vector<5x32xf32>
    %139 = arith.mulf %137, %138 : vector<5x32xf32>
    %140 = arith.truncf %139 : vector<5x32xf32> to vector<5x32xbf16>
    %c96 = arith.constant 96 : index
    %c0_57 = arith.constant 0 : index
    %141 = vector.load %arg12[%c96, %c0_57] : memref<128x128xbf16, #tpu.memory_space<vmem>>, vector<32x128xbf16>
    %cst_58 = arith.constant dense<0.000000e+00> : vector<5x128xf32>
    %142 = tpu.matmul %140, %141, %cst_58 {dimension_numbers = #tpu.dot_dimension_numbers<[1], [0], [0], [1], [0, 0, 1, 1], [], []>} : vector<5x32xbf16>, vector<32x128xbf16>, vector<5x128xf32> -> vector<5x128xf32>
    %143 = arith.addf %123, %142 : vector<5x128xf32>
    %cst_59 = arith.constant dense<0.000000e+00> : vector<5xf32>
    %144 = vector.multi_reduction <add>, %143, %cst_59 [1] : vector<5x128xf32> to vector<5xf32>
    %145 = vector.shape_cast %144 : vector<5xf32> to vector<5x1xf32>
    %cst_60 = arith.constant 1.280000e+02 : f32
    %146 = vector.broadcast %cst_60 : f32 to vector<5x1xf32>
    %147 = arith.divf %145, %146 : vector<5x1xf32>
    %148 = vector.broadcast %147 : vector<5x1xf32> to vector<5x128xf32>
    %149 = arith.subf %143, %148 : vector<5x128xf32>
    %150 = arith.mulf %149, %149 : vector<5x128xf32>
    %cst_61 = arith.constant dense<0.000000e+00> : vector<5xf32>
    %151 = vector.multi_reduction <add>, %150, %cst_61 [1] : vector<5x128xf32> to vector<5xf32>
    %152 = vector.shape_cast %151 : vector<5xf32> to vector<5x1xf32>
    %cst_62 = arith.constant 1.280000e+02 : f32
    %153 = vector.broadcast %cst_62 : f32 to vector<5x1xf32>
    %154 = arith.divf %152, %153 : vector<5x1xf32>
    %155 = vector.broadcast %147 : vector<5x1xf32> to vector<5x128xf32>
    %156 = arith.subf %143, %155 : vector<5x128xf32>
    %cst_63 = arith.constant 9.99999997E-7 : f32
    %157 = vector.broadcast %cst_63 : f32 to vector<5x1xf32>
    %158 = arith.addf %154, %157 : vector<5x1xf32>
    %159 = math.rsqrt %158 : vector<5x1xf32>
    %160 = vector.broadcast %159 : vector<5x1xf32> to vector<5x128xf32>
    %161 = arith.mulf %156, %160 : vector<5x128xf32>
    %c0_64 = arith.constant 0 : index
    %c0_65 = arith.constant 0 : index
    %162 = vector.load %arg14[%c0_64, %c0_65] : memref<1x128xf32, #tpu.memory_space<vmem>>, vector<1x128xf32>
    %163 = vector.broadcast %162 : vector<1x128xf32> to vector<5x128xf32>
    %164 = arith.mulf %161, %163 : vector<5x128xf32>
    %c0_66 = arith.constant 0 : index
    %c0_67 = arith.constant 0 : index
    %165 = vector.load %arg15[%c0_66, %c0_67] : memref<1x128xf32, #tpu.memory_space<vmem>>, vector<1x128xf32>
    %166 = vector.broadcast %165 : vector<1x128xf32> to vector<5x128xf32>
    %167 = arith.addf %164, %166 : vector<5x128xf32>
    %168 = arith.truncf %167 : vector<5x128xf32> to vector<5x128xbf16>
    %c0_68 = arith.constant 0 : index
    %c0_69 = arith.constant 0 : index
    %169 = vector.load %arg16[%c0_68, %c0_69] : memref<128x341xbf16, #tpu.memory_space<vmem>>, vector<128x341xbf16>
    %cst_70 = arith.constant dense<0.000000e+00> : vector<5x341xf32>
    %170 = tpu.matmul %168, %169, %cst_70 {dimension_numbers = #tpu.dot_dimension_numbers<[1], [0], [0], [1], [0, 0, 1, 1], [], []>} : vector<5x128xbf16>, vector<128x341xbf16>, vector<5x341xf32> -> vector<5x341xf32>
    %c0_71 = arith.constant 0 : index
    %c0_72 = arith.constant 0 : index
    %171 = vector.load %arg17[%c0_71, %c0_72] : memref<1x341xf32, #tpu.memory_space<vmem>>, vector<1x341xf32>
    %172 = vector.broadcast %171 : vector<1x341xf32> to vector<5x341xf32>
    %173 = arith.addf %170, %172 : vector<5x341xf32>
    %c0_73 = arith.constant 0 : index
    %c0_74 = arith.constant 0 : index
    %174 = vector.load %arg18[%c0_73, %c0_74] : memref<128x341xbf16, #tpu.memory_space<vmem>>, vector<128x341xbf16>
    %cst_75 = arith.constant dense<0.000000e+00> : vector<5x341xf32>
    %175 = tpu.matmul %168, %174, %cst_75 {dimension_numbers = #tpu.dot_dimension_numbers<[1], [0], [0], [1], [0, 0, 1, 1], [], []>} : vector<5x128xbf16>, vector<128x341xbf16>, vector<5x341xf32> -> vector<5x341xf32>
    %c0_76 = arith.constant 0 : index
    %c0_77 = arith.constant 0 : index
    %176 = vector.load %arg19[%c0_76, %c0_77] : memref<1x341xf32, #tpu.memory_space<vmem>>, vector<1x341xf32>
    %177 = vector.broadcast %176 : vector<1x341xf32> to vector<5x341xf32>
    %178 = arith.addf %175, %177 : vector<5x341xf32>
    %179 = arith.negf %173 : vector<5x341xf32>
    %180 = math.exp %179 : vector<5x341xf32>
    %cst_78 = arith.constant 1.000000e+00 : f32
    %181 = vector.broadcast %cst_78 : f32 to vector<5x341xf32>
    %182 = arith.addf %181, %180 : vector<5x341xf32>
    %183 = arith.divf %181, %182 : vector<5x341xf32>
    %184 = arith.mulf %173, %183 : vector<5x341xf32>
    %185 = arith.mulf %184, %178 : vector<5x341xf32>
    %cst_79 = arith.constant dense<0.000000e+00> : vector<5xf32>
    %186 = vector.multi_reduction <add>, %185, %cst_79 [1] : vector<5x341xf32> to vector<5xf32>
    %187 = vector.shape_cast %186 : vector<5xf32> to vector<5x1xf32>
    %cst_80 = arith.constant 3.410000e+02 : f32
    %188 = vector.broadcast %cst_80 : f32 to vector<5x1xf32>
    %189 = arith.divf %187, %188 : vector<5x1xf32>
    %190 = vector.broadcast %189 : vector<5x1xf32> to vector<5x341xf32>
    %191 = arith.subf %185, %190 : vector<5x341xf32>
    %192 = arith.mulf %191, %191 : vector<5x341xf32>
    %cst_81 = arith.constant dense<0.000000e+00> : vector<5xf32>
    %193 = vector.multi_reduction <add>, %192, %cst_81 [1] : vector<5x341xf32> to vector<5xf32>
    %194 = vector.shape_cast %193 : vector<5xf32> to vector<5x1xf32>
    %cst_82 = arith.constant 3.410000e+02 : f32
    %195 = vector.broadcast %cst_82 : f32 to vector<5x1xf32>
    %196 = arith.divf %194, %195 : vector<5x1xf32>
    %197 = vector.broadcast %189 : vector<5x1xf32> to vector<5x341xf32>
    %198 = arith.subf %185, %197 : vector<5x341xf32>
    %cst_83 = arith.constant 9.99999997E-7 : f32
    %199 = vector.broadcast %cst_83 : f32 to vector<5x1xf32>
    %200 = arith.addf %196, %199 : vector<5x1xf32>
    %201 = math.rsqrt %200 : vector<5x1xf32>
    %202 = vector.broadcast %201 : vector<5x1xf32> to vector<5x341xf32>
    %203 = arith.mulf %198, %202 : vector<5x341xf32>
    %c0_84 = arith.constant 0 : index
    %c0_85 = arith.constant 0 : index
    %204 = vector.load %arg20[%c0_84, %c0_85] : memref<1x341xf32, #tpu.memory_space<vmem>>, vector<1x341xf32>
    %205 = vector.broadcast %204 : vector<1x341xf32> to vector<5x341xf32>
    %206 = arith.mulf %203, %205 : vector<5x341xf32>
    %c0_86 = arith.constant 0 : index
    %c0_87 = arith.constant 0 : index
    %207 = vector.load %arg21[%c0_86, %c0_87] : memref<1x341xf32, #tpu.memory_space<vmem>>, vector<1x341xf32>
    %208 = vector.broadcast %207 : vector<1x341xf32> to vector<5x341xf32>
    %209 = arith.addf %206, %208 : vector<5x341xf32>
    %210 = arith.truncf %209 : vector<5x341xf32> to vector<5x341xbf16>
    %c0_88 = arith.constant 0 : index
    %c0_89 = arith.constant 0 : index
    %211 = vector.load %arg22[%c0_88, %c0_89] : memref<341x128xbf16, #tpu.memory_space<vmem>>, vector<341x128xbf16>
    %cst_90 = arith.constant dense<0.000000e+00> : vector<5x128xf32>
    %212 = tpu.matmul %210, %211, %cst_90 {dimension_numbers = #tpu.dot_dimension_numbers<[1], [0], [0], [1], [0, 0, 1, 1], [], []>} : vector<5x341xbf16>, vector<341x128xbf16>, vector<5x128xf32> -> vector<5x128xf32>
    %213 = arith.addf %143, %212 : vector<5x128xf32>
    %c0_91 = arith.constant 0 : index
    %c0_92 = arith.constant 0 : index
    %214 = vector.load %arg23[%c0_91, %c0_92] : memref<1x128xf32, #tpu.memory_space<vmem>>, vector<1x128xf32>
    %215 = vector.broadcast %214 : vector<1x128xf32> to vector<5x128xf32>
    %216 = arith.addf %213, %215 : vector<5x128xf32>
    %c0_93 = arith.constant 0 : index
    %c0_94 = arith.constant 0 : index
    %c0_95 = arith.constant 0 : index
    %217 = vector.load %arg24[%c0_93, %c0_94, %c0_95] : memref<1x5x128xf32, #tpu.memory_space<vmem>>, vector<1x5x128xf32>
    %218 = vector.shape_cast %217 : vector<1x5x128xf32> to vector<5x128xf32>
    %219 = vector.shape_cast %216 : vector<5x128xf32> to vector<1x5x128xf32>
    tpu.vector_store %arg24[%c0_93, %c0_94, %c0_95], %219 {strides = array<i32>} : memref<1x5x128xf32, #tpu.memory_space<vmem>>, vector<1x5x128xf32>,
    return
  }
  func.func @transform_0(%arg0: i32) -> (i32, i32, i32) {
    %c0_i32 = arith.constant 0 : i32
    %c0_i32_0 = arith.constant 0 : i32
    %c0_i32_1 = arith.constant 0 : i32
    return %arg0, %c0_i32, %c0_i32_0 : i32, i32, i32
  }
  func.func @transform_1(%arg0: i32) -> (i32, i32) {
    %c0_i32 = arith.constant 0 : i32
    %c0_i32_0 = arith.constant 0 : i32
    %c0_i32_1 = arith.constant 0 : i32
    return %c0_i32, %c0_i32_0 : i32, i32
  }
  func.func @transform_2(%arg0: i32) -> (i32, i32) {
    %c0_i32 = arith.constant 0 : i32
    %c0_i32_0 = arith.constant 0 : i32
    %c0_i32_1 = arith.constant 0 : i32
    return %c0_i32, %c0_i32_0 : i32, i32
  }
  func.func @transform_3(%arg0: i32) -> (i32, i32) {
    %c0_i32 = arith.constant 0 : i32
    %c0_i32_0 = arith.constant 0 : i32
    %c0_i32_1 = arith.constant 0 : i32
    return %c0_i32, %c0_i32_0 : i32, i32
  }
  func.func @transform_4(%arg0: i32) -> (i32, i32) {
    %c0_i32 = arith.constant 0 : i32
    %c0_i32_0 = arith.constant 0 : i32
    %c0_i32_1 = arith.constant 0 : i32
    return %c0_i32, %c0_i32_0 : i32, i32
  }
  func.func @transform_5(%arg0: i32) -> (i32, i32) {
    %c0_i32 = arith.constant 0 : i32
    %c0_i32_0 = arith.constant 0 : i32
    %c0_i32_1 = arith.constant 0 : i32
    return %c0_i32, %c0_i32_0 : i32, i32
  }
  func.func @transform_6(%arg0: i32) -> (i32, i32) {
    %c0_i32 = arith.constant 0 : i32
    %c0_i32_0 = arith.constant 0 : i32
    %c0_i32_1 = arith.constant 0 : i32
    return %c0_i32, %c0_i32_0 : i32, i32
  }
  func.func @transform_7(%arg0: i32) -> (i32, i32) {
    %c0_i32 = arith.constant 0 : i32
    %c0_i32_0 = arith.constant 0 : i32
    %c0_i32_1 = arith.constant 0 : i32
    return %c0_i32, %c0_i32_0 : i32, i32
  }
  func.func @transform_8(%arg0: i32) -> (i32, i32) {
    %c0_i32 = arith.constant 0 : i32
    %c0_i32_0 = arith.constant 0 : i32
    %c0_i32_1 = arith.constant 0 : i32
    return %c0_i32, %c0_i32_0 : i32, i32
  }
  func.func @transform_9(%arg0: i32) -> (i32, i32) {
    %c0_i32 = arith.constant 0 : i32
    %c0_i32_0 = arith.constant 0 : i32
    %c0_i32_1 = arith.constant 0 : i32
    return %c0_i32, %c0_i32_0 : i32, i32
  }
  func.func @transform_10(%arg0: i32) -> (i32, i32) {
    %c0_i32 = arith.constant 0 : i32
    %c0_i32_0 = arith.constant 0 : i32
    %c0_i32_1 = arith.constant 0 : i32
    return %c0_i32, %c0_i32_0 : i32, i32
  }
  func.func @transform_11(%arg0: i32) -> (i32, i32) {
    %c0_i32 = arith.constant 0 : i32
    %c0_i32_0 = arith.constant 0 : i32
    %c0_i32_1 = arith.constant 0 : i32
    return %c0_i32, %c0_i32_0 : i32, i32
  }
  func.func @transform_12(%arg0: i32) -> (i32, i32) {
    %c0_i32 = arith.constant 0 : i32
    %c0_i32_0 = arith.constant 0 : i32
    %c0_i32_1 = arith.constant 0 : i32
    return %c0_i32, %c0_i32_0 : i32, i32
  }
  func.func @transform_13(%arg0: i32) -> (i32, i32) {
    %c0_i32 = arith.constant 0 : i32
    %c0_i32_0 = arith.constant 0 : i32
    %c0_i32_1 = arith.constant 0 : i32
    return %c0_i32, %c0_i32_0 : i32, i32
  }
  func.func @transform_14(%arg0: i32) -> (i32, i32) {
    %c0_i32 = arith.constant 0 : i32
    %c0_i32_0 = arith.constant 0 : i32
    %c0_i32_1 = arith.constant 0 : i32
    return %c0_i32, %c0_i32_0 : i32, i32
  }
  func.func @transform_15(%arg0: i32) -> (i32, i32) {
    %c0_i32 = arith.constant 0 : i32
    %c0_i32_0 = arith.constant 0 : i32
    %c0_i32_1 = arith.constant 0 : i32
    return %c0_i32, %c0_i32_0 : i32, i32
  }
  func.func @transform_16(%arg0: i32) -> (i32, i32) {
    %c0_i32 = arith.constant 0 : i32
    %c0_i32_0 = arith.constant 0 : i32
    %c0_i32_1 = arith.constant 0 : i32
    return %c0_i32, %c0_i32_0 : i32, i32
  }
  func.func @transform_17(%arg0: i32) -> (i32, i32) {
    %c0_i32 = arith.constant 0 : i32
    %c0_i32_0 = arith.constant 0 : i32
    %c0_i32_1 = arith.constant 0 : i32
    return %c0_i32, %c0_i32_0 : i32, i32
  }
  func.func @transform_18(%arg0: i32) -> (i32, i32) {
    %c0_i32 = arith.constant 0 : i32
    %c0_i32_0 = arith.constant 0 : i32
    %c0_i32_1 = arith.constant 0 : i32
    return %c0_i32, %c0_i32_0 : i32, i32
  }
  func.func @transform_19(%arg0: i32) -> (i32, i32) {
    %c0_i32 = arith.constant 0 : i32
    %c0_i32_0 = arith.constant 0 : i32
    %c0_i32_1 = arith.constant 0 : i32
    return %c0_i32, %c0_i32_0 : i32, i32
  }
  func.func @transform_20(%arg0: i32) -> (i32, i32) {
    %c0_i32 = arith.constant 0 : i32
    %c0_i32_0 = arith.constant 0 : i32
    %c0_i32_1 = arith.constant 0 : i32
    return %c0_i32, %c0_i32_0 : i32, i32
  }
  func.func @transform_21(%arg0: i32) -> (i32, i32) {
    %c0_i32 = arith.constant 0 : i32
    %c0_i32_0 = arith.constant 0 : i32
    %c0_i32_1 = arith.constant 0 : i32
    return %c0_i32, %c0_i32_0 : i32, i32
  }
  func.func @transform_22(%arg0: i32) -> (i32, i32) {
    %c0_i32 = arith.constant 0 : i32
    %c0_i32_0 = arith.constant 0 : i32
    %c0_i32_1 = arith.constant 0 : i32
    return %c0_i32, %c0_i32_0 : i32, i32
  }
  func.func @transform_23(%arg0: i32) -> (i32, i32, i32) {
    %c0_i32 = arith.constant 0 : i32
    %c0_i32_0 = arith.constant 0 : i32
    %c0_i32_1 = arith.constant 0 : i32
    return %arg0, %c0_i32, %c0_i32_0 : i32, i32, i32
  }
}

module attributes {stable_mosaic.version = 11 : i64} {
  func.func @_head_kernel(%arg0: i32, %arg1: memref<1x5x128xf32, #tpu.memory_space<vmem>>, %arg2: memref<1x128xf32, #tpu.memory_space<vmem>>, %arg3: memref<1x128xf32, #tpu.memory_space<vmem>>, %arg4: memref<128x34xbf16, #tpu.memory_space<vmem>>, %arg5: memref<1x34xf32, #tpu.memory_space<vmem>>, %arg6: memref<1x1x34xf32, #tpu.memory_space<vmem>>) attributes {dimension_semantics = [#tpu.dimension_semantics<parallel>], iteration_bounds = array<i64: 2>, scalar_prefetch = 0 : i64, scratch_operands = 0 : i64, tpu.core_type = #tpu.core_type<tc>, window_params = [{transform_indices = @transform_0, window_bounds = array<i64: 1, 5, 128>}, {pipeline_mode = #tpu.pipeline_mode<synchronous>, transform_indices = @transform_1, window_bounds = array<i64: 1, 128>}, {pipeline_mode = #tpu.pipeline_mode<synchronous>, transform_indices = @transform_2, window_bounds = array<i64: 1, 128>}, {pipeline_mode = #tpu.pipeline_mode<synchronous>, transform_indices = @transform_3, window_bounds = array<i64: 128, 34>}, {pipeline_mode = #tpu.pipeline_mode<synchronous>, transform_indices = @transform_4, window_bounds = array<i64: 1, 34>}, {transform_indices = @transform_5, window_bounds = array<i64: 1, 1, 34>}]} {
    %c0 = arith.constant 0 : index
    %c0_0 = arith.constant 0 : index
    %c0_1 = arith.constant 0 : index
    %0 = vector.load %arg1[%c0, %c0_0, %c0_1] : memref<1x5x128xf32, #tpu.memory_space<vmem>>, vector<1x5x128xf32>
    %1 = vector.shape_cast %0 : vector<1x5x128xf32> to vector<5x128xf32>
    %2 = vector.extract_strided_slice %1 {offsets = [1, 0], sizes = [4, 128], strides = [1, 1]} : vector<5x128xf32> to vector<4x128xf32>
    %cst = arith.constant dense<0.000000e+00> : vector<128xf32>
    %3 = vector.multi_reduction <add>, %2, %cst [0] : vector<4x128xf32> to vector<128xf32>
    %4 = vector.shape_cast %3 : vector<128xf32> to vector<1x128xf32>
    %cst_2 = arith.constant 4.000000e+00 : f32
    %5 = vector.broadcast %cst_2 : f32 to vector<1x128xf32>
    %6 = arith.divf %4, %5 : vector<1x128xf32>
    %cst_3 = arith.constant dense<0.000000e+00> : vector<1xf32>
    %7 = vector.multi_reduction <add>, %6, %cst_3 [1] : vector<1x128xf32> to vector<1xf32>
    %8 = vector.shape_cast %7 : vector<1xf32> to vector<1x1xf32>
    %cst_4 = arith.constant 1.280000e+02 : f32
    %9 = vector.broadcast %cst_4 : f32 to vector<1x1xf32>
    %10 = arith.divf %8, %9 : vector<1x1xf32>
    %11 = vector.broadcast %10 : vector<1x1xf32> to vector<1x128xf32>
    %12 = arith.subf %6, %11 : vector<1x128xf32>
    %13 = arith.mulf %12, %12 : vector<1x128xf32>
    %cst_5 = arith.constant dense<0.000000e+00> : vector<1xf32>
    %14 = vector.multi_reduction <add>, %13, %cst_5 [1] : vector<1x128xf32> to vector<1xf32>
    %15 = vector.shape_cast %14 : vector<1xf32> to vector<1x1xf32>
    %cst_6 = arith.constant 1.280000e+02 : f32
    %16 = vector.broadcast %cst_6 : f32 to vector<1x1xf32>
    %17 = arith.divf %15, %16 : vector<1x1xf32>
    %18 = vector.broadcast %10 : vector<1x1xf32> to vector<1x128xf32>
    %19 = arith.subf %6, %18 : vector<1x128xf32>
    %cst_7 = arith.constant 9.99999997E-7 : f32
    %20 = vector.broadcast %cst_7 : f32 to vector<1x1xf32>
    %21 = arith.addf %17, %20 : vector<1x1xf32>
    %22 = math.rsqrt %21 : vector<1x1xf32>
    %23 = vector.broadcast %22 : vector<1x1xf32> to vector<1x128xf32>
    %24 = arith.mulf %19, %23 : vector<1x128xf32>
    %c0_8 = arith.constant 0 : index
    %c0_9 = arith.constant 0 : index
    %25 = vector.load %arg2[%c0_8, %c0_9] : memref<1x128xf32, #tpu.memory_space<vmem>>, vector<1x128xf32>
    %26 = arith.mulf %24, %25 : vector<1x128xf32>
    %c0_10 = arith.constant 0 : index
    %c0_11 = arith.constant 0 : index
    %27 = vector.load %arg3[%c0_10, %c0_11] : memref<1x128xf32, #tpu.memory_space<vmem>>, vector<1x128xf32>
    %28 = arith.addf %26, %27 : vector<1x128xf32>
    %29 = arith.truncf %28 : vector<1x128xf32> to vector<1x128xbf16>
    %c0_12 = arith.constant 0 : index
    %c0_13 = arith.constant 0 : index
    %30 = vector.load %arg4[%c0_12, %c0_13] : memref<128x34xbf16, #tpu.memory_space<vmem>>, vector<128x34xbf16>
    %cst_14 = arith.constant dense<0.000000e+00> : vector<1x34xf32>
    %31 = tpu.matmul %29, %30, %cst_14 {dimension_numbers = #tpu.dot_dimension_numbers<[1], [0], [0], [1], [0, 0, 1, 1], [], []>} : vector<1x128xbf16>, vector<128x34xbf16>, vector<1x34xf32> -> vector<1x34xf32>
    %c0_15 = arith.constant 0 : index
    %c0_16 = arith.constant 0 : index
    %32 = vector.load %arg5[%c0_15, %c0_16] : memref<1x34xf32, #tpu.memory_space<vmem>>, vector<1x34xf32>
    %33 = arith.addf %31, %32 : vector<1x34xf32>
    %c0_17 = arith.constant 0 : index
    %c0_18 = arith.constant 0 : index
    %c0_19 = arith.constant 0 : index
    %34 = vector.load %arg6[%c0_17, %c0_18, %c0_19] : memref<1x1x34xf32, #tpu.memory_space<vmem>>, vector<1x1x34xf32>
    %35 = vector.shape_cast %34 : vector<1x1x34xf32> to vector<1x34xf32>
    %36 = vector.shape_cast %33 : vector<1x34xf32> to vector<1x1x34xf32>
    tpu.vector_store %arg6[%c0_17, %c0_18, %c0_19], %36 {strides = array<i32>} : memref<1x1x34xf32, #tpu.memory_space<vmem>>, vector<1x1x34xf32>,
    return
  }
  func.func @transform_0(%arg0: i32) -> (i32, i32, i32) {
    %c0_i32 = arith.constant 0 : i32
    %c0_i32_0 = arith.constant 0 : i32
    %c0_i32_1 = arith.constant 0 : i32
    return %arg0, %c0_i32, %c0_i32_0 : i32, i32, i32
  }
  func.func @transform_1(%arg0: i32) -> (i32, i32) {
    %c0_i32 = arith.constant 0 : i32
    %c0_i32_0 = arith.constant 0 : i32
    %c0_i32_1 = arith.constant 0 : i32
    return %c0_i32, %c0_i32_0 : i32, i32
  }
  func.func @transform_2(%arg0: i32) -> (i32, i32) {
    %c0_i32 = arith.constant 0 : i32
    %c0_i32_0 = arith.constant 0 : i32
    %c0_i32_1 = arith.constant 0 : i32
    return %c0_i32, %c0_i32_0 : i32, i32
  }
  func.func @transform_3(%arg0: i32) -> (i32, i32) {
    %c0_i32 = arith.constant 0 : i32
    %c0_i32_0 = arith.constant 0 : i32
    %c0_i32_1 = arith.constant 0 : i32
    return %c0_i32, %c0_i32_0 : i32, i32
  }
  func.func @transform_4(%arg0: i32) -> (i32, i32) {
    %c0_i32 = arith.constant 0 : i32
    %c0_i32_0 = arith.constant 0 : i32
    %c0_i32_1 = arith.constant 0 : i32
    return %c0_i32, %c0_i32_0 : i32, i32
  }
  func.func @transform_5(%arg0: i32) -> (i32, i32, i32) {
    %c0_i32 = arith.constant 0 : i32
    %c0_i32_0 = arith.constant 0 : i32
    %c0_i32_1 = arith.constant 0 : i32
    return %arg0, %c0_i32, %c0_i32_0 : i32, i32, i32
  }
}

</mosaic_0001>

<bundles_post_ra>
// kernel: tile.14
= control target key start
LH: loop header
LB: loop body
LE: loop exit
PB: predicated region body
PF: predicated region fallthrough
CT: control target
= control target key end

     0   :  { %vm28_vm0 = vcmask 1044484   ;;  %vm30_vm1 = vcmask 261120   ;;  %s73_s16 = smov 32   ;;  %s74_s19 = smov 64   ;;  %vm40_vm2 = vcmask 1048320   ;;  %vm50_vm3 = vcmask 785920   ;;  %s117_s0 = inlined_call_operand.vmem [shape: f32[5,4,32], index: 0, kind: input, shape index: {}]   ;;  %s118_s1 = inlined_call_operand.vmem [shape: f32[5,128], index: 1, kind: output, shape index: {}]  }
   0x1   :  { %v65_v0 = vld [vmem:[%s117_s0 + $0x10] sm:$0xf]  ;;  %v66_v1 = vld [vmem:[%s117_s0 + $0xc] sm:$0xf]  ;;  %v67_v2 = vld [vmem:[%s117_s0 + $0x8] sm:$0xf] }
   0x2   :  { %8 = vst [vmem:[#allocation0 + $0x20] sm:$0xf] %v65_v0  ;;  %13 = vst [vmem:[#allocation0 + $0x18] sm:$0xf] %v66_v1  ;;  %v68_v3 = vld [vmem:[%s117_s0 + $0x4] sm:$0xf] }
   0x3   :  { %18 = vst [vmem:[#allocation0 + $0x10] sm:$0xf] %v67_v2  ;;  %v23_v4 = vld [vmem:[%s117_s0] sm:$0xf]  ;;  %22 = vst [vmem:[#allocation0 + $0x8] sm:$0xf] %v68_v3 }
   0x4   :  { %24 = vst [vmem:[#allocation0] sm:$0xf] %v23_v4  ;;  %s72_s0 = smov 96   ;;  %vm60_vm4 = vcmask 523520  }
   0x9   :  { %v35_v5 = vld [vmem:[#allocation0 + $0x1f] sm:$0x10]   ;;  %v45_v6 = vld [vmem:[#allocation0 + $0x1e] sm:$0x10]   ;;  %v55_v7 = vld [vmem:[#allocation0 + $0x1d] sm:$0x10]  }
   0xa   :  { %v27_v14 = vld [vmem:[#allocation0 + $0x1c] sm:$0x10]  }
   0xb   :  { %v33_v8 = vld [vmem:[#allocation0 + $0x3] ss:$8 sm:$0xf]   ;;  %v43_v9 = vld [vmem:[#allocation0 + $0x2] ss:$8 sm:$0xf]  }
   0xc   :  { %v37_v10 = vsel %vm28_vm0, %v35_v5, %v33_v8  ;;  %v53_v11 = vld [vmem:[#allocation0 + $0x1] ss:$8 sm:$0xf]   ;;  %v25_v12 = vld [vmem:[#allocation0] ss:$8 sm:$0xf]   ;;  %v47_v15 = vsel %vm28_vm0, %v45_v6, %v43_v9 }
   0xd   :  { %38 = vrot.lane.b32.xlu0 %v37_v10, %s72_s0  ;;  %v57_v13 = vsel %vm28_vm0, %v55_v7, %v53_v11  ;;  %v29_v16 = vsel %vm28_vm0, %v27_v14, %v25_v12 }
   0xe   :  { %58 = vrot.lane.b32.xlu1 %v57_v13, %s73_s16  ;;  %31 = vst.msk [vmem:[%s118_s1] sm:$0x1f] %vm30_vm1, %v29_v16  }
  0x11   :  { %48 = vrot.lane.b32.xlu0 %v47_v15, %s74_s19 }
  0x7f   :  { %v39_v17 = vpop.permute.xlu0 %38  }
  0x80   :  { %41 = vst.msk [vmem:[%s118_s1] sm:$0x1f] %vm40_vm2, %v39_v17   ;;  %v59_v18 = vpop.permute.xlu1 %58  }
  0x83   :  { %v49_v19 = vpop.permute.xlu0 %48  }
  0x84   :  { %51 = vst.msk [vmem:[%s118_s1] sm:$0x1f] %vm50_vm3, %v49_v19  }
  0x85   :  { %61 = vst.msk [vmem:[%s118_s1] sm:$0x1f] %vm60_vm4, %v59_v18  }

// kernel: tile.19
= control target key start
LH: loop header
LB: loop body
LE: loop exit
PB: predicated region body
PF: predicated region fallthrough
CT: control target
= control target key end

     0   :  { %s154_s0 = inlined_call_operand.vmem [shape: f32[5,4,32], index: 0, kind: input, shape index: {}]   ;;  %s155_s1 = inlined_call_operand.hbm [shape: f32[5,128], index: 1, kind: output, shape index: {}]  }
   0x1   :  { %v76_v0 = vld [vmem:[%s154_s0 + $0x10] sm:$0xf]  ;;  %v77_v1 = vld [vmem:[%s154_s0 + $0xc] sm:$0xf]  ;;  %v78_v2 = vld [vmem:[%s154_s0 + $0x8] sm:$0xf] }
   0x2   :  { %9 = vst [vmem:[#allocation2 + $0x20] sm:$0xf] %v76_v0  ;;  %14 = vst [vmem:[#allocation2 + $0x18] sm:$0xf] %v77_v1  ;;  %v79_v3 = vld [vmem:[%s154_s0 + $0x4] sm:$0xf] }
   0x3   :  { %19 = vst [vmem:[#allocation2 + $0x10] sm:$0xf] %v78_v2  ;;  %v24_v4 = vld [vmem:[%s154_s0] sm:$0xf]  ;;  %23 = vst [vmem:[#allocation2 + $0x8] sm:$0xf] %v79_v3 }
   0x4   :  { %25 = vst [vmem:[#allocation2] sm:$0xf] %v24_v4 }
   0x5   :  { %2 = vsyncpa [#allocation1], 0  ;;  %vm29_vm0 = vcmask 1044484   ;;  %vm31_vm1 = vcmask 261120   ;;  %s108_s0 = smov 96   ;;  %s109_s16 = smov 32  }
   0x6   :  { %s110_s17 = smov 64   ;;  %vm41_vm2 = vcmask 1048320   ;;  %s111_s18 = smov [#allocation0]   ;;  %vm51_vm3 = vcmask 785920   ;;  %vm61_vm4 = vcmask 523520  }
   0x7   :  { %s67_s19 = sshll.u32 %s111_s18, 4  ;;  %s68_s19 = int_to_ptr.vmem [resolvable:$true] %s67_s19 }
   0x8   :  { %s84_s20 = scalar_lea.vmem %s68_s19, 128  ;;  %p89_p1 = scmp.lt.s32.totalorder %s68_s19, %s68_s19 }
   0x9   :  { %v36_v5 = vld [vmem:[#allocation2 + $0x1f] sm:$0x10]   ;;  %v46_v6 = vld [vmem:[#allocation2 + $0x1e] sm:$0x10]   ;;  %v56_v7 = vld [vmem:[#allocation2 + $0x1d] sm:$0x10]   ;;  %p85_p0 = scmp.ne.s32.totalorder %s68_s19, %s84_s20  ;;  %p90_p2 = scmp.lt.s32.totalorder %s84_s20, %s84_s20 }
   0xa   :  { %v28_v14 = vld [vmem:[#allocation2 + $0x1c] sm:$0x10]  }
   0xb   :  { %v34_v8 = vld [vmem:[#allocation2 + $0x3] ss:$8 sm:$0xf]   ;;  %v44_v9 = vld [vmem:[#allocation2 + $0x2] ss:$8 sm:$0xf]   ;;  %p91_p3 = por %p90_p2, %p89_p1 }
   0xc   :  { %v38_v10 = vsel %vm29_vm0, %v36_v5, %v34_v8  ;;  %v54_v11 = vld [vmem:[#allocation2 + $0x1] ss:$8 sm:$0xf]   ;;  %v26_v12 = vld [vmem:[#allocation2] ss:$8 sm:$0xf]   ;;  %v48_v15 = vsel %vm29_vm0, %v46_v6, %v44_v9 }
   0xd   :  { %39 = vrot.lane.b32.xlu0 %v38_v10, %s108_s0  ;;  %v58_v13 = vsel %vm29_vm0, %v56_v7, %v54_v11  ;;  %v30_v16 = vsel %vm29_vm0, %v28_v14, %v26_v12  ;;  %p92_p4 = pnand %p91_p3, %p85_p0 }
   0xe   :  { %59 = vrot.lane.b32.xlu1 %v58_v13, %s109_s16  ;;  %32 = vst.msk [vmem:[#allocation0] sm:$0x1f] %vm31_vm1, %v30_v16  }
  0x11   :  { %49 = vrot.lane.b32.xlu0 %v48_v15, %s110_s17 }
  0x7f   :  { %v40_v17 = vpop.permute.xlu0 %39  }
  0x80   :  { %42 = vst.msk [vmem:[#allocation0] sm:$0x1f] %vm41_vm2, %v40_v17   ;;  %v60_v18 = vpop.permute.xlu1 %59  }
  0x83   :  { %v50_v19 = vpop.permute.xlu0 %49  }
  0x84   :  { %52 = vst.msk [vmem:[#allocation0] sm:$0x1f] %vm51_vm3, %v50_v19  }
  0x85   :  { %62 = vst.msk [vmem:[#allocation0] sm:$0x1f] %vm61_vm4, %v60_v18  }
  0x86   :  { %95 = shalt.err (!%p92_p4)
}
  0x87   :  { %s96_s23 = scalar_lea.hbm %s155_s1, 128 }
  0x88   :  { %p97_p5 = scmp.ne.s32.totalorder %s155_s1, %s96_s23  ;;  %p100_p6 = scmp.lt.u32.totalorder %s96_s23, %s155_s1 }
  0x8a   :  { %p102_p7 = pnand %p100_p6, %p97_p5 }
  0x8c   :  { %105 = shalt.err (!%p102_p7)
}
  0x8d   :  { %70 = dma.vmem_to_hbm [thread:$0]  %s68_s19, 128, %s155_s1, [#allocation1]  }
  0x8e   :  { %106 = dma.done.wait [#allocation1], 128  }
  0x8f   :  { %107 = vsyncadd [#allocation1], 4294967168 }
  0x90   :  { %72 = vsyncpa [#allocation1], 1 }

// kernel: eva_forward.4
= control target key start
LH: loop header
LB: loop body
LE: loop exit
PB: predicated region body
PF: predicated region fallthrough
CT: control target
= control target key end

     0   :  { %v602_v35 = vmov 0.0   ;;  %vm603_vm0 = vmmov 0   ;;  %vm331_vm1 = vcmask 1045504   ;;  %vm327_vm2 = vcmask 621568   ;;  %s756_s1 = inlined_call_operand.vmem [shape: bf16[588,128], index: 1, kind: input, shape index: {}]   ;;  %s757_s0 = inlined_call_operand.vmem [shape: f32[8,588], index: 0, kind: input, shape index: {}]   ;;  %s758_s2 = inlined_call_operand.vmem [shape: f32[1,128], index: 2, kind: input, shape index: {}]   ;;  %s759_s3 = inlined_call_operand.vmem [shape: f32[8,128], index: 3, kind: output, shape index: {}]  }
   0x1   :  { %v565_v0 = vld [vmem:[%s756_s1 + $0x40] sm:$0xff]   ;;  %v569_v4 = vld [vmem:[%s756_s1 + $0x48] sm:$0xff]   ;;  %v573_v8 = vld [vmem:[%s756_s1 + $0x50] sm:$0xff]  }
   0x2   :  { %v566_v1 = vld [vmem:[%s756_s1] sm:$0xff]   ;;  %499 = vmatprep.subr.bf16.mxu0 %v565_v0  ;;  %v570_v5 = vld [vmem:[%s756_s1 + $0x8] sm:$0xff]   ;;  %v574_v9 = vld [vmem:[%s756_s1 + $0x10] sm:$0xff]  }
   0x3   :  { %v567_v2 = vld [vmem:[%s756_s1 + $0xc0] sm:$0xff]   ;;  %500 = vmatpush3.bf16.msra.mxu0 %v566_v1  ;;  %v571_v6 = vld [vmem:[%s756_s1 + $0xc8] sm:$0xff]   ;;  %v575_v10 = vld [vmem:[%s756_s1 + $0xd0] sm:$0xff]  }
   0x4   :  { %v568_v3 = vld [vmem:[%s756_s1 + $0x80] sm:$0xff]   ;;  %521 = vmatprep.subr.bf16.mxu1 %v567_v2  ;;  %501 = vmatprep.subr.bf16.mxu0 %v569_v4  ;;  %v572_v7 = vld [vmem:[%s756_s1 + $0x88] sm:$0xff]   ;;  %v576_v11 = vld [vmem:[%s756_s1 + $0x90] sm:$0xff]  }
   0x5   :  { %522 = vmatpush3.bf16.msra.mxu1 %v568_v3  ;;  %v577_v12 = vld [vmem:[%s756_s1 + $0x58] sm:$0xff]   ;;  %v581_v16 = vld [vmem:[%s756_s1 + $0x60] sm:$0xff]   ;;  %v585_v20 = vld [vmem:[%s756_s1 + $0x68] sm:$0xff]  }
   0x6   :  { %523 = vmatprep.subr.bf16.mxu1 %v571_v6  ;;  %v578_v13 = vld [vmem:[%s756_s1 + $0x18] sm:$0xff]   ;;  %v582_v17 = vld [vmem:[%s756_s1 + $0x20] sm:$0xff]   ;;  %v586_v21 = vld [vmem:[%s756_s1 + $0x28] sm:$0xff]  }
   0x7   :  { %502 = vmatpush3.bf16.msra.mxu0 %v570_v5  ;;  %v579_v14 = vld [vmem:[%s756_s1 + $0xd8] sm:$0xff]   ;;  %v583_v18 = vld [vmem:[%s756_s1 + $0xe0] sm:$0xff]   ;;  %v587_v22 = vld [vmem:[%s756_s1 + $0xe8] sm:$0xff]  }
   0x8   :  { %503 = vmatprep.subr.bf16.mxu0 %v573_v8  ;;  %v580_v15 = vld [vmem:[%s756_s1 + $0x98] sm:$0xff]   ;;  %v584_v19 = vld [vmem:[%s756_s1 + $0xa0] sm:$0xff]   ;;  %v588_v23 = vld [vmem:[%s756_s1 + $0xa8] sm:$0xff]  }
   0x9   :  { %524 = vmatpush3.bf16.msra.mxu1 %v572_v7  ;;  %v589_v24 = vld [vmem:[%s756_s1 + $0x70] sm:$0xff]   ;;  %v593_v28 = vld [vmem:[%s756_s1 + $0x78] sm:$0xff]   ;;  %v16_v31 = vld [vmem:[%s757_s0 + $0x8] sm:$0xff] }
   0xa   :  { %525 = vmatprep.subr.bf16.mxu1 %v575_v10  ;;  %v590_v25 = vld [vmem:[%s756_s1 + $0x30] sm:$0xff]   ;;  %v594_v29 = vld [vmem:[%s756_s1 + $0x38] sm:$0xff]   ;;  %v21_v32 = vpack.c.bf16 %v16_v31, %v16_v31  ;;  %v15_v34 = vld [vmem:[%s757_s0] sm:$0xff] }
   0xb   :  { %504 = vmatpush3.bf16.msra.mxu0 %v574_v9  ;;  %v591_v26 = vld [vmem:[%s756_s1 + $0xf0] sm:$0xff]   ;;  %v595_v30 = vld [vmem:[%s756_s1 + $0xf8] sm:$0xff]   ;;  %v20_v37 = vpack.c.bf16 %v15_v34, %v15_v34  ;;  %v597_v39 = vld [vmem:[%s756_s1 + $0x100] sm:$0xff]  }
   0xc   :  { %505 = vmatprep.subr.bf16.mxu0 %v577_v12  ;;  %v592_v27 = vld [vmem:[%s756_s1 + $0xb0] sm:$0xff]   ;;  %v596_v33 = vld [vmem:[%s756_s1 + $0xb8] sm:$0xff]   ;;  %367 = vmatprep.mubr.bf16.mxu0 %v21_v32  ;;  %v598_v42 = vld [vmem:[%s756_s1 + $0x108] sm:$0xff]  }
   0xd   :  { %526 = vmatpush3.bf16.msra.mxu1 %v576_v11  ;;  %v18_v36 = vld [vmem:[%s757_s0 + $0x18] sm:$0xff]  ;;  %v17_v40 = vld [vmem:[%s757_s0 + $0x10] sm:$0xff]  ;;  %v601_v45 = vld [vmem:[%s756_s1 + $0x120] sm:$0x3f]  }
   0xe   :  { %527 = vmatprep.subr.bf16.mxu1 %v579_v14  ;;  %v23_v38 = vpack.c.bf16 %v18_v36, %v18_v36  ;;  %v22_v41 = vpack.c.bf16 %v17_v40, %v17_v40  ;;  %v599_v43 = vld [vmem:[%s756_s1 + $0x110] sm:$0xff]   ;;  %v600_v44 = vld [vmem:[%s756_s1 + $0x118] sm:$0xff]   ;;  %v19_v46 = vld [vmem:[%s757_s0 + $0x20] sm:$0xff]  ;;  %v333_v47 = vsel %vm331_vm1, %v601_v45, 0 }
   0xf   :  { %506 = vmatpush3.bf16.msra.mxu0 %v578_v13  ;;  %v24_v48 = vpack.c.bf16 %v19_v46, %v19_v46  ;;  %v460_v50 = vld [vmem:[%s758_s2] ss:$0 sm:$0xff] }
  0x10   :  { %507 = vmatprep.subr.bf16.mxu0 %v581_v16  ;;  %407 = vmatprep.mubr.bf16.mxu1 %v23_v38 }
  0x11   :  { %528 = vmatpush3.bf16.msra.mxu1 %v580_v15 }
  0x12   :  { %529 = vmatprep.subr.bf16.mxu1 %v583_v18 }
  0x13   :  { %508 = vmatpush3.bf16.msra.mxu0 %v582_v17 }
  0x14   :  { %509 = vmatprep.subr.bf16.mxu0 %v585_v20 }
  0x15   :  { %530 = vmatpush3.bf16.msra.mxu1 %v584_v19 }
  0x16   :  { %531 = vmatprep.subr.bf16.mxu1 %v587_v22 }
  0x17   :  { %510 = vmatpush3.bf16.msra.mxu0 %v586_v21 }
  0x18   :  { %511 = vmatprep.subr.bf16.mxu0 %v589_v24 }
  0x19   :  { %532 = vmatpush3.bf16.msra.mxu1 %v588_v23 }
  0x1a   :  { %533 = vmatprep.subr.bf16.mxu1 %v591_v26 }
  0x1b   :  { %512 = vmatpush3.bf16.msra.mxu0 %v590_v25 }
  0x1c   :  { %513 = vmatprep.subr.bf16.mxu0 %v593_v28 }
  0x1d   :  { %534 = vmatpush3.bf16.msra.mxu1 %v592_v27 }
  0x1e   :  { %535 = vmatprep.subr.bf16.mxu1 %v595_v30 }
  0x1f   :  { %514 = vmatpush3.bf16.msra.mxu0 %v594_v29 }
  0x20   :  { %549 = vmatprep.subr.bf16.mxu0 %v602_v35 }
  0x21   :  { %536 = vmatpush3.bf16.msra.mxu1 %v596_v33 }
  0x22   :  { %368 = vmatmul.mubr.bf16.vlgmr.msra.gmra.mrb[0].mxu0 %v20_v37 }
  0x23   :  { %550 = vmatpush3.bf16.msra.mxu0 %v597_v39  ;;  %559 = vmatprep.mubr.msk.bf16.mxu0 %vm603_vm0, %v602_v35 }
  0x24   :  { %408 = vmatmul.mubr.bf16.vlgmr.msra.gmra.mrb[0].mxu1 %v22_v41  ;;  %551 = vmatprep.subr.bf16.mxu0 %v602_v35 }
  0x27   :  { %552 = vmatpush3.bf16.msra.mxu0 %v598_v42 }
  0x28   :  { %553 = vmatprep.subr.bf16.mxu0 %v602_v35 }
  0x2b   :  { %554 = vmatpush3.bf16.msra.mxu0 %v599_v43 }
  0x2c   :  { %555 = vmatprep.subr.bf16.mxu0 %v602_v35 }
  0x2f   :  { %556 = vmatpush3.bf16.msra.mxu0 %v600_v44 }
  0x30   :  { %557 = vmatprep.subr.bf16.mxu0 %v602_v35 }
  0x33   :  { %558 = vmatpush3.bf16.msra.mxu0 %v333_v47 }
  0x36   :  { %560 = vmatmul.mubr.msk.bf16.vlgmr.msra.gmra.mrb[4].mxu0 %vm327_vm2, %v24_v48 }
  0xf5   :  { %v515_v49 = vpop.f32.mrb[0].mxu0 }
  0xf6   :  { %v516_v51 = vpop.f32.mrb[1].mxu0 }
  0xf7   :  { %v517_v52 = vadd.f32 %v516_v51, %v515_v49  ;;  %v518_v53 = vpop.f32.mrb[2].mxu0  ;;  %v537_v54 = vpop.f32.mrb[0].mxu1 }
  0xf8   :  { %v519_v55 = vpop.f32.mrb[3].mxu0  ;;  %v538_v56 = vpop.f32.mrb[1].mxu1 }
  0xf9   :  { %v370_v57 = vadd.f32 %v517_v52, %v460_v50  ;;  %v539_v58 = vadd.f32 %v538_v56, %v537_v54  ;;  %v540_v59 = vpop.f32.mrb[2].mxu1 }
  0xfa   :  { %v541_v60 = vpop.f32.mrb[3].mxu1 }
  0xfb   :  { %v410_v61 = vadd.f32 %v539_v58, %v370_v57 }
 0x109   :  { %v449_v62 = vpop.f32.mrb[4].mxu0 }
 0x10a   :  { %v450_v63 = vadd.f32 %v449_v62, %v410_v61  ;;  %v561_v0 = vpop.f32.mrb[5].mxu0 }
 0x10b   :  { %v452_v1 = vpop.f32.mrb[6].mxu0 }
 0x10c   :  { %455 = vst [vmem:[%s759_s3] sm:$0xff] %v450_v63  ;;  %v562_v2 = vpop.f32.mrb[7].mxu0 }

// kernel: eva_forward.7
= control target key start
LH: loop header
LB: loop body
LE: loop exit
PB: predicated region body
PF: predicated region fallthrough
CT: control target
= control target key end

     0   :  { %10 = vsyncpa [#allocation3], 0  ;;  %s752_s0 = inlined_call_operand.vmem [shape: f32[2,5,128], index: 0, kind: input, shape index: {}]   ;;  %s753_s1 = inlined_call_operand.vmem [shape: f32[1,128], index: 1, kind: input, shape index: {}]   ;;  %s754_s2 = inlined_call_operand.vmem [shape: f32[1,128], index: 2, kind: input, shape index: {}]   ;;  %s755_s3 = inlined_call_operand.vmem [shape: bf16[128,34], index: 3, kind: input, shape index: {}]   ;;  %s756_s4 = inlined_call_operand.vmem [shape: f32[1,34], index: 4, kind: input, shape index: {}]   ;;  %s757_s5 = inlined_call_operand.hbm [shape: f32[2,1,34], index: 5, kind: output, shape index: {}]  }
   0x1   :  { %12 = vsyncpa [#allocation3 + $0x1], 0  ;;  %s619_s18 = smov 0   ;;  %s621_s19 = smov 0  }
   0x2   :  { %s623_s20 = smov 0   ;;  %s625_s21 = smov 0  }
   0x3 LB: > { %s640_s22 = sadd.s32 4294967295, %s584_s21   ;;  %s426_s23 = sadd.s32 4294967294, %s584_s21   ;;  %s584_s21 = sphi %s625_s21, %s763_s21   ;;  %s580_s20 = sphi %s623_s20, %s762_s20   ;;  %s576_s19 = sphi %s621_s19, %s761_s19   ;;  %s572_s18 = sphi %s619_s18, %s760_s18  }
   0x4   : > { %s644_s24 = sadd.s32 1, %s584_s21   ;;  %s135_s25 = sadd.s32 1, %s580_s20 }
   0x5   : > { %s132_s26 = ssub.s32 %s584_s21, %s644_s24  ;;  %p145_p0 = scmp.ne.s32.totalorder %s580_s20, %s576_s19 }
   0x6   : > { %p133_p1 = scmp.eq.s32.totalorder %s132_s26, 0  ;;  %p146_p2 = scmp.eq.s32.totalorder %s640_s22, 1 }
   0x7   : > { %p151_p3 = scmp.ne.s32.totalorder %s576_s19, %s572_s18  ;;  %p152_p4 = scmp.eq.s32.totalorder %s426_s23, 1 }
   0x8   : > { %s655_s27 = scalar_select %p133_p1, %s580_s20, %s135_s25  }
   0x9   : > { %p657_p5 = por %p146_p2, %p145_p0  ;;  %p661_p6 = por %p152_p4, %p151_p3 }
   0xa   : > { %p429_p7 = scmp.ge.s32.totalorder %s584_s21, 1  ;;  %p189_p8 = scmp.lt.s32.totalorder %s584_s21, 3 }
   0xc   : > { %p190_p9 = pnand %p429_p7, %p189_p8 }
   0xd   : > { %p215_p10 = scmp.lt.s32.totalorder (!%p190_p9), %s640_s22, 1  ;;  %vm224_vm0 = vcmask (!%p190_p9), 1043456   ;;  %v512_v10 = vld [vmem:[%s755_s3] sm:$0xff] (!%p190_p9)   ;;  %v586_v11 = vmov (!%p190_p9), 0.0   ;;  %v513_v12 = vld [vmem:[%s755_s3 + $0x8] sm:$0xff] (!%p190_p9)   ;;  %v514_v17 = vld [vmem:[%s755_s3 + $0x10] sm:$0xff] (!%p190_p9)  }
   0xe   : > { %193 = sbr.rel (%p190_p9) target bundleno = 584 (0x248), region = 40  ;;  %451 = vmatprep.subr.bf16.mxu0 (!%p190_p9), %v586_v11  ;;  %v515_v18 = vld [vmem:[%s755_s3 + $0x18] sm:$0xff] (!%p190_p9)   ;;  %v516_v19 = vld [vmem:[%s755_s3 + $0x20] sm:$0xff] (!%p190_p9)   ;;  %vm587_vm1 = vmmov (!%p190_p9), 0   ;;  %v517_v20 = vld [vmem:[%s755_s3 + $0x28] sm:$0xff] (!%p190_p9)   ;;  %s213_s14 = sand.u32 (!%p190_p9), 1, %s576_s19  }
   0xf   : > { %452 = vmatpush3.bf16.msra.mxu0 (!%p190_p9), %v512_v10  ;;  %467 = vmatprep.mubr.msk.bf16.mxu0 (!%p190_p9), %vm587_vm1, %v586_v11  ;;  %v518_v21 = vld [vmem:[%s755_s3 + $0x30] sm:$0xff] (!%p190_p9)   ;;  %v519_v22 = vld [vmem:[%s755_s3 + $0x38] sm:$0xff] (!%p190_p9)   ;;  %v246_v27 = vld [vmem:[%s753_s1] sm:$0x1] (!%p190_p9)  ;;  %s439_s17 = sshll.u32 (!%p190_p9), %s640_s22, 4  ;;  %s214_s23 = scalar_lea.vmem (!%p190_p9), [#allocation2], %s213_s14 }
  0x10   : > { %453 = vmatprep.subr.bf16.mxu0 (!%p190_p9), %v586_v11  ;;  %v248_v29 = vld [vmem:[%s754_s2] sm:$0x1] (!%p190_p9)  ;;  %s371_s25 = sshll.u32 (!%p190_p9), %s214_s23, 4  ;;  %vm356_vm2 = vcmask (!%p190_p9), 270336   ;;  %s588_s8 = smov (!%p190_p9), [#allocation2]   ;;  %s712_s25 = int_to_ptr.vmem [resolvable:$true] %s371_s25 }
  0x11   : > { %v267_v33 = vld [vmem:[%s756_s4] sm:$0x1] (!%p190_p9)  ;;  %s522_s7 = scalar_lea.vmem (!%p190_p9), %s712_s25, 16 }
  0x12   : > { %p523_p11 = scmp.ne.s32.totalorder (!%p190_p9), %s712_s25, %s522_s7 }
  0x13   : > { %454 = vmatpush3.bf16.msra.mxu0 (!%p190_p9), %v513_v12 }
  0x14   : > { %455 = vmatprep.subr.bf16.mxu0 (!%p190_p9), %v586_v11  ;;  %p524_p12 = pnand (!%p190_p9), %p523_p11, %p657_p5 }
  0x15   : > { %s216_s30 = scalar_select %p215_p10, %s640_s22, 1 }
  0x16   : > { %s359_s22 = scalar_lea.sflag [#allocation3], %s213_s14  ;;  %p525_p13 = pneg %p524_p12 }
  0x17   : > { %s430_s6 = sshll.u32 %s216_s30, 3  ;;  %456 = vmatpush3.bf16.msra.mxu0 %v514_v17 }
  0x18   : > { %s218_s9 = scalar_lea.vmem %s752_s0, %s430_s6  ;;  %457 = vmatprep.subr.bf16.mxu0 %v586_v11  ;;  %s710_s6 = scalar_lea.hbm %s757_s5, %s439_s17 }
  0x19   : > { %v220_v0 = vld [vmem:[%s218_s9] sm:$0x1f]  ;;  %s526_s9 = sshll.u32 %s588_s8, 4  ;;  %s527_s9 = int_to_ptr.vmem [resolvable:$false] %s526_s9 }
  0x1a   : > { %v222_v1 = vrot.slane %v220_v0, 1  ;;  %s528_s10 = scalar_lea.vmem %s527_s9, 32  ;;  %p529_p0 = scmp.lt.s32.totalorder %s712_s25, %s527_s9 }
  0x1b   : > { %458 = vmatpush3.bf16.msra.mxu0 %v515_v18  ;;  %p530_p1 = scmp.lt.s32.totalorder %s528_s10, %s522_s7 }
  0x1c   : > { %v225_v2 = vsel %vm224_vm0, %v222_v1, 0.0  ;;  %459 = vmatprep.subr.bf16.mxu0 %v586_v11 }
  0x1d   : > { %v226_v3 = vrot.slane %v225_v2, 4  ;;  %p531_p2 = por %p530_p1, %p529_p0 }
  0x1f   : > { %v227_v4 = vadd.f32 %v226_v3, %v225_v2  ;;  %460 = vmatpush3.bf16.msra.mxu0 %v516_v19  ;;  %p532_p3 = pnand %p531_p2, %p525_p13 }
  0x20   : > { %461 = vmatprep.subr.bf16.mxu0 %v586_v11 }
  0x21   : > { %v228_v5 = vrot.slane %v227_v4, 2 }
  0x23   : > { %v229_v6 = vadd.f32 %v228_v5, %v227_v4  ;;  %462 = vmatpush3.bf16.msra.mxu0 %v517_v20 }
  0x24   : > { %463 = vmatprep.subr.bf16.mxu0 %v586_v11 }
  0x25   : > { %v230_v7 = vrot.slane %v229_v6, 1 }
  0x27   : > { %v231_v8 = vadd.f32 %v230_v7, %v229_v6  ;;  %464 = vmatpush3.bf16.msra.mxu0 %v518_v21 }
  0x28   : > { %465 = vmatprep.subr.bf16.mxu0 %v586_v11 }
  0x29   : > { %v233_v9 = vmul.f32 0.25, %v231_v8 }
  0x2b   : > { %234 = vadd.xlane.f32.xlu0 %v233_v9  ;;  %466 = vmatpush3.bf16.msra.mxu0 %v519_v22 }
  0xb8   : > { %v235_v13 = vpop.xlane.xlu0 %234 }
  0xb9   : > { %v237_v14 = vmul.f32 0.0078125, %v235_v13 }
  0xbb   : > { %v238_v15 = vsub.f32 %v233_v9, %v237_v14 }
  0xbd   : > { %v239_v16 = vmul.f32 %v238_v15, %v238_v15 }
  0xbf   : > { %240 = vadd.xlane.f32.xlu0 %v239_v16 }
 0x14c   : > { %v241_v23 = vpop.xlane.xlu0 %240 }
 0x14d   : > { %v242_v24 = vmul.f32 0.0078125, %v241_v23 }
 0x14f   : > { %v243_v25 = vadd.f32 1e-06, %v242_v24 }
 0x151   : > { %520 = vrsqrt.f32 %v243_v25 }
 0x15b   : > { %v521_v26 = vpop.eup %520 }
 0x15c   : > { %v245_v28 = vmul.f32 %v521_v26, %v238_v15 }
 0x15e   : > { %v247_v30 = vmul.f32 %v246_v27, %v245_v28 }
 0x160   : > { %v249_v31 = vadd.f32 %v248_v29, %v247_v30 }
 0x162   : > { %v250_v32 = vpack.c.bf16 %v249_v31, %v249_v31 }
 0x164   : > { %468 = vmatmul.mubr.bf16.vlgmr.msra.gmra.mrb[0].mxu0 %v250_v32 }
 0x237   : > { %v350_v34 = vpop.f32.mrb[0].mxu0 }
 0x238   : > { %v351_v35 = vadd.f32 %v350_v34, %v267_v33  ;;  %v469_v36 = vpop.f32.mrb[1].mxu0 }
 0x239   : > { %v353_v37 = vpop.f32.mrb[2].mxu0 }
 0x23a   : > { %v470_v38 = vpop.f32.mrb[3].mxu0  ;;  %357 = vst.msk [vmem:[%s214_s23] sm:$0x1] %vm356_vm2, %v351_v35 }
 0x23b   : > { %535 = shalt.err (!%p532_p3)
}
 0x23c   : > { %s536_s11 = scalar_lea.hbm %s710_s6, 16  ;;  %s540_s14 = scalar_lea.hbm %s757_s5, 32 }
 0x23d   : > { %p537_p4 = scmp.ne.s32.totalorder %s710_s6, %s536_s11  ;;  %p541_p9 = scmp.lt.u32.totalorder %s710_s6, %s757_s5 }
 0x23e   : > { %p542_p10 = scmp.lt.u32.totalorder %s540_s14, %s536_s11  ;;  %p544_p12 = scmp.lt.u32.totalorder %s536_s11, %s710_s6 }
 0x23f   : > { %p538_p7 = pnand %p537_p4, %p657_p5 }
 0x240   : > { %p543_p11 = por %p542_p10, %p541_p9 }
 0x241   : > { %p539_p8 = pneg %p538_p7 }
 0x242   : > { %p545_p13 = por %p544_p12, %p543_p11 }
 0x244   : > { %p546_p0 = pnand %p545_p13, %p539_p8 }
 0x246   : > { %549 = shalt.err (!%p546_p0)
}
 0x247   : > { %471 = dma.vmem_to_hbm [thread:$0]  (%p657_p5), %s712_s25, 16, %s710_s6, %s359_s22  }
 0x248 PF: > { %p477_p1 = scmp.ge.s32.totalorder %s584_s21, 2  ;;  %s383_s17 = sand.u32 1, %s572_s18  }
 0x249   : > { %s384_s23 = scalar_lea.sflag [#allocation3], %s383_s17 }
 0x24a   : > { %p474_p2 = pnand %p477_p1, %p661_p6 }
 0x24c   : > { %567 = dma.done.wait (!%p474_p2), %s384_s23, 16  }
 0x24d   : > { %569 = vsyncadd (!%p474_p2), %s384_s23, 4294967280  ;;  %p15_p3 = scmp.ge.s32.totalorder %s644_s24, 4   ;;  %s760_s18 = smov %s576_s19 }
 0x24e   : > { %s761_s19 = smov %s580_s20  ;;  %s762_s20 = smov %s655_s27 }
 0x24f   : > { %s763_s21 = smov %s644_s24  ;;  %17 = sbr.rel (!%p15_p3) target bundleno = 3 (0x3), region = 75 }
 0x256   :  { %388 = vsyncpa [#allocation3], 1 }
 0x257   :  { %390 = vsyncpa [#allocation3 + $0x1], 1 }

// kernel: eva_forward.5
= control target key start
LH: loop header
LB: loop body
LE: loop exit
PB: predicated region body
PF: predicated region fallthrough
CT: control target
= control target key end

     0   :  { %s6065_s0 = inlined_call_operand.hbm [shape: f32[2,5,128], index: 0, kind: input, shape index: {}, may-alias: {0,23}]   ;;  %s6066_s1 = inlined_call_operand.hbm [shape: f32[5,128], index: 1, kind: input, shape index: {}]   ;;  %s6067_s2 = inlined_call_operand.hbm [shape: f32[5,128], index: 2, kind: input, shape index: {}]   ;;  %s6068_s3 = inlined_call_operand.hbm [shape: f32[5,128], index: 3, kind: input, shape index: {}]   ;;  %s6069_s4 = inlined_call_operand.hbm [shape: f32[1,128], index: 4, kind: input, shape index: {}]   ;;  %s6070_s5 = inlined_call_operand.hbm [shape: f32[1,128], index: 5, kind: input, shape index: {}]   ;;  %s6071_s6 = inlined_call_operand.hbm [shape: bf16[128,128], index: 6, kind: input, shape index: {}]   ;;  %s6072_s7 = inlined_call_operand.hbm [shape: f32[1,128], index: 7, kind: input, shape index: {}]   ;;  %s6073_s8 = inlined_call_operand.hbm [shape: bf16[128,128], index: 8, kind: input, shape index: {}]   ;;  %s6074_s9 = inlined_call_operand.hbm [shape: bf16[128,128], index: 9, kind: input, shape index: {}]   ;;  %s6075_s10 = inlined_call_operand.hbm [shape: f32[1,128], index: 10, kind: input, shape index: {}]   ;;  %s6076_s11 = inlined_call_operand.hbm [shape: bf16[128,128], index: 11, kind: input, shape index: {}]   ;;  %s6077_s12 = inlined_call_operand.hbm [shape: f32[1,128], index: 12, kind: input, shape index: {}]   ;;  %s6078_s13 = inlined_call_operand.hbm [shape: f32[1,128], index: 13, kind: input, shape index: {}]   ;;  %s6079_s14 = inlined_call_operand.hbm [shape: f32[1,128], index: 14, kind: input, shape index: {}]   ;;  %s6080_s15 = inlined_call_operand.hbm [shape: bf16[128,341], index: 15, kind: input, shape index: {}]   ;;  %s6081_s16 = inlined_call_operand.hbm [shape: f32[1,341], index: 16, kind: input, shape index: {}]   ;;  %s6082_s17 = inlined_call_operand.hbm [shape: bf16[128,341], index: 17, kind: input, shape index: {}]   ;;  %s6083_s18 = inlined_call_operand.hbm [shape: f32[1,341], index: 18, kind: input, shape index: {}]   ;;  %s6084_s19 = inlined_call_operand.hbm [shape: f32[1,341], index: 19, kind: input, shape index: {}]   ;;  %s6085_s20 = inlined_call_operand.hbm [shape: f32[1,341], index: 20, kind: input, shape index: {}]   ;;  %s6086_s21 = inlined_call_operand.hbm [shape: bf16[341,128], index: 21, kind: input, shape index: {}]   ;;  %s6087_s22 = inlined_call_operand.hbm [shape: f32[1,128], index: 22, kind: input, shape index: {}]   ;;  %s6088_s23 = inlined_call_operand.hbm [shape: f32[2,5,128], index: 23, kind: output, shape index: {}, may-alias: {0,23}]  }
   0x1   :  { %6120 = sst [smem:[#allocation58_spill]] %s6065_s0 }
   0x2   :  { %6121 = sst [smem:[#allocation59_spill]] %s6066_s1 }
   0x3   :  { %6122 = sst [smem:[#allocation60_spill]] %s6067_s2 }
   0x4   :  { %6123 = sst [smem:[#allocation61_spill]] %s6068_s3 }
   0x5   :  { %6124 = sst [smem:[#allocation62_spill]] %s6069_s4 }
   0x6   :  { %6125 = sst [smem:[#allocation63_spill]] %s6070_s5 }
   0x7   :  { %6126 = sst [smem:[#allocation64_spill]] %s6071_s6 }
   0x8   :  { %6127 = sst [smem:[#allocation65_spill]] %s6072_s7 }
   0x9   :  { %6128 = sst [smem:[#allocation66_spill]] %s6073_s8 }
   0xa   :  { %6129 = sst [smem:[#allocation67_spill]] %s6074_s9 }
   0xb   :  { %6130 = sst [smem:[#allocation68_spill]] %s6076_s11 }
   0xc   :  { %6131 = sst [smem:[#allocation69_spill]] %s6087_s22 }
   0xd   :  { %6132 = sst [smem:[#allocation70_spill]] %s6088_s23 }
   0xe   :  { %28 = vsyncpa [#allocation3], 0 }
   0xf   :  { %30 = vsyncpa [#allocation3 + $0x1], 0 }
  0x10   :  { %31 = vsyncpa [#allocation6], 0 }
  0x11   :  { %32 = vsyncpa [#allocation9], 0 }
  0x12   :  { %33 = vsyncpa [#allocation12], 0 }
  0x13   :  { %34 = vsyncpa [#allocation15], 0 }
  0x14   :  { %35 = vsyncpa [#allocation18], 0 }
  0x15   :  { %36 = vsyncpa [#allocation21], 0 }
  0x16   :  { %37 = vsyncpa [#allocation24], 0 }
  0x17   :  { %38 = vsyncpa [#allocation27], 0 }
  0x18   :  { %39 = vsyncpa [#allocation30], 0 }
  0x19   :  { %40 = vsyncpa [#allocation33], 0 }
  0x1a   :  { %41 = vsyncpa [#allocation36], 0 }
  0x1b   :  { %42 = vsyncpa [#allocation4], 0 }
  0x1c   :  { %44 = vsyncpa [#allocation4 + $0x1], 0  ;;  %s5140_s4 = smov 0   ;;  %s5142_s30 = smov 0  }
  0x1d   :  { %s5144_s24 = smov 0   ;;  %s5146_s25 = smov 0  }
  0x1e LB: > { %6133 = sst [smem:[#allocation52_spill]] %s4969_s4  ;;  %s4983_s5 = smov [#allocation5]   ;;  %s4981_s25 = sphi %s5146_s25, %s5691_s25   ;;  %s4977_s24 = sphi %s5144_s24, %s6203_s24   ;;  %s4973_s30 = sphi %s5142_s30, %s6202_s30   ;;  %s4969_s4 = sphi %s5140_s4, %s6201_s4  }
  0x1f   : > { %6134 = sst [smem:[#allocation53_spill]] %s4973_s30  ;;  %s582_s1 = sshll.u32 %s4983_s5, 4  ;;  %s5166_s1 = int_to_ptr.vmem [resolvable:$true] %s582_s1 }
  0x20   : > { %6135 = sst [smem:[#allocation54_spill]] %s4977_s24  ;;  %s5161_s26 = sadd.s32 4294967295, %s4981_s25  }
  0x21   : > { %6136 = sst [smem:[#allocation55_spill]] %s4981_s25  ;;  %p3301_p0 = scmp.ge.s32.totalorder %s4981_s25, 1 }
  0x22   : > { %6137 = sst [smem:[#allocation56_spill]] %s5161_s26  ;;  %p6108_p1 = scmp.eq.s32.totalorder %s5161_s26, 0 }
  0x23   : > { %p569_p2 = scmp.lt.s32.totalorder %s4981_s25, 3  ;;  %s4984_s6 = smov [#allocation8]  }
  0x24   : > { %s604_s27 = sshll.u32 %s4984_s6, 4  ;;  %s4985_s7 = smov [#allocation11]   ;;  %s5175_s27 = int_to_ptr.vmem [resolvable:$true] %s604_s27 }
  0x25   : > { %p5168_p3 = pnand %p3301_p0, %p569_p2  ;;  %s626_s28 = sshll.u32 %s4985_s7, 4  ;;  %s5183_s28 = int_to_ptr.vmem [resolvable:$true] %s626_s28 }
  0x26   : > { %s4986_s3 = smov [#allocation14]  }
  0x27   : > { %s6138_s2 = scalar_select %p5168_p3, 1, 0 }
  0x28   : > { %p3885_p5 = pneg %p5168_p3  ;;  %s5185_s0 = sshll.u32 %s4986_s3, 4  ;;  %s651_s0 = int_to_ptr.vmem [resolvable:$true] %s5185_s0 }
  0x29   : > { %6139 = sst [smem:[#allocation57_spill]] %s6138_s2  ;;  %s6141_s2 = sld [smem:[#allocation59_spill]] }
  0x2a   : > { %p5179_p6 = pnand %p3885_p5, %p6108_p1 }
  0x2c   : > { %p5195_p8 = pneg %p5179_p6 }
  0x2f   : > { %s4225_s4 = scalar_lea.hbm %s6141_s2, 128 }
  0x30   : > { %p4226_p7 = scmp.ne.s32.totalorder %s6141_s2, %s4225_s4  ;;  %p4232_p11 = scmp.lt.u32.totalorder %s4225_s4, %s6141_s2 }
  0x32   : > { %p4228_p9 = pnand %p5195_p8, %p4226_p7 }
  0x34   : > { %p4229_p10 = pneg %p4228_p9 }
  0x36   : > { %p4234_p12 = pnand %p4232_p11, %p4229_p10 }
  0x38   : > { %4237 = shalt.err (!%p4234_p12)
}
  0x39   : > { %s4238_s23 = scalar_lea.vmem %s5166_s1, 128  ;;  %p4246_p5 = scmp.lt.s32.totalorder %s5166_s1, %s5166_s1 }
  0x3a   : > { %p4239_p13 = scmp.ne.s32.totalorder %s5166_s1, %s4238_s23  ;;  %p4247_p4 = scmp.lt.s32.totalorder %s4238_s23, %s4238_s23 }
  0x3c   : > { %p4241_p0 = pnand %p4239_p13, %p5195_p8  ;;  %p4248_p7 = por %p4247_p4, %p4246_p5 }
  0x3e   : > { %p4242_p2 = pneg %p4241_p0 }
  0x40   : > { %p4249_p9 = pnand %p4248_p7, %p4242_p2 }
  0x42   : > { %4252 = shalt.err (!%p4249_p9)
}
  0x43   : > { %3888 = dma.hbm_to_vmem [thread:$0]  (!%p5179_p6), %s6141_s2, 128, %s5166_s1, [#allocation6]  }
  0x44   : > { %s6143_s6 = sld [smem:[#allocation61_spill]] }
  0x4a   : > { %s4253_s3 = scalar_lea.hbm %s6143_s6, 128 }
  0x4b   : > { %p4254_p10 = scmp.ne.s32.totalorder %s6143_s6, %s4253_s3  ;;  %p4260_p12 = scmp.lt.u32.totalorder %s4253_s3, %s6143_s6 }
  0x4d   : > { %p4256_p4 = pnand %p4254_p10, %p5195_p8 }
  0x4f   : > { %p4257_p11 = pneg %p4256_p4 }
  0x51   : > { %p4262_p13 = pnand %p4260_p12, %p4257_p11 }
  0x53   : > { %4265 = shalt.err (!%p4262_p13)
}
  0x54   : > { %s4266_s1 = scalar_lea.vmem %s5175_s27, 128  ;;  %p4274_p7 = scmp.lt.s32.totalorder %s5175_s27, %s5175_s27 }
  0x55   : > { %p4267_p0 = scmp.ne.s32.totalorder %s5175_s27, %s4266_s1  ;;  %p4275_p9 = scmp.lt.s32.totalorder %s4266_s1, %s4266_s1 }
  0x57   : > { %p4269_p2 = pnand %p4267_p0, %p5195_p8  ;;  %p4276_p10 = por %p4275_p9, %p4274_p7 }
  0x59   : > { %p4270_p5 = pneg %p4269_p2 }
  0x5b   : > { %p4277_p4 = pnand %p4276_p10, %p4270_p5 }
  0x5d   : > { %4280 = shalt.err (!%p4277_p4)
}
  0x5e   : > { %3894 = dma.hbm_to_vmem [thread:$0]  (!%p5179_p6), %s6143_s6, 128, %s5175_s27, [#allocation9]  }
  0x5f   : > { %s6144_s30 = sld [smem:[#allocation63_spill]] }
  0x65   : > { %s6145_s26 = smov %s6144_s30  ;;  %s4281_s5 = scalar_lea.hbm %s6144_s30, 16 }
  0x66   : > { %p4282_p11 = scmp.ne.s32.totalorder %s6145_s26, %s4281_s5  ;;  %p4288_p0 = scmp.lt.u32.totalorder %s4281_s5, %s6145_s26 }
  0x68   : > { %p4284_p12 = pnand %p4282_p11, %p5195_p8 }
  0x6a   : > { %p4285_p13 = pneg %p4284_p12 }
  0x6c   : > { %p4290_p2 = pnand %p4288_p0, %p4285_p13 }
  0x6e   : > { %4293 = shalt.err (!%p4290_p2)
}
  0x6f   : > { %s4294_s27 = scalar_lea.vmem %s5183_s28, 16  ;;  %s4301_s22 = scalar_lea.vmem %s5183_s28, 32 }
  0x70   : > { %p4295_p5 = scmp.ne.s32.totalorder %s5183_s28, %s4294_s27  ;;  %p4302_p10 = scmp.lt.s32.totalorder %s5183_s28, %s5183_s28 }
  0x71   : > { %p4303_p4 = scmp.lt.s32.totalorder %s4301_s22, %s4294_s27 }
  0x72   : > { %p4297_p7 = pnand %p4295_p5, %p5195_p8 }
  0x73   : > { %p4304_p11 = por %p4303_p4, %p4302_p10 }
  0x74   : > { %p4298_p9 = pneg %p4297_p7 }
  0x76   : > { %p4305_p12 = pnand %p4304_p11, %p4298_p9 }
  0x78   : > { %4308 = shalt.err (!%p4305_p12)
}
  0x79   : > { %3900 = dma.hbm_to_vmem [thread:$0]  (!%p5179_p6), %s6145_s26, 16, %s5183_s28, [#allocation12]  }
  0x7a   : > { %s6146_s30 = sld [smem:[#allocation65_spill]] }
  0x80   : > { %s6147_s5 = smov %s6146_s30  ;;  %s4309_s3 = scalar_lea.hbm %s6146_s30, 16 }
  0x81   : > { %p4310_p13 = scmp.ne.s32.totalorder %s6147_s5, %s4309_s3  ;;  %p4316_p5 = scmp.lt.u32.totalorder %s4309_s3, %s6147_s5 }
  0x83   : > { %p4312_p0 = pnand %p4310_p13, %p5195_p8 }
  0x85   : > { %p4313_p2 = pneg %p4312_p0 }
  0x87   : > { %p4318_p7 = pnand %p4316_p5, %p4313_p2 }
  0x89   : > { %4321 = shalt.err (!%p4318_p7)
}
  0x8a   : > { %s4322_s2 = scalar_lea.vmem %s651_s0, 16  ;;  %s4329_s28 = scalar_lea.vmem %s651_s0, 32 }
  0x8b   : > { %p4323_p9 = scmp.ne.s32.totalorder %s651_s0, %s4322_s2  ;;  %p4330_p11 = scmp.lt.s32.totalorder %s651_s0, %s651_s0 }
  0x8c   : > { %p4331_p12 = scmp.lt.s32.totalorder %s4329_s28, %s4322_s2 }
  0x8d   : > { %p4325_p10 = pnand %p4323_p9, %p5195_p8 }
  0x8e   : > { %p4332_p1 = por %p4331_p12, %p4330_p11 }
  0x8f   : > { %p4326_p4 = pneg %p4325_p10 }
  0x91   : > { %p4333_p3 = pnand %p4332_p1, %p4326_p4 }
  0x93   : > { %4336 = shalt.err (!%p4333_p3)
}
  0x94   : > { %3906 = dma.hbm_to_vmem [thread:$0]  (!%p5179_p6), %s6147_s5, 16, %s651_s0, [#allocation15]  }
  0x95   : > { %s4987_s4 = smov [#allocation17]   ;;  %s4988_s3 = smov [#allocation20]  }
  0x96   : > { %s673_s30 = sshll.u32 %s4987_s4, 4  ;;  %s697_s23 = sshll.u32 %s4988_s3, 4  ;;  %s674_s30 = int_to_ptr.vmem [resolvable:$true] %s673_s30  ;;  %s5282_s23 = int_to_ptr.vmem [resolvable:$true] %s697_s23 }
  0x97   : > { %s6148_s9 = sld [smem:[#allocation67_spill]] }
  0x9d   : > { %s4337_s22 = scalar_lea.hbm %s6148_s9, 1024 }
  0x9e   : > { %p4338_p1 = scmp.ne.s32.totalorder %s6148_s9, %s4337_s22  ;;  %p4344_p0 = scmp.lt.u32.totalorder %s4337_s22, %s6148_s9 }
  0xa0   : > { %p4340_p3 = pnand %p4338_p1, %p5195_p8 }
  0xa2   : > { %p4341_p13 = pneg %p4340_p3 }
  0xa4   : > { %p4346_p2 = pnand %p4344_p0, %p4341_p13 }
  0xa6   : > { %4349 = shalt.err (!%p4346_p2)
}
  0xa7   : > { %s4350_s25 = scalar_lea.vmem %s674_s30, 1024  ;;  %p4358_p10 = scmp.lt.s32.totalorder %s674_s30, %s674_s30 }
  0xa8   : > { %p4351_p5 = scmp.ne.s32.totalorder %s674_s30, %s4350_s25  ;;  %p4359_p4 = scmp.lt.s32.totalorder %s4350_s25, %s4350_s25 }
  0xaa   : > { %p4353_p7 = pnand %p4351_p5, %p5195_p8  ;;  %p4360_p11 = por %p4359_p4, %p4358_p10 }
  0xac   : > { %p4354_p9 = pneg %p4353_p7 }
  0xae   : > { %p4361_p12 = pnand %p4360_p11, %p4354_p9 }
  0xb0   : > { %4364 = shalt.err (!%p4361_p12)
}
  0xb1   : > { %s6112_s4 = smov 64   ;;  %s6114_s3 = smov 4  }
  0xb2   : > { %3912 = dma.hbm_to_vmem [thread:$0]  (!%p5179_p6), %s6148_s9, 1024, %s674_s30, [#allocation18], %s6112_s4, %s6112_s4, %s6114_s3  }
  0xb3   : > { %s6149_s11 = sld [smem:[#allocation68_spill]] }
  0xb9   : > { %s4365_s28 = scalar_lea.hbm %s6149_s11, 1024 }
  0xba   : > { %p4366_p1 = scmp.ne.s32.totalorder %s6149_s11, %s4365_s28  ;;  %p4372_p0 = scmp.lt.u32.totalorder %s4365_s28, %s6149_s11 }
  0xbc   : > { %p4368_p3 = pnand %p4366_p1, %p5195_p8 }
  0xbe   : > { %p4369_p13 = pneg %p4368_p3 }
  0xc0   : > { %p4374_p2 = pnand %p4372_p0, %p4369_p13 }
  0xc2   : > { %4377 = shalt.err (!%p4374_p2)
}
  0xc3   : > { %s4378_s30 = scalar_lea.vmem %s5282_s23, 1024  ;;  %p4386_p10 = scmp.lt.s32.totalorder %s5282_s23, %s5282_s23 }
  0xc4   : > { %p4379_p5 = scmp.ne.s32.totalorder %s5282_s23, %s4378_s30  ;;  %p4387_p4 = scmp.lt.s32.totalorder %s4378_s30, %s4378_s30 }
  0xc6   : > { %p4381_p7 = pnand %p4379_p5, %p5195_p8  ;;  %p4388_p11 = por %p4387_p4, %p4386_p10 }
  0xc8   : > { %p4382_p9 = pneg %p4381_p7 }
  0xca   : > { %p4389_p12 = pnand %p4388_p11, %p4382_p9 }
  0xcc   : > { %4392 = shalt.err (!%p4389_p12)
}
  0xcd   : > { %3918 = dma.hbm_to_vmem [thread:$0]  (!%p5179_p6), %s6149_s11, 1024, %s5282_s23, [#allocation21], %s6112_s4, %s6112_s4, %s6114_s3  }
  0xce   : > { %s4991_s27 = smov [#allocation23]   ;;  %s4992_s2 = smov [#allocation26]  }
  0xcf   : > { %s722_s22 = sshll.u32 %s4991_s27, 4  ;;  %s743_s28 = sshll.u32 %s4992_s2, 4  ;;  %s723_s22 = int_to_ptr.vmem [resolvable:$true] %s722_s22  ;;  %s5331_s28 = int_to_ptr.vmem [resolvable:$true] %s743_s28 }
  0xd0   : > { %s4393_s25 = scalar_lea.hbm %s6078_s13, 16 }
  0xd1   : > { %p4394_p1 = scmp.ne.s32.totalorder %s6078_s13, %s4393_s25  ;;  %p4400_p0 = scmp.lt.u32.totalorder %s4393_s25, %s6078_s13 }
  0xd3   : > { %p4396_p3 = pnand %p4394_p1, %p5195_p8 }
  0xd5   : > { %p4397_p13 = pneg %p4396_p3 }
  0xd7   : > { %p4402_p2 = pnand %p4400_p0, %p4397_p13 }
  0xd9   : > { %4405 = shalt.err (!%p4402_p2)
}
  0xda   : > { %s4406_s1 = scalar_lea.vmem %s723_s22, 16  ;;  %s4413_s27 = scalar_lea.vmem %s723_s22, 32 }
  0xdb   : > { %p4407_p5 = scmp.ne.s32.totalorder %s723_s22, %s4406_s1  ;;  %p4414_p10 = scmp.lt.s32.totalorder %s723_s22, %s723_s22 }
  0xdc   : > { %p4415_p4 = scmp.lt.s32.totalorder %s4413_s27, %s4406_s1 }
  0xdd   : > { %p4409_p7 = pnand %p4407_p5, %p5195_p8 }
  0xde   : > { %p4416_p11 = por %p4415_p4, %p4414_p10 }
  0xdf   : > { %p4410_p9 = pneg %p4409_p7 }
  0xe1   : > { %p4417_p12 = pnand %p4416_p11, %p4410_p9 }
  0xe3   : > { %4420 = shalt.err (!%p4417_p12)
}
  0xe4   : > { %3924 = dma.hbm_to_vmem [thread:$0]  (!%p5179_p6), %s6078_s13, 16, %s723_s22, [#allocation24]  }
  0xe5   : > { %s4421_s25 = scalar_lea.hbm %s6080_s15, 3072 }
  0xe6   : > { %p4422_p1 = scmp.ne.s32.totalorder %s6080_s15, %s4421_s25  ;;  %p4428_p0 = scmp.lt.u32.totalorder %s4421_s25, %s6080_s15 }
  0xe8   : > { %p4424_p3 = pnand %p4422_p1, %p5195_p8 }
  0xea   : > { %p4425_p13 = pneg %p4424_p3 }
  0xec   : > { %p4430_p2 = pnand %p4428_p0, %p4425_p13 }
  0xee   : > { %4433 = shalt.err (!%p4430_p2)
}
  0xef   : > { %s4434_s22 = scalar_lea.vmem %s5331_s28, 3072  ;;  %p4442_p10 = scmp.lt.s32.totalorder %s5331_s28, %s5331_s28 }
  0xf0   : > { %p4435_p5 = scmp.ne.s32.totalorder %s5331_s28, %s4434_s22  ;;  %p4443_p4 = scmp.lt.s32.totalorder %s4434_s22, %s4434_s22 }
  0xf2   : > { %p4437_p7 = pnand %p4435_p5, %p5195_p8  ;;  %p4444_p11 = por %p4443_p4, %p4442_p10 }
  0xf4   : > { %p4438_p9 = pneg %p4437_p7 }
  0xf6   : > { %p4445_p12 = pnand %p4444_p11, %p4438_p9 }
  0xf8   : > { %4448 = shalt.err (!%p4445_p12)
}
  0xf9   : > { %s4993_s27 = smov 192   ;;  %s4994_s6 = smov 12  }
  0xfa   : > { %3930 = dma.hbm_to_vmem [thread:$0]  (!%p5179_p6), %s6080_s15, 3072, %s5331_s28, [#allocation27], %s4993_s27, %s4993_s27, %s4994_s6  }
  0xfb   : > { %s4995_s0 = smov [#allocation29]   ;;  %s4996_s30 = smov [#allocation32]  }
  0xfc   : > { %s767_s25 = sshll.u32 %s4995_s0, 4  ;;  %s792_s5 = sshll.u32 %s4996_s30, 4  ;;  %s768_s25 = int_to_ptr.vmem [resolvable:$true] %s767_s25  ;;  %s5374_s5 = int_to_ptr.vmem [resolvable:$true] %s792_s5 }
  0xfd   : > { %s4449_s22 = scalar_lea.hbm %s6082_s17, 3072 }
  0xfe   : > { %p4450_p1 = scmp.ne.s32.totalorder %s6082_s17, %s4449_s22  ;;  %p4456_p0 = scmp.lt.u32.totalorder %s4449_s22, %s6082_s17 }
 0x100   : > { %p4452_p3 = pnand %p4450_p1, %p5195_p8 }
 0x102   : > { %p4453_p13 = pneg %p4452_p3 }
 0x104   : > { %p4458_p2 = pnand %p4456_p0, %p4453_p13 }
 0x106   : > { %4461 = shalt.err (!%p4458_p2)
}
 0x107   : > { %s4462_s24 = scalar_lea.vmem %s768_s25, 3072  ;;  %p4470_p10 = scmp.lt.s32.totalorder %s768_s25, %s768_s25 }
 0x108   : > { %p4463_p5 = scmp.ne.s32.totalorder %s768_s25, %s4462_s24  ;;  %p4471_p4 = scmp.lt.s32.totalorder %s4462_s24, %s4462_s24 }
 0x10a   : > { %p4465_p7 = pnand %p4463_p5, %p5195_p8  ;;  %p4472_p11 = por %p4471_p4, %p4470_p10 }
 0x10c   : > { %p4466_p9 = pneg %p4465_p7 }
 0x10e   : > { %p4473_p12 = pnand %p4472_p11, %p4466_p9 }
 0x110   : > { %4476 = shalt.err (!%p4473_p12)
}
 0x111   : > { %3936 = dma.hbm_to_vmem [thread:$0]  (!%p5179_p6), %s6082_s17, 3072, %s768_s25, [#allocation30], %s4993_s27, %s4993_s27, %s4994_s6  }
 0x112   : > { %s4477_s23 = scalar_lea.hbm %s6084_s19, 48 }
 0x113   : > { %p4478_p1 = scmp.ne.s32.totalorder %s6084_s19, %s4477_s23  ;;  %p4484_p0 = scmp.lt.u32.totalorder %s4477_s23, %s6084_s19 }
 0x115   : > { %p4480_p3 = pnand %p4478_p1, %p5195_p8 }
 0x117   : > { %p4481_p13 = pneg %p4480_p3 }
 0x119   : > { %p4486_p2 = pnand %p4484_p0, %p4481_p13 }
 0x11b   : > { %4489 = shalt.err (!%p4486_p2)
}
 0x11c   : > { %s4490_s27 = scalar_lea.vmem %s5374_s5, 48  ;;  %s4497_s6 = scalar_lea.vmem %s5374_s5, 64 }
 0x11d   : > { %p4491_p5 = scmp.ne.s32.totalorder %s5374_s5, %s4490_s27  ;;  %p4498_p10 = scmp.lt.s32.totalorder %s5374_s5, %s5374_s5 }
 0x11e   : > { %p4499_p4 = scmp.lt.s32.totalorder %s4497_s6, %s4490_s27 }
 0x11f   : > { %p4493_p7 = pnand %p4491_p5, %p5195_p8 }
 0x120   : > { %p4500_p11 = por %p4499_p4, %p4498_p10 }
 0x121   : > { %p4494_p9 = pneg %p4493_p7 }
 0x123   : > { %p4501_p12 = pnand %p4500_p11, %p4494_p9 }
 0x125   : > { %4504 = shalt.err (!%p4501_p12)
}
 0x126   : > { %3942 = dma.hbm_to_vmem [thread:$0]  (!%p5179_p6), %s6084_s19, 48, %s5374_s5, [#allocation33]  }
 0x127   : > { %s4997_s4 = smov [#allocation35]   ;;  %s4998_s0 = smov [#allocation7]  }
 0x128   : > { %s813_s3 = sshll.u32 %s4997_s4, 4  ;;  %s593_s30 = sshll.u32 %s4998_s0, 4  ;;  %s814_s3 = int_to_ptr.vmem [resolvable:$true] %s813_s3  ;;  %s5418_s30 = int_to_ptr.vmem [resolvable:$true] %s593_s30 }
 0x129   : > { %s4505_s22 = scalar_lea.hbm %s6086_s21, 2752 }
 0x12a   : > { %p4506_p1 = scmp.ne.s32.totalorder %s6086_s21, %s4505_s22  ;;  %p4512_p0 = scmp.lt.u32.totalorder %s4505_s22, %s6086_s21 }
 0x12c   : > { %p4508_p3 = pnand %p4506_p1, %p5195_p8 }
 0x12e   : > { %p4509_p13 = pneg %p4508_p3 }
 0x130   : > { %p4514_p2 = pnand %p4512_p0, %p4509_p13 }
 0x132   : > { %4517 = shalt.err (!%p4514_p2)
}
 0x133   : > { %s4518_s6 = scalar_lea.vmem %s814_s3, 2752  ;;  %p4526_p10 = scmp.lt.s32.totalorder %s814_s3, %s814_s3 }
 0x134   : > { %p4519_p5 = scmp.ne.s32.totalorder %s814_s3, %s4518_s6  ;;  %p4527_p4 = scmp.lt.s32.totalorder %s4518_s6, %s4518_s6 }
 0x136   : > { %p4521_p7 = pnand %p4519_p5, %p5195_p8  ;;  %p4528_p11 = por %p4527_p4, %p4526_p10 }
 0x138   : > { %p4522_p9 = pneg %p4521_p7 }
 0x13a   : > { %p4529_p12 = pnand %p4528_p11, %p4522_p9 }
 0x13c   : > { %4532 = shalt.err (!%p4529_p12)
}
 0x13d   : > { %s6150_s25 = smov 4   ;;  %s6151_s24 = smov 64  }
 0x13e   : > { %3948 = dma.hbm_to_vmem [thread:$0]  (!%p5179_p6), %s6086_s21, 2752, %s814_s3, [#allocation36], %s6151_s24, %s6151_s24, %s6150_s25  }
 0x13f   : > { %s6152_s22 = sld [smem:[#allocation60_spill]] }
 0x145   : > { %s4533_s2 = scalar_lea.hbm %s6152_s22, 128 }
 0x146   : > { %p4534_p1 = scmp.ne.s32.totalorder %s6152_s22, %s4533_s2  ;;  %p4540_p0 = scmp.lt.u32.totalorder %s4533_s2, %s6152_s22 }
 0x148   : > { %p4536_p3 = pnand %p4534_p1, %p5195_p8 }
 0x14a   : > { %p4537_p13 = pneg %p4536_p3 }
 0x14c   : > { %p4542_p2 = pnand %p4540_p0, %p4537_p13 }
 0x14e   : > { %4545 = shalt.err (!%p4542_p2)
}
 0x14f   : > { %s4546_s3 = scalar_lea.vmem %s5418_s30, 128  ;;  %p4554_p10 = scmp.lt.s32.totalorder %s5418_s30, %s5418_s30 }
 0x150   : > { %p4547_p5 = scmp.ne.s32.totalorder %s5418_s30, %s4546_s3  ;;  %p4555_p4 = scmp.lt.s32.totalorder %s4546_s3, %s4546_s3 }
 0x152   : > { %p4549_p7 = pnand %p4547_p5, %p5195_p8  ;;  %p4556_p11 = por %p4555_p4, %p4554_p10 }
 0x154   : > { %p4550_p9 = pneg %p4549_p7 }
 0x156   : > { %p4557_p12 = pnand %p4556_p11, %p4550_p9 }
 0x158   : > { %4560 = shalt.err (!%p4557_p12)
}
 0x159   : > { %3891 = dma.hbm_to_vmem [thread:$0]  (!%p5179_p6), %s6152_s22, 128, %s5418_s30, [#allocation6]  }
 0x15a   : > { %s4999_s23 = smov [#allocation10]   ;;  %s5000_s2 = smov [#allocation13]  }
 0x15b   : > { %s615_s1 = sshll.u32 %s4999_s23, 4  ;;  %s636_s28 = sshll.u32 %s5000_s2, 4  ;;  %s616_s1 = int_to_ptr.vmem [resolvable:$true] %s615_s1  ;;  %s5464_s28 = int_to_ptr.vmem [resolvable:$true] %s636_s28 }
 0x15c   : > { %s6153_s6 = sld [smem:[#allocation62_spill]] }
 0x162   : > { %s4561_s3 = scalar_lea.hbm %s6153_s6, 16 }
 0x163   : > { %p4562_p1 = scmp.ne.s32.totalorder %s6153_s6, %s4561_s3  ;;  %p4568_p0 = scmp.lt.u32.totalorder %s4561_s3, %s6153_s6 }
 0x165   : > { %p4564_p3 = pnand %p4562_p1, %p5195_p8 }
 0x167   : > { %p4565_p13 = pneg %p4564_p3 }
 0x169   : > { %p4570_p2 = pnand %p4568_p0, %p4565_p13 }
 0x16b   : > { %4573 = shalt.err (!%p4570_p2)
}
 0x16c   : > { %s4574_s0 = scalar_lea.vmem %s616_s1, 16  ;;  %s4581_s23 = scalar_lea.vmem %s616_s1, 32 }
 0x16d   : > { %p4575_p5 = scmp.ne.s32.totalorder %s616_s1, %s4574_s0  ;;  %p4582_p10 = scmp.lt.s32.totalorder %s616_s1, %s616_s1 }
 0x16e   : > { %p4583_p4 = scmp.lt.s32.totalorder %s4581_s23, %s4574_s0 }
 0x16f   : > { %p4577_p7 = pnand %p4575_p5, %p5195_p8 }
 0x170   : > { %p4584_p11 = por %p4583_p4, %p4582_p10 }
 0x171   : > { %p4578_p9 = pneg %p4577_p7 }
 0x173   : > { %p4585_p12 = pnand %p4584_p11, %p4578_p9 }
 0x175   : > { %4588 = shalt.err (!%p4585_p12)
}
 0x176   : > { %3897 = dma.hbm_to_vmem [thread:$0]  (!%p5179_p6), %s6153_s6, 16, %s616_s1, [#allocation9]  }
 0x177   : > { %s6154_s5 = sld [smem:[#allocation64_spill]] }
 0x17d   : > { %s4589_s3 = scalar_lea.hbm %s6154_s5, 1024 }
 0x17e   : > { %p4590_p1 = scmp.ne.s32.totalorder %s6154_s5, %s4589_s3  ;;  %p4596_p0 = scmp.lt.u32.totalorder %s4589_s3, %s6154_s5 }
 0x180   : > { %p4592_p3 = pnand %p4590_p1, %p5195_p8 }
 0x182   : > { %p4593_p13 = pneg %p4592_p3 }
 0x184   : > { %p4598_p2 = pnand %p4596_p0, %p4593_p13 }
 0x186   : > { %4601 = shalt.err (!%p4598_p2)
}
 0x187   : > { %s4602_s1 = scalar_lea.vmem %s5464_s28, 1024  ;;  %p4610_p10 = scmp.lt.s32.totalorder %s5464_s28, %s5464_s28 }
 0x188   : > { %p4603_p5 = scmp.ne.s32.totalorder %s5464_s28, %s4602_s1  ;;  %p4611_p4 = scmp.lt.s32.totalorder %s4602_s1, %s4602_s1 }
 0x18a   : > { %p4605_p7 = pnand %p4603_p5, %p5195_p8  ;;  %p4612_p11 = por %p4611_p4, %p4610_p10 }
 0x18c   : > { %p4606_p9 = pneg %p4605_p7 }
 0x18e   : > { %p4613_p12 = pnand %p4612_p11, %p4606_p9 }
 0x190   : > { %4616 = shalt.err (!%p4613_p12)
}
 0x191   : > { %3903 = dma.hbm_to_vmem [thread:$0]  (!%p5179_p6), %s6154_s5, 1024, %s5464_s28, [#allocation12], %s6151_s24, %s6151_s24, %s6150_s25  }
 0x192   : > { %s5001_s2 = smov [#allocation16]   ;;  %s5002_s3 = smov [#allocation19]  }
 0x193   : > { %s660_s27 = sshll.u32 %s5001_s2, 4  ;;  %s687_s4 = sshll.u32 %s5002_s3, 4  ;;  %s661_s27 = int_to_ptr.vmem [resolvable:$true] %s660_s27  ;;  %s5510_s4 = int_to_ptr.vmem [resolvable:$true] %s687_s4 }
 0x194   : > { %s6155_s8 = sld [smem:[#allocation66_spill]] }
 0x19a   : > { %s4617_s23 = scalar_lea.hbm %s6155_s8, 1024 }
 0x19b   : > { %p4618_p1 = scmp.ne.s32.totalorder %s6155_s8, %s4617_s23  ;;  %p4624_p0 = scmp.lt.u32.totalorder %s4617_s23, %s6155_s8 }
 0x19d   : > { %p4620_p3 = pnand %p4618_p1, %p5195_p8 }
 0x19f   : > { %p4621_p13 = pneg %p4620_p3 }
 0x1a1   : > { %p4626_p2 = pnand %p4624_p0, %p4621_p13 }
 0x1a3   : > { %4629 = shalt.err (!%p4626_p2)
}
 0x1a4   : > { %s4630_s11 = scalar_lea.vmem %s661_s27, 1024  ;;  %p4638_p10 = scmp.lt.s32.totalorder %s661_s27, %s661_s27 }
 0x1a5   : > { %p4631_p5 = scmp.ne.s32.totalorder %s661_s27, %s4630_s11  ;;  %p4639_p4 = scmp.lt.s32.totalorder %s4630_s11, %s4630_s11 }
 0x1a7   : > { %p4633_p7 = pnand %p4631_p5, %p5195_p8  ;;  %p4640_p11 = por %p4639_p4, %p4638_p10 }
 0x1a9   : > { %p4634_p9 = pneg %p4633_p7 }
 0x1ab   : > { %p4641_p12 = pnand %p4640_p11, %p4634_p9 }
 0x1ad   : > { %4644 = shalt.err (!%p4641_p12)
}
 0x1ae   : > { %3909 = dma.hbm_to_vmem [thread:$0]  (!%p5179_p6), %s6155_s8, 1024, %s661_s27, [#allocation15], %s6151_s24, %s6151_s24, %s6150_s25  }
 0x1af   : > { %s4645_s0 = scalar_lea.hbm %s6075_s10, 16 }
 0x1b0   : > { %p4646_p1 = scmp.ne.s32.totalorder %s6075_s10, %s4645_s0  ;;  %p4652_p0 = scmp.lt.u32.totalorder %s4645_s0, %s6075_s10 }
 0x1b2   : > { %p4648_p3 = pnand %p4646_p1, %p5195_p8 }
 0x1b4   : > { %p4649_p13 = pneg %p4648_p3 }
 0x1b6   : > { %p4654_p2 = pnand %p4652_p0, %p4649_p13 }
 0x1b8   : > { %4657 = shalt.err (!%p4654_p2)
}
 0x1b9   : > { %s4658_s25 = scalar_lea.vmem %s5510_s4, 16  ;;  %s4665_s24 = scalar_lea.vmem %s5510_s4, 32 }
 0x1ba   : > { %p4659_p5 = scmp.ne.s32.totalorder %s5510_s4, %s4658_s25  ;;  %p4666_p10 = scmp.lt.s32.totalorder %s5510_s4, %s5510_s4 }
 0x1bb   : > { %p4667_p4 = scmp.lt.s32.totalorder %s4665_s24, %s4658_s25 }
 0x1bc   : > { %p4661_p7 = pnand %p4659_p5, %p5195_p8 }
 0x1bd   : > { %p4668_p11 = por %p4667_p4, %p4666_p10 }
 0x1be   : > { %p4662_p9 = pneg %p4661_p7 }
 0x1c0   : > { %p4669_p12 = pnand %p4668_p11, %p4662_p9 }
 0x1c2   : > { %4672 = shalt.err (!%p4669_p12)
}
 0x1c3   : > { %3915 = dma.hbm_to_vmem [thread:$0]  (!%p5179_p6), %s6075_s10, 16, %s5510_s4, [#allocation18]  }
 0x1c4   : > { %s5003_s6 = smov [#allocation22]   ;;  %s5004_s3 = smov [#allocation25]  }
 0x1c5   : > { %s711_s2 = sshll.u32 %s5003_s6, 4  ;;  %s733_s30 = sshll.u32 %s5004_s3, 4  ;;  %s712_s2 = int_to_ptr.vmem [resolvable:$true] %s711_s2  ;;  %s5557_s30 = int_to_ptr.vmem [resolvable:$true] %s733_s30 }
 0x1c6   : > { %s4673_s1 = scalar_lea.hbm %s6077_s12, 16 }
 0x1c7   : > { %p4674_p1 = scmp.ne.s32.totalorder %s6077_s12, %s4673_s1  ;;  %p4680_p0 = scmp.lt.u32.totalorder %s4673_s1, %s6077_s12 }
 0x1c9   : > { %p4676_p3 = pnand %p4674_p1, %p5195_p8 }
 0x1cb   : > { %p4677_p13 = pneg %p4676_p3 }
 0x1cd   : > { %p4682_p2 = pnand %p4680_p0, %p4677_p13 }
 0x1cf   : > { %4685 = shalt.err (!%p4682_p2)
}
 0x1d0   : > { %s4686_s24 = scalar_lea.vmem %s712_s2, 16  ;;  %s4693_s27 = scalar_lea.vmem %s712_s2, 32 }
 0x1d1   : > { %p4687_p5 = scmp.ne.s32.totalorder %s712_s2, %s4686_s24  ;;  %p4694_p10 = scmp.lt.s32.totalorder %s712_s2, %s712_s2 }
 0x1d2   : > { %p4695_p4 = scmp.lt.s32.totalorder %s4693_s27, %s4686_s24 }
 0x1d3   : > { %p4689_p7 = pnand %p4687_p5, %p5195_p8 }
 0x1d4   : > { %p4696_p11 = por %p4695_p4, %p4694_p10 }
 0x1d5   : > { %p4690_p9 = pneg %p4689_p7 }
 0x1d7   : > { %p4697_p12 = pnand %p4696_p11, %p4690_p9 }
 0x1d9   : > { %4700 = shalt.err (!%p4697_p12)
}
 0x1da   : > { %3921 = dma.hbm_to_vmem [thread:$0]  (!%p5179_p6), %s6077_s12, 16, %s712_s2, [#allocation21]  }
 0x1db   : > { %s4701_s23 = scalar_lea.hbm %s6079_s14, 16 }
 0x1dc   : > { %p4702_p1 = scmp.ne.s32.totalorder %s6079_s14, %s4701_s23  ;;  %p4708_p0 = scmp.lt.u32.totalorder %s4701_s23, %s6079_s14 }
 0x1de   : > { %p4704_p3 = pnand %p4702_p1, %p5195_p8 }
 0x1e0   : > { %p4705_p13 = pneg %p4704_p3 }
 0x1e2   : > { %p4710_p2 = pnand %p4708_p0, %p4705_p13 }
 0x1e4   : > { %4713 = shalt.err (!%p4710_p2)
}
 0x1e5   : > { %s4714_s2 = scalar_lea.vmem %s5557_s30, 16  ;;  %s4721_s4 = scalar_lea.vmem %s5557_s30, 32 }
 0x1e6   : > { %p4715_p5 = scmp.ne.s32.totalorder %s5557_s30, %s4714_s2  ;;  %p4722_p10 = scmp.lt.s32.totalorder %s5557_s30, %s5557_s30 }
 0x1e7   : > { %p4723_p4 = scmp.lt.s32.totalorder %s4721_s4, %s4714_s2 }
 0x1e8   : > { %p4717_p7 = pnand %p4715_p5, %p5195_p8 }
 0x1e9   : > { %p4724_p11 = por %p4723_p4, %p4722_p10 }
 0x1ea   : > { %p4718_p9 = pneg %p4717_p7 }
 0x1ec   : > { %p4725_p12 = pnand %p4724_p11, %p4718_p9 }
 0x1ee   : > { %4728 = shalt.err (!%p4725_p12)
}
 0x1ef   : > { %3927 = dma.hbm_to_vmem [thread:$0]  (!%p5179_p6), %s6079_s14, 16, %s5557_s30, [#allocation24]  }
 0x1f0   : > { %s5005_s11 = smov [#allocation28]   ;;  %s5006_s3 = smov [#allocation31]  }
 0x1f1   : > { %s757_s6 = sshll.u32 %s5005_s11, 4  ;;  %s781_s0 = sshll.u32 %s5006_s3, 4  ;;  %s758_s6 = int_to_ptr.vmem [resolvable:$true] %s757_s6  ;;  %s5601_s0 = int_to_ptr.vmem [resolvable:$true] %s781_s0 }
 0x1f2   : > { %s4729_s9 = scalar_lea.hbm %s6081_s16, 48 }
 0x1f3   : > { %p4730_p1 = scmp.ne.s32.totalorder %s6081_s16, %s4729_s9  ;;  %p4736_p0 = scmp.lt.u32.totalorder %s4729_s9, %s6081_s16 }
 0x1f5   : > { %p4732_p3 = pnand %p4730_p1, %p5195_p8 }
 0x1f7   : > { %p4733_p13 = pneg %p4732_p3 }
 0x1f9   : > { %p4738_p2 = pnand %p4736_p0, %p4733_p13 }
 0x1fb   : > { %4741 = shalt.err (!%p4738_p2)
}
 0x1fc   : > { %s4742_s4 = scalar_lea.vmem %s758_s6, 48  ;;  %s4749_s24 = scalar_lea.vmem %s758_s6, 64 }
 0x1fd   : > { %p4743_p5 = scmp.ne.s32.totalorder %s758_s6, %s4742_s4  ;;  %p4750_p10 = scmp.lt.s32.totalorder %s758_s6, %s758_s6 }
 0x1fe   : > { %p4751_p4 = scmp.lt.s32.totalorder %s4749_s24, %s4742_s4 }
 0x1ff   : > { %p4745_p7 = pnand %p4743_p5, %p5195_p8 }
 0x200   : > { %p4752_p11 = por %p4751_p4, %p4750_p10 }
 0x201   : > { %p4746_p9 = pneg %p4745_p7 }
 0x203   : > { %p4753_p12 = pnand %p4752_p11, %p4746_p9 }
 0x205   : > { %4756 = shalt.err (!%p4753_p12)
}
 0x206   : > { %3933 = dma.hbm_to_vmem [thread:$0]  (!%p5179_p6), %s6081_s16, 48, %s758_s6, [#allocation27]  }
 0x207   : > { %s4757_s1 = scalar_lea.hbm %s6083_s18, 48 }
 0x208   : > { %p4758_p1 = scmp.ne.s32.totalorder %s6083_s18, %s4757_s1  ;;  %p4764_p0 = scmp.lt.u32.totalorder %s4757_s1, %s6083_s18 }
 0x20a   : > { %p4760_p3 = pnand %p4758_p1, %p5195_p8 }
 0x20c   : > { %p4761_p13 = pneg %p4760_p3 }
 0x20e   : > { %p4766_p2 = pnand %p4764_p0, %p4761_p13 }
 0x210   : > { %4769 = shalt.err (!%p4766_p2)
}
 0x211   : > { %s4770_s6 = scalar_lea.vmem %s5601_s0, 48  ;;  %s4777_s30 = scalar_lea.vmem %s5601_s0, 64 }
 0x212   : > { %p4771_p5 = scmp.ne.s32.totalorder %s5601_s0, %s4770_s6  ;;  %p4778_p10 = scmp.lt.s32.totalorder %s5601_s0, %s5601_s0 }
 0x213   : > { %p4779_p4 = scmp.lt.s32.totalorder %s4777_s30, %s4770_s6 }
 0x214   : > { %p4773_p7 = pnand %p4771_p5, %p5195_p8 }
 0x215   : > { %p4780_p11 = por %p4779_p4, %p4778_p10 }
 0x216   : > { %p4774_p9 = pneg %p4773_p7 }
 0x218   : > { %p4781_p12 = pnand %p4780_p11, %p4774_p9 }
 0x21a   : > { %4784 = shalt.err (!%p4781_p12)
}
 0x21b   : > { %3939 = dma.hbm_to_vmem [thread:$0]  (!%p5179_p6), %s6083_s18, 48, %s5601_s0, [#allocation30]  }
 0x21c   : > { %s5007_s27 = smov [#allocation34]   ;;  %s5008_s3 = smov [#allocation37]  }
 0x21d   : > { %s803_s11 = sshll.u32 %s5007_s27, 4  ;;  %s827_s23 = sshll.u32 %s5008_s3, 4  ;;  %s804_s11 = int_to_ptr.vmem [resolvable:$true] %s803_s11  ;;  %s5645_s23 = int_to_ptr.vmem [resolvable:$true] %s827_s23 }
 0x21e   : > { %s4785_s28 = scalar_lea.hbm %s6085_s20, 48 }
 0x21f   : > { %p4786_p1 = scmp.ne.s32.totalorder %s6085_s20, %s4785_s28  ;;  %p4792_p0 = scmp.lt.u32.totalorder %s4785_s28, %s6085_s20 }
 0x221   : > { %p4788_p3 = pnand %p4786_p1, %p5195_p8 }
 0x223   : > { %p4789_p13 = pneg %p4788_p3 }
 0x225   : > { %p4794_p2 = pnand %p4792_p0, %p4789_p13 }
 0x227   : > { %4797 = shalt.err (!%p4794_p2)
}
 0x228   : > { %s4798_s30 = scalar_lea.vmem %s804_s11, 48  ;;  %s4805_s4 = scalar_lea.vmem %s804_s11, 64 }
 0x229   : > { %p4799_p5 = scmp.ne.s32.totalorder %s804_s11, %s4798_s30  ;;  %p4806_p10 = scmp.lt.s32.totalorder %s804_s11, %s804_s11 }
 0x22a   : > { %p4807_p4 = scmp.lt.s32.totalorder %s4805_s4, %s4798_s30 }
 0x22b   : > { %p4801_p7 = pnand %p4799_p5, %p5195_p8 }
 0x22c   : > { %p4808_p11 = por %p4807_p4, %p4806_p10 }
 0x22d   : > { %p4802_p9 = pneg %p4801_p7 }
 0x22f   : > { %p4809_p12 = pnand %p4808_p11, %p4802_p9 }
 0x231   : > { %4812 = shalt.err (!%p4809_p12)
}
 0x232   : > { %3945 = dma.hbm_to_vmem [thread:$0]  (!%p5179_p6), %s6085_s20, 48, %s804_s11, [#allocation33]  }
 0x233   : > { %s6156_s9 = sld [smem:[#allocation69_spill]] }
 0x239   : > { %s4813_s28 = scalar_lea.hbm %s6156_s9, 16 }
 0x23a   : > { %p4814_p1 = scmp.ne.s32.totalorder %s6156_s9, %s4813_s28  ;;  %p4820_p0 = scmp.lt.u32.totalorder %s4813_s28, %s6156_s9 }
 0x23c   : > { %p4816_p3 = pnand %p4814_p1, %p5195_p8 }
 0x23e   : > { %p4817_p13 = pneg %p4816_p3 }
 0x240   : > { %p4822_p2 = pnand %p4820_p0, %p4817_p13 }
 0x242   : > { %4825 = shalt.err (!%p4822_p2)
}
 0x243   : > { %s4826_s11 = scalar_lea.vmem %s5645_s23, 16  ;;  %s4833_s30 = scalar_lea.vmem %s5645_s23, 32 }
 0x244   : > { %p4827_p5 = scmp.ne.s32.totalorder %s5645_s23, %s4826_s11  ;;  %p4834_p10 = scmp.lt.s32.totalorder %s5645_s23, %s5645_s23 }
 0x245   : > { %p4835_p4 = scmp.lt.s32.totalorder %s4833_s30, %s4826_s11 }
 0x246   : > { %p4829_p7 = pnand %p4827_p5, %p5195_p8 }
 0x247   : > { %p4836_p11 = por %p4835_p4, %p4834_p10 }
 0x248   : > { %p4830_p9 = pneg %p4829_p7 }
 0x24a   : > { %p4837_p12 = pnand %p4836_p11, %p4830_p9 }
 0x24c   : > { %4840 = shalt.err (!%p4837_p12)
}
 0x24d   : > { %s6157_s27 = sld [smem:[#allocation55_spill]]  ;;  %s6158_s3 = sld [smem:[#allocation54_spill]] }
 0x24e   : > { %s6159_s7 = sld [smem:[#allocation53_spill]]  ;;  %s6160_s1 = sld [smem:[#allocation52_spill]] }
 0x24f   : > { %s6161_s28 = sld [smem:[#allocation56_spill]]  ;;  %s6167_s5 = sld [smem:[#allocation58_spill]] }
 0x250   : > { %3951 = dma.hbm_to_vmem [thread:$0]  (!%p5179_p6), %s6156_s9, 16, %s5645_s23, [#allocation36]  }
 0x253   : > { %s3300_s29 = sadd.s32 4294967294, %s6157_s27   ;;  %s5691_s25 = sadd.s32 1, %s6157_s27  }
 0x254   : > { %s54_s2 = ssub.s32 %s6157_s27, %s5691_s25  ;;  %s57_s6 = sadd.s32 1, %s6158_s3 }
 0x255   : > { %p55_p8 = scmp.eq.s32.totalorder %s54_s2, 0  ;;  %p64_p1 = scmp.ne.s32.totalorder %s6158_s3, %s6159_s7 }
 0x256   : > { %p65_p3 = scmp.eq.s32.totalorder %s6157_s27, 0  ;;  %p70_p13 = scmp.ne.s32.totalorder %s6159_s7, %s6160_s1 }
 0x257   : > { %s5702_s0 = scalar_select %p55_p8, %s6158_s3, %s57_s6  }
 0x258   : > { %p5704_p0 = por %p65_p3, %p64_p1  ;;  %p6163_p2 = scmp.eq.s32.totalorder %s6161_s28, 0 }
 0x259   : > { %p556_p5 = scmp.eq.s32.totalorder %s6161_s28, 1  ;;  %p562_p7 = scmp.eq.s32.totalorder %s3300_s29, 1 }
 0x25a   : > { %p5710_p6 = por %p6163_p2, %p70_p13  ;;  %p3982_p9 = scmp.lt.s32.totalorder %s6157_s27, 2 }
 0x25b   : > { %s838_s30 = sand.u32 1, %s6158_s3   ;;  %p5717_p10 = por %p556_p5, %p64_p1 }
 0x25c   : > { %p5721_p4 = por %p562_p7, %p70_p13  ;;  %s3325_s7 = sshll.u32 %s838_s30, 3 }
 0x25d   : > { %s6165_s4 = scalar_select %p5717_p10, 1, 0 }
 0x25e   : > { %s6166_s24 = scalar_select %p5721_p4, 1, 0 }
 0x25f   : > { %s3326_s1 = sshll.u32 %s6157_s27, 7  ;;  %s842_s3 = scalar_lea.vmem [#allocation2], %s3325_s7 }
 0x260   : > { %s5729_s8 = scalar_lea.hbm %s6167_s5, %s3326_s1  ;;  %s849_s28 = sshll.u32 %s842_s3, 4  ;;  %s5731_s28 = int_to_ptr.vmem [resolvable:$true] %s849_s28 }
 0x261   : > { %p5735_p11 = pnand %p3982_p9, %p5704_p0  ;;  %s839_s27 = scalar_lea.sflag [#allocation3], %s838_s30 }
 0x262   : > { %s4841_s9 = scalar_lea.hbm %s5729_s8, 128  ;;  %s4846_s2 = scalar_lea.hbm %s6167_s5, 256 }
 0x263   : > { %p4842_p12 = scmp.ne.s32.totalorder %s5729_s8, %s4841_s9  ;;  %p4843_p8 = pneg %p5735_p11 }
 0x264   : > { %p4847_p13 = scmp.lt.u32.totalorder %s5729_s8, %s6167_s5  ;;  %p4848_p0 = scmp.lt.u32.totalorder %s4846_s2, %s4841_s9 }
 0x265   : > { %p4844_p1 = pnand %p4843_p8, %p4842_p12  ;;  %p4850_p5 = scmp.lt.u32.totalorder %s4841_s9, %s5729_s8 }
 0x266   : > { %p4849_p2 = por %p4848_p0, %p4847_p13 }
 0x267   : > { %p4845_p3 = pneg %p4844_p1 }
 0x268   : > { %p4851_p7 = por %p4850_p5, %p4849_p2 }
 0x26a   : > { %p4852_p9 = pnand %p4851_p7, %p4845_p3 }
 0x26c   : > { %4855 = shalt.err (!%p4852_p9)
}
 0x26d   : > { %s4856_s30 = scalar_lea.vmem %s5731_s28, 128  ;;  %s5009_s3 = smov [#allocation2]  }
 0x26e   : > { %p4857_p12 = scmp.ne.s32.totalorder %s5731_s28, %s4856_s30  ;;  %s4861_s7 = sshll.u32 %s5009_s3, 4  ;;  %s4862_s7 = int_to_ptr.vmem [resolvable:$false] %s4861_s7 }
 0x26f   : > { %s4863_s1 = scalar_lea.vmem %s4862_s7, 256  ;;  %p4864_p10 = scmp.lt.s32.totalorder %s5731_s28, %s4862_s7 }
 0x270   : > { %p4859_p1 = pnand %p4857_p12, %p4843_p8  ;;  %p4865_p13 = scmp.lt.s32.totalorder %s4863_s1, %s4856_s30 }
 0x272   : > { %p4860_p4 = pneg %p4859_p1  ;;  %p4866_p0 = por %p4865_p13, %p4864_p10 }
 0x274   : > { %p4867_p2 = pnand %p4866_p0, %p4860_p4 }
 0x276   : > { %4870 = shalt.err (!%p4867_p2)
}
 0x277   : > { %3955 = dma.hbm_to_vmem [thread:$0]  (!%p5735_p11), %s5729_s8, 128, %s5731_s28, %s839_s27  }
 0x278   : > { %s6169_s9 = sld [smem:[#allocation57_spill]] }
 0x27e   : > { %p6170_p3 = scmp.ne.s32.totalorder %s6169_s9, 0 }
 0x27f   : > { %s6171_s2 = sld [smem:[#allocation53_spill]] (!%p6170_p3) }
 0x280   : > { %858 = sbr.rel (%p6170_p3) target bundleno = 4263 (0x10a7), region = 112 }
 0x285   : > { %s5767_s11 = sand.u32 (!%p6170_p3), 1, %s6171_s2  }
 0x286   : > { %s3328_s6 = sshll.u32 (!%p6170_p3), %s5767_s11, 3  ;;  %s861_s30 = scalar_lea.sflag (!%p6170_p3), [#allocation3], %s5767_s11 }
 0x287   : > { %s864_s3 = scalar_lea.vmem [#allocation2], %s3328_s6 }
 0x288   : > { %4916 = dma.done.wait (%p5710_p6), %s861_s30, 128  }
 0x289   : > { %4918 = vsyncadd (%p5710_p6), %s861_s30, 4294967168  ;;  %s6172_s8 = sld [smem:[#allocation56_spill]] }
 0x28f   : > { %p6173_p10 = scmp.eq.s32.totalorder %s6172_s8, 0 }
 0x291   : > { %4920 = dma.done.wait (%p6173_p10), [#allocation6], 256   ;;  %p6174_p4 = pmov %p6173_p10 }
 0x293   : > { %4922 = vsyncadd (%p6174_p4), [#allocation6], 4294967040  ;;  %p6175_p11 = pmov %p6174_p4 }
 0x294   : > { %p6176_p8 = pmov %p6174_p4 }
 0x295   : > { %4924 = dma.done.wait (%p6175_p11), [#allocation9], 144  }
 0x296   : > { %4926 = vsyncadd (%p6176_p8), [#allocation9], 4294967152  ;;  %p6177_p5 = pmov %p6174_p4 }
 0x297   : > { %p6178_p7 = pmov %p6174_p4 }
 0x298   : > { %4928 = dma.done.wait (%p6177_p5), [#allocation12], 1040  }
 0x299   : > { %4930 = vsyncadd (%p6178_p7), [#allocation12], 4294966256  ;;  %p6179_p6 = pmov %p6174_p4 }
 0x29a   : > { %p6180_p9 = pmov %p6174_p4 }
 0x29b   : > { %4932 = dma.done.wait (%p6179_p6), [#allocation15], 1040  }
 0x29c   : > { %4934 = vsyncadd (%p6180_p9), [#allocation15], 4294966256  ;;  %p6181_p12 = pmov %p6174_p4 }
 0x29d   : > { %p6182_p1 = pmov %p6174_p4 }
 0x29e   : > { %4936 = dma.done.wait (%p6181_p12), [#allocation18], 1040  }
 0x29f   : > { %4938 = vsyncadd (%p6182_p1), [#allocation18], 4294966256  ;;  %p6183_p13 = pmov %p6182_p1 }
 0x2a0   : > { %p6184_p0 = pmov %p6182_p1 }
 0x2a1   : > { %4940 = dma.done.wait (%p6183_p13), [#allocation21], 1040  }
 0x2a2   : > { %4942 = vsyncadd (%p6184_p0), [#allocation21], 4294966256  ;;  %p6185_p2 = pmov %p6184_p0 }
 0x2a3   : > { %p6186_p3 = pmov %p6184_p0 }
 0x2a4   : > { %4944 = dma.done.wait (%p6185_p2), [#allocation24], 32  }
 0x2a5   : > { %4946 = vsyncadd (%p6186_p3), [#allocation24], 4294967264  ;;  %p6187_p10 = pmov %p6184_p0 }
 0x2a6   : > { %p6188_p4 = pmov %p6184_p0 }
 0x2a7   : > { %4948 = dma.done.wait (%p6187_p10), [#allocation27], 3120  }
 0x2a8   : > { %4950 = vsyncadd (%p6188_p4), [#allocation27], 4294964176  ;;  %p6189_p11 = pmov %p6184_p0 }
 0x2a9   : > { %p6190_p8 = pmov %p6184_p0 }
 0x2aa   : > { %4952 = dma.done.wait (%p6189_p11), [#allocation30], 3120  }
 0x2ab   : > { %4954 = vsyncadd (%p6190_p8), [#allocation30], 4294964176  ;;  %p6191_p5 = pmov %p6184_p0 }
 0x2ac   : > { %p6192_p7 = pmov %p6184_p0 }
 0x2ad   : > { %4956 = dma.done.wait (%p6191_p5), [#allocation33], 96  }
 0x2ae   : > { %4958 = vsyncadd (%p6192_p7), [#allocation33], 4294967200  ;;  %p6193_p6 = pmov %p6184_p0 }
 0x2af   : > { %p6194_p9 = pmov %p6184_p0 }
 0x2b0   : > { %4960 = dma.done.wait (%p6193_p6), [#allocation36], 2768  }
 0x2b1   : > { %4962 = vsyncadd (%p6194_p9), [#allocation36], 4294964528  ;;  %vm1020_vm0 = vcmask 1044480   ;;  %v5821_v0 = vld [vmem:[%s864_s3] sm:$0x1f]  ;;  %v4074_v3 = vld [vmem:[#allocation16] sm:$0xff]  }
 0x2b2   : > { %v1021_v1 = vsel %vm1020_vm0, %v5821_v0, 0.0  ;;  %v4073_v2 = vld [vmem:[#allocation13] sm:$0xff]   ;;  %v5010_v4 = vmov 0.0   ;;  %v4075_v5 = vld [vmem:[#allocation13 + $0x8] sm:$0xff]   ;;  %v4077_v7 = vld [vmem:[#allocation13 + $0x10] sm:$0xff]   ;;  %vm5011_vm1 = vmmov 0  }
 0x2b3   : > { %1022 = vadd.xlane.f32.xlu0 %v1021_v1  ;;  %3584 = vmatprep.subr.bf16.mxu0 %v5010_v4  ;;  %v4076_v6 = vld [vmem:[#allocation16 + $0x8] sm:$0xff]   ;;  %v4078_v13 = vld [vmem:[#allocation16 + $0x10] sm:$0xff]   ;;  %v4080_v15 = vld [vmem:[#allocation16 + $0x18] sm:$0xff]   ;;  %s5012_s23 = smov 1   ;;  %s5013_s28 = smov 127   ;;  %vm1408_vm2 = vcmask 261120  }
 0x2b4   : > { %3604 = vmatprep.subr.bf16.mxu1 %v5010_v4  ;;  %3585 = vmatpush3.bf16.msra.mxu0 %v4073_v2  ;;  %v4079_v14 = vld [vmem:[#allocation13 + $0x18] sm:$0xff]   ;;  %v4081_v16 = vld [vmem:[#allocation13 + $0x20] sm:$0xff]   ;;  %v4083_v18 = vld [vmem:[#allocation13 + $0x28] sm:$0xff]   ;;  %vm1471_vm3 = vcmask 1041408   ;;  %vm1472_vm4 = vcmask 1042432   ;;  %vm1455_vm5 = vcmask 36864  }
 0x2b5   : > { %3605 = vmatpush3.bf16.msra.mxu1 %v4074_v3  ;;  %3586 = vmatprep.subr.bf16.mxu0 %v5010_v4  ;;  %v4082_v17 = vld [vmem:[#allocation16 + $0x20] sm:$0xff]   ;;  %v4084_v19 = vld [vmem:[#allocation16 + $0x28] sm:$0xff]   ;;  %v4086_v21 = vld [vmem:[#allocation16 + $0x30] sm:$0xff]   ;;  %s5015_s29 = smov 96   ;;  %vm1467_vm6 = vcmask 39936   ;;  %s5016_s27 = smov 64  }
 0x2b6   : > { %3606 = vmatprep.subr.bf16.mxu1 %v5010_v4  ;;  %3600 = vmatprep.mubr.msk.bf16.mxu0 %vm5011_vm1, %v5010_v4  ;;  %v4085_v20 = vld [vmem:[#allocation13 + $0x30] sm:$0xff]   ;;  %v4087_v22 = vld [vmem:[#allocation13 + $0x38] sm:$0xff]   ;;  %v4089_v33 = vld [vmem:[#allocation17] sm:$0xff]   ;;  %s5017_s7 = smov 32   ;;  %vm2669_vm7 = vcmask 692224   ;;  %vm2910_vm8 = vcmask 695296  }
 0x2b7   : > { %3620 = vmatprep.mubr.msk.bf16.mxu1 %vm5011_vm1, %v5010_v4  ;;  %v4088_v23 = vld [vmem:[#allocation16 + $0x38] sm:$0xff]   ;;  %v4090_v35 = vld [vmem:[#allocation17 + $0x8] sm:$0xff]   ;;  %v4091_v36 = vld [vmem:[#allocation17 + $0x10] sm:$0xff]   ;;  %s3479_s1 = sshll.u32 %s6172_s8, 7  ;;  %s1014_s9 = scalar_lea.vmem [#allocation38], %s3328_s6 }
 0x2b8   : > { %3587 = vmatpush3.bf16.msra.mxu0 %v4075_v5  ;;  %v3352_v28 = vld [vmem:[#allocation10] ss:$0 sm:$0xff]  ;;  %v3353_v30 = vld [vmem:[#allocation11] ss:$0 sm:$0xff]  ;;  %v4093_v38 = vld [vmem:[#allocation17 + $0x20] sm:$0xff]   ;;  %s3021_s2 = sshll.u32 %s1014_s9, 4  ;;  %s6023_s2 = int_to_ptr.vmem [resolvable:$true] %s3021_s2 }
 0x2b9   : > { %3607 = vmatpush3.bf16.msra.mxu1 %v4076_v6  ;;  %3588 = vmatprep.subr.bf16.mxu0 %v5010_v4  ;;  %v4092_v37 = vld [vmem:[#allocation17 + $0x18] sm:$0xff]   ;;  %v4094_v39 = vld [vmem:[#allocation17 + $0x28] sm:$0xff]   ;;  %v4095_v40 = vld [vmem:[#allocation17 + $0x30] sm:$0xff]   ;;  %p6196_p1 = scmp.ne.s32.totalorder %s6165_s4, 0  ;;  %s5019_s6 = smov [#allocation38]  }
 0x2ba   : > { %3608 = vmatprep.subr.bf16.mxu1 %v5010_v4  ;;  %v4096_v41 = vld [vmem:[#allocation17 + $0x38] sm:$0xff]   ;;  %v1018_v56 = vld [vmem:[#allocation7] sm:$0x1f]  ;;  %v1017_v57 = vld [vmem:[#allocation5] sm:$0x1f]  ;;  %s4875_s8 = sshll.u32 %s5019_s6, 4  ;;  %s4876_s8 = int_to_ptr.vmem [resolvable:$false] %s4875_s8 }
 0x2bb   : > { %v3354_v42 = vld [vmem:[#allocation14] ss:$0 sm:$0xff]  ;;  %v1019_v61 = vld [vmem:[#allocation8] sm:$0x1f]  ;;  %v3371_v5 = vld [vmem:[#allocation19] ss:$0 sm:$0xff]  ;;  %p4878_p2 = scmp.lt.s32.totalorder %s6023_s2, %s4876_s8 }
 0x2bc   : > { %3589 = vmatpush3.bf16.msra.mxu0 %v4077_v7 }
 0x2bd   : > { %3590 = vmatprep.subr.bf16.mxu0 %v5010_v4  ;;  %3609 = vmatpush3.bf16.msra.mxu1 %v4078_v13 }
 0x2be   : > { %3610 = vmatprep.subr.bf16.mxu1 %v5010_v4 }
 0x2c0   : > { %3591 = vmatpush3.bf16.msra.mxu0 %v4079_v14 }
 0x2c1   : > { %3611 = vmatpush3.bf16.msra.mxu1 %v4080_v15  ;;  %3592 = vmatprep.subr.bf16.mxu0 %v5010_v4  ;;  %v5014_v15 = vmov 65535  }
 0x2c2   : > { %3612 = vmatprep.subr.bf16.mxu1 %v5010_v4 }
 0x2c4   : > { %3593 = vmatpush3.bf16.msra.mxu0 %v4081_v16  ;;  %v1473_v16 = vsel %vm1471_vm3, 4294967295, %v5014_v15 }
 0x2c5   : > { %3613 = vmatpush3.bf16.msra.mxu1 %v4082_v17  ;;  %3594 = vmatprep.subr.bf16.mxu0 %v5010_v4 }
 0x2c6   : > { %3614 = vmatprep.subr.bf16.mxu1 %v5010_v4 }
 0x2c8   : > { %3595 = vmatpush3.bf16.msra.mxu0 %v4083_v18 }
 0x2c9   : > { %3615 = vmatpush3.bf16.msra.mxu1 %v4084_v19  ;;  %3596 = vmatprep.subr.bf16.mxu0 %v5010_v4  ;;  %v5867_v19 = vsel %vm1472_vm4, %v1473_v16, 0 }
 0x2ca   : > { %3616 = vmatprep.subr.bf16.mxu1 %v5010_v4 }
 0x2cc   : > { %3597 = vmatpush3.bf16.msra.mxu0 %v4085_v20 }
 0x2cd   : > { %3617 = vmatpush3.bf16.msra.mxu1 %v4086_v21  ;;  %3598 = vmatprep.subr.bf16.mxu0 %v5010_v4 }
 0x2ce   : > { %3618 = vmatprep.subr.bf16.mxu1 %v5010_v4 }
 0x2d0   : > { %3599 = vmatpush3.bf16.msra.mxu0 %v4087_v22 }
 0x2d1   : > { %3619 = vmatpush3.bf16.msra.mxu1 %v4088_v23  ;;  %3624 = vmatprep.subr.bf16.mxu0 %v5010_v4 }
 0x2d2   : > { %3644 = vmatprep.subr.bf16.mxu1 %v5010_v4 }
 0x340   : > { %v1023_v8 = vpop.xlane.xlu0 %1022 }
 0x341   : > { %v1025_v9 = vmul.f32 0.0078125, %v1023_v8 }
 0x343   : > { %v1026_v10 = vsub.f32 %v5821_v0, %v1025_v9 }
 0x345   : > { %v1027_v11 = vmul.f32 %v1026_v10, %v1026_v10 }
 0x347   : > { %v1028_v12 = vsel %vm1020_vm0, %v1027_v11, 0.0 }
 0x348   : > { %1029 = vadd.xlane.f32.xlu0 %v1028_v12 }
 0x3d5   : > { %v1030_v24 = vpop.xlane.xlu0 %1029 }
 0x3d6   : > { %v1031_v25 = vmul.f32 0.0078125, %v1030_v24 }
 0x3d8   : > { %v1032_v26 = vadd.f32 1e-06, %v1031_v25 }
 0x3da   : > { %4191 = vrsqrt.f32 %v1032_v26 }
 0x3e4   : > { %v4192_v27 = vpop.eup %4191 }
 0x3e5   : > { %v1034_v29 = vmul.f32 %v4192_v27, %v1026_v10 }
 0x3e7   : > { %v1042_v31 = vmul.f32 %v3352_v28, %v1034_v29 }
 0x3e9   : > { %v1050_v32 = vadd.f32 %v3353_v30, %v1042_v31 }
 0x3eb   : > { %v1051_v34 = vpack.c.bf16 %v1050_v32, %v1050_v32 }
 0x3ed   : > { %3601 = vmatmul.mubr.bf16.vlgmr.msra.gmra.mrb[0].mxu0 %v1051_v34  ;;  %3621 = vmatmul.mubr.bf16.vlgmr.msra.gmra.mrb[0].mxu1 %v1051_v34 }
 0x3ee   : > { %3625 = vmatpush3.bf16.msra.mxu0 %v4089_v33  ;;  %3640 = vmatprep.mubr.msk.bf16.mxu0 %vm5011_vm1, %v5010_v4  ;;  %v4097_v33 = vld [vmem:[#allocation20] sm:$0xff]  }
 0x3ef   : > { %3626 = vmatprep.subr.bf16.mxu0 %v5010_v4  ;;  %3646 = vmatprep.mubr.msk.bf16.mxu1 %vm5011_vm1, %v5010_v4 }
 0x3f2   : > { %3627 = vmatpush3.bf16.msra.mxu0 %v4090_v35 }
 0x3f3   : > { %3628 = vmatprep.subr.bf16.mxu0 %v5010_v4 }
 0x3f6   : > { %3629 = vmatpush3.bf16.msra.mxu0 %v4091_v36 }
 0x3f7   : > { %3630 = vmatprep.subr.bf16.mxu0 %v5010_v4 }
 0x3fa   : > { %3631 = vmatpush3.bf16.msra.mxu0 %v4092_v37 }
 0x3fb   : > { %3632 = vmatprep.subr.bf16.mxu0 %v5010_v4 }
 0x3fe   : > { %3633 = vmatpush3.bf16.msra.mxu0 %v4093_v38 }
 0x3ff   : > { %3634 = vmatprep.subr.bf16.mxu0 %v5010_v4 }
 0x402   : > { %3635 = vmatpush3.bf16.msra.mxu0 %v4094_v39 }
 0x403   : > { %3636 = vmatprep.subr.bf16.mxu0 %v5010_v4 }
 0x406   : > { %3637 = vmatpush3.bf16.msra.mxu0 %v4095_v40 }
 0x407   : > { %3638 = vmatprep.subr.bf16.mxu0 %v5010_v4 }
 0x40a   : > { %3639 = vmatpush3.bf16.msra.mxu0 %v4096_v41 }
 0x40b   : > { %3670 = vmatprep.subr.bf16.mxu0 %v5010_v4 }
 0x40d   : > { %3641 = vmatmul.mubr.bf16.vlgmr.msra.gmra.mrb[4].mxu0 %v1051_v34  ;;  %v4098_v34 = vld [vmem:[#allocation20 + $0x8] sm:$0xff]  }
 0x40e   : > { %3672 = vmatprep.mubr.msk.bf16.mxu0 %vm5011_vm1, %v5010_v4 }
 0x4c0   : > { %v1157_v43 = vpop.f32.mrb[0].mxu0  ;;  %v1261_v44 = vpop.f32.mrb[0].mxu1 }
 0x4c1   : > { %v1158_v45 = vadd.f32 %v3354_v42, %v1157_v43  ;;  %1389 = vrot.lane.b32.xlu1 %v1261_v44, %s5012_s23  ;;  %v3602_v46 = vpop.f32.mrb[1].mxu0  ;;  %v3622_v47 = vpop.f32.mrb[1].mxu1  ;;  %v1393_v62 = vmul.f32 %v1261_v44, %v1017_v57 }
 0x4c2   : > { %v1160_v48 = vpop.f32.mrb[2].mxu0  ;;  %v1264_v49 = vpop.f32.mrb[2].mxu1 }
 0x4c3   : > { %v3623_v50 = vpop.f32.mrb[3].mxu1  ;;  %1378 = vrot.lane.b32.xlu0 %v1158_v45, %s5012_s23  ;;  %v3603_v51 = vpop.f32.mrb[3].mxu0  ;;  %v1382_v6 = vmul.f32 %v1158_v45, %v1017_v57  ;;  %s6195_s23 = sld [smem:[#allocation70_spill]] }
 0x4c5   : > { %1391 = vrot.lane.b32.xlu1 %v1261_v44, %s5013_s28 }
 0x4c9   : > { %1380 = vrot.lane.b32.xlu1 %v1158_v45, %s5013_s28  ;;  %s6021_s28 = scalar_lea.hbm %s6195_s23, %s3479_s1 }
 0x4e0   : > { %v1372_v52 = vpop.f32.mrb[4].mxu0 }
 0x4e1   : > { %v3642_v53 = vpop.f32.mrb[5].mxu0  ;;  %v1373_v12 = vadd.f32 %v3371_v5, %v1372_v52 }
 0x4e2   : > { %v1375_v54 = vpop.f32.mrb[6].mxu0 }
 0x4e3   : > { %v3643_v55 = vpop.f32.mrb[7].mxu0  ;;  %v5865_v18 = vpack.c.bf16 %v1373_v12, %v1373_v12 }
 0x4e5   : > { %v1476_v21 = vand.u32 %v5867_v19, %v5865_v18 }
 0x533   : > { %v1390_v58 = vpop.permute.xlu1 %1389 }
 0x534   : > { %v1394_v59 = vmul.f32 %v1390_v58, %v1018_v56 }
 0x535   : > { %v1379_v60 = vpop.permute.xlu0 %1378 }
 0x536   : > { %v1395_v1 = vadd.f32 %v1394_v59, %v1393_v62  ;;  %v1383_v2 = vmul.f32 %v1379_v60, %v1018_v56 }
 0x537   : > { %v1392_v63 = vpop.permute.xlu1 %1391 }
 0x538   : > { %v1396_v3 = vmul.f32 %v1392_v63, %v1019_v61  ;;  %v1384_v9 = vadd.f32 %v1383_v2, %v1382_v6  ;;  %v4099_v2 = vld [vmem:[#allocation20 + $0x10] sm:$0xff]  }
 0x53a   : > { %v1397_v7 = vadd.f32 %v1396_v3, %v1395_v1  ;;  %v4100_v3 = vld [vmem:[#allocation20 + $0x18] sm:$0xff]  }
 0x53b   : > { %v1381_v8 = vpop.permute.xlu1 %1380 }
 0x53c   : > { %v1398_v10 = vpack.c.bf16 %v1397_v7, %v1397_v7  ;;  %v1385_v11 = vmul.f32 %v1381_v8, %v1019_v61 }
 0x53e   : > { %v1386_v13 = vadd.f32 %v1385_v11, %v1384_v9  ;;  %v1413_v14 = vsel %vm1408_vm2, %v1398_v10, 0 }
 0x53f   : > { %3645 = vmatpush3.bf16.xpose.msra.mxu1 %v1413_v14 }
 0x540   : > { %v1387_v17 = vmul.f32 0.17677669, %v1386_v13  ;;  %3650 = vmatprep.subr.bf16.mxu1 %v5010_v4 }
 0x542   : > { %v1388_v20 = vpack.c.bf16 %v1387_v17, %v1387_v17 }
 0x546   : > { %3647 = vmatmul.mubr.msk.bf16.vlgmr.msra.gmra.mrb[4].mxu1 %vm1408_vm2, %v1388_v20 }
 0x547   : > { %3651 = vmatpush3.bf16.msra.mxu1 %v1476_v21  ;;  %3652 = vmatprep.mubr.msk.bf16.mxu1 %vm5011_vm1, %v5010_v4 }
 0x548   : > { %3656 = vmatprep.subr.bf16.mxu1 %v5010_v4 }
 0x619   : > { %v1449_v22 = vpop.f32.mrb[4].mxu1 }
 0x61a   : > { %v3648_v23 = vpop.f32.mrb[5].mxu1  ;;  %v1456_v24 = vsel %vm1455_vm5, %v1449_v22, -inf }
 0x61b   : > { %1457 = vmax.xlane.f32.xlu1 %v1456_v24  ;;  %v1452_v25 = vpop.f32.mrb[6].mxu1 }
 0x61c   : > { %v3649_v26 = vpop.f32.mrb[7].mxu1 }
 0x62c   : > { %1584 = vrot.lane.b32.xlu1 %v1398_v10, %s5015_s29 }
 0x6a8   : > { %v1458_v27 = vpop.xlane.xlu1 %1457 }
 0x6a9   : > { %v1459_v28 = vsub.f32 %v1449_v22, %v1458_v27 }
 0x6ab   : > { %v1460_v29 = vmul.f32 1.442695, %v1459_v28 }
 0x6ac   : > { %v1585_v43 = vpop.permute.xlu1 %1584 }
 0x6ad   : > { %4193 = vpow2.f32 %v1460_v29  ;;  %v1590_v47 = vsel %vm1408_vm2, %v1585_v43, 0 }
 0x6b7   : > { %v4194_v30 = vpop.eup %4193 }
 0x6b8   : > { %v1462_v31 = vsel %vm1455_vm5, %v4194_v30, 0.0  ;;  %v1466_v32 = vpack.c.bf16 %v4194_v30, %v4194_v30 }
 0x6b9   : > { %1463 = vadd.xlane.f32.xlu0 %v1462_v31 }
 0x6ba   : > { %3653 = vmatmul.mubr.msk.bf16.vlgmr.msra.gmra.mrb[8].mxu1 %vm1467_vm6, %v1466_v32 }
 0x6bb   : > { %3660 = vmatprep.mubr.msk.bf16.mxu1 %vm5011_vm1, %v5010_v4  ;;  %3657 = vmatpush3.bf16.msra.mxu1 %v4097_v33 }
 0x6bc   : > { %3658 = vmatprep.subr.bf16.mxu1 %v5010_v4 }
 0x6bf   : > { %3659 = vmatpush3.bf16.msra.mxu1 %v4098_v34 }
 0x6c0   : > { %3664 = vmatprep.subr.bf16.mxu1 %v5010_v4 }
 0x6cf   : > { %1581 = vrot.lane.b32.xlu0 %v1388_v20, %s5015_s29 }
 0x6d3   : > { %1644 = vrot.lane.b32.xlu0 %v5865_v18, %s5015_s29  ;;  %s3008_s29 = scalar_lea.sflag [#allocation4], %s5767_s11 }
 0x6d7   : > { %1756 = vrot.lane.b32.xlu0 %v1398_v10, %s5016_s27 }
 0x6db   : > { %1754 = vrot.lane.b32.xlu0 %v1388_v20, %s5016_s27 }
 0x6df   : > { %1927 = vrot.lane.b32.xlu0 %v1398_v10, %s5017_s7 }
 0x6e3   : > { %1925 = vrot.lane.b32.xlu0 %v1388_v20, %s5017_s7 }
 0x746   : > { %v1464_v35 = vpop.xlane.xlu0 %1463 }
 0x747   : > { %4195 = vrcp.f32 %v1464_v35 }
 0x74a   : > { %v1582_v36 = vpop.permute.xlu0 %1581 }
 0x74e   : > { %v1645_v37 = vpop.permute.xlu0 %1644 }
 0x74f   : > { %v1650_v38 = vand.u32 %v1645_v37, %v5867_v19 }
 0x751   : > { %3671 = vmatpush3.bf16.msra.mxu0 %v1650_v38  ;;  %v4196_v39 = vpop.eup %4195 }
 0x752   : > { %3684 = vmatprep.subr.bf16.mxu0 %v5010_v4  ;;  %v1757_v56 = vpop.permute.xlu0 %1756 }
 0x753   : > { %v1762_v61 = vsel %vm1408_vm2, %v1757_v56, 0 }
 0x756   : > { %v1755_v60 = vpop.permute.xlu0 %1754 }
 0x75a   : > { %v1928_v62 = vpop.permute.xlu0 %1927 }
 0x75b   : > { %v1933_v63 = vsel %vm1408_vm2, %v1928_v62, 0 }
 0x75e   : > { %v1926_v1 = vpop.permute.xlu0 %1925 }
 0x78d   : > { %v1512_v40 = vpop.f32.mrb[8].mxu1 }
 0x78e   : > { %v1518_v41 = vmul.f32 %v4196_v39, %v1512_v40  ;;  %v3654_v42 = vpop.f32.mrb[9].mxu1  ;;  %v4101_v40 = vld [vmem:[#allocation20 + $0x20] sm:$0xff]  }
 0x78f   : > { %v1515_v44 = vpop.f32.mrb[10].mxu1 }
 0x790   : > { %v1519_v45 = vpack.c.bf16 %v1518_v41, %v1518_v41  ;;  %v3655_v46 = vpop.f32.mrb[11].mxu1  ;;  %v4102_v41 = vld [vmem:[#allocation20 + $0x28] sm:$0xff]  }
 0x792   : > { %3661 = vmatmul.mubr.msk.bf16.vlgmr.msra.gmra.mrb[12].mxu1 %vm1408_vm2, %v1519_v45 }
 0x793   : > { %3665 = vmatpush3.bf16.xpose.msra.mxu1 %v1590_v47  ;;  %3666 = vmatprep.mubr.msk.bf16.mxu1 %vm5011_vm1, %v5010_v4 }
 0x794   : > { %3676 = vmatprep.subr.bf16.mxu1 %v5010_v4 }
 0x79a   : > { %3667 = vmatmul.mubr.msk.bf16.vlgmr.msra.gmra.mrb[16].mxu1 %vm1408_vm2, %v1582_v36 }
 0x79b   : > { %3680 = vmatprep.mubr.msk.bf16.mxu1 %vm5011_vm1, %v5010_v4  ;;  %3677 = vmatpush3.bf16.msra.mxu1 %v4099_v2 }
 0x79c   : > { %3678 = vmatprep.subr.bf16.mxu1 %v5010_v4 }
 0x79f   : > { %3679 = vmatpush3.bf16.msra.mxu1 %v4100_v3 }
 0x7a0   : > { %3690 = vmatprep.subr.bf16.mxu1 %v5010_v4 }
 0x86d   : > { %v1626_v48 = vpop.f32.mrb[16].mxu1 }
 0x86e   : > { %v3668_v49 = vpop.f32.mrb[17].mxu1  ;;  %v1632_v50 = vsel %vm1455_vm5, %v1626_v48, -inf }
 0x86f   : > { %1633 = vmax.xlane.f32.xlu1 %v1632_v50  ;;  %v1629_v51 = vpop.f32.mrb[18].mxu1  ;;  %v4103_v49 = vld [vmem:[#allocation20 + $0x30] sm:$0xff]  }
 0x870   : > { %v3669_v52 = vpop.f32.mrb[19].mxu1 }
 0x871   : > { %v4104_v52 = vld [vmem:[#allocation20 + $0x38] sm:$0xff]  }
 0x8fc   : > { %v1634_v53 = vpop.xlane.xlu1 %1633 }
 0x8fd   : > { %v1635_v54 = vsub.f32 %v1626_v48, %v1634_v53 }
 0x8ff   : > { %v1636_v55 = vmul.f32 1.442695, %v1635_v54 }
 0x901   : > { %4197 = vpow2.f32 %v1636_v55 }
 0x90b   : > { %v4198_v57 = vpop.eup %4197 }
 0x90c   : > { %v1638_v58 = vsel %vm1455_vm5, %v4198_v57, 0.0  ;;  %v1642_v59 = vpack.c.bf16 %v4198_v57, %v4198_v57 }
 0x90d   : > { %1639 = vadd.xlane.f32.xlu1 %v1638_v58 }
 0x90e   : > { %3673 = vmatmul.mubr.msk.bf16.vlgmr.msra.gmra.mrb[8].mxu0 %vm1467_vm6, %v1642_v59 }
 0x90f   : > { %3685 = vmatpush3.bf16.xpose.msra.mxu0 %v1762_v61  ;;  %3686 = vmatprep.mubr.msk.bf16.mxu0 %vm5011_vm1, %v5010_v4 }
 0x910   : > { %3704 = vmatprep.subr.bf16.mxu0 %v5010_v4 }
 0x916   : > { %3687 = vmatmul.mubr.msk.bf16.vlgmr.msra.gmra.mrb[12].mxu0 %vm1408_vm2, %v1755_v60  ;;  %v3380_v60 = vld [vmem:[#allocation22] ss:$0 sm:$0xff] }
 0x917   : > { %3705 = vmatpush3.bf16.xpose.msra.mxu0 %v1933_v63  ;;  %3706 = vmatprep.mubr.msk.bf16.mxu0 %vm5011_vm1, %v5010_v4  ;;  %v1407_v61 = vadd.f32 %v3380_v60, %v5821_v0  ;;  %v4115_v0 = vld [vmem:[#allocation26 + $0x34] ss:$12 sps:$4 sm:$0xff]   ;;  %v4156_v60 = vld [vmem:[#allocation29 + $0x68] ss:$12 sps:$4 sm:$0xff]  }
 0x918   : > { %3710 = vmatprep.subr.bf16.mxu0 %v5010_v4 }
 0x91e   : > { %3707 = vmatmul.mubr.msk.bf16.vlgmr.msra.gmra.mrb[16].mxu0 %vm1408_vm2, %v1926_v1  ;;  %1815 = vrot.lane.b32.xlu1 %v5865_v18, %s5016_s27  ;;  %s4871_s27 = scalar_lea.vmem %s6023_s2, 128 }
 0x91f   : > { %3712 = vmatprep.mubr.msk.bf16.mxu0 %vm5011_vm1, %v5010_v4  ;;  %p4872_p12 = scmp.ne.s32.totalorder %s6023_s2, %s4871_s27 }
 0x921   : > { %p4873_p13 = pnand %p4872_p12, %p6196_p1 }
 0x923   : > { %p4874_p0 = pneg %p4873_p13 }
 0x99a   : > { %v1640_v5 = vpop.xlane.xlu1 %1639 }
 0x99b   : > { %4199 = vrcp.f32 %v1640_v5 }
 0x99e   : > { %v1816_v8 = vpop.permute.xlu1 %1815 }
 0x99f   : > { %v1821_v14 = vand.u32 %v1816_v8, %v5867_v19  ;;  %v4108_v8 = vld [vmem:[#allocation26 + $0x8] ss:$12 sps:$4 sm:$0xff]  }
 0x9a5   : > { %v4200_v6 = vpop.eup %4199 }
 0x9e1   : > { %v1686_v7 = vpop.f32.mrb[8].mxu0 }
 0x9e2   : > { %v1692_v9 = vmul.f32 %v4200_v6, %v1686_v7  ;;  %v3674_v10 = vpop.f32.mrb[9].mxu0  ;;  %v4105_v6 = vld [vmem:[#allocation26] ss:$12 sps:$4 sm:$0xff]   ;;  %v4107_v7 = vld [vmem:[#allocation26 + $0x4] ss:$12 sps:$4 sm:$0xff]  }
 0x9e3   : > { %v1689_v11 = vpop.f32.mrb[10].mxu0  ;;  %v4112_v10 = vld [vmem:[#allocation26 + $0x20] ss:$12 sps:$4 sm:$0xff]  }
 0x9e4   : > { %v1693_v12 = vpack.c.bf16 %v1692_v9, %v1692_v9  ;;  %v3675_v13 = vpop.f32.mrb[11].mxu0  ;;  %v4111_v9 = vld [vmem:[#allocation26 + $0x1c] ss:$12 sps:$4 sm:$0xff]   ;;  %v4109_v11 = vld [vmem:[#allocation26 + $0x18] ss:$12 sps:$4 sm:$0xff]  }
 0x9e5   : > { %v4113_v13 = vld [vmem:[#allocation26 + $0x30] ss:$12 sps:$4 sm:$0xff]  }
 0x9e6   : > { %3681 = vmatmul.mubr.msk.bf16.vlgmr.msra.gmra.mrb[12].mxu1 %vm1408_vm2, %v1693_v12  ;;  %v4116_v12 = vld [vmem:[#allocation26 + $0x38] ss:$12 sps:$4 sm:$0xff]  }
 0x9e7   : > { %3691 = vmatpush3.bf16.msra.mxu1 %v1821_v14  ;;  %3692 = vmatprep.mubr.msk.bf16.mxu1 %vm5011_vm1, %v5010_v4 }
 0x9e8   : > { %3696 = vmatprep.subr.bf16.mxu1 %v5010_v4 }
 0x9e9   : > { %v1798_v15 = vpop.f32.mrb[12].mxu0 }
 0x9ea   : > { %v3688_v16 = vpop.f32.mrb[13].mxu0  ;;  %v1804_v17 = vsel %vm1455_vm5, %v1798_v15, -inf }
 0x9eb   : > { %1805 = vmax.xlane.f32.xlu0 %v1804_v17  ;;  %v1801_v20 = vpop.f32.mrb[14].mxu0 }
 0x9ec   : > { %v3689_v21 = vpop.f32.mrb[15].mxu0 }
 0x9ed   : > { %v4119_v21 = vld [vmem:[#allocation26 + $0x4c] ss:$12 sps:$4 sm:$0xff]  }
 0x9f1   : > { %v1969_v22 = vpop.f32.mrb[16].mxu0 }
 0x9f2   : > { %v3708_v23 = vpop.f32.mrb[17].mxu0  ;;  %v1975_v24 = vsel %vm1455_vm5, %v1969_v22, -inf }
 0x9f3   : > { %1976 = vmax.xlane.f32.xlu1 %v1975_v24  ;;  %v1972_v25 = vpop.f32.mrb[18].mxu0  ;;  %v4120_v23 = vld [vmem:[#allocation26 + $0x50] ss:$12 sps:$4 sm:$0xff]   ;;  %v4121_v24 = vld [vmem:[#allocation26 + $0x60] ss:$12 sps:$4 sm:$0xff]  }
 0x9f4   : > { %v3709_v26 = vpop.f32.mrb[19].mxu0  ;;  %v4123_v25 = vld [vmem:[#allocation26 + $0x64] ss:$12 sps:$4 sm:$0xff]  }
 0x9f5   : > { %v4124_v26 = vld [vmem:[#allocation26 + $0x68] ss:$12 sps:$4 sm:$0xff]  }
 0xa04   : > { %1986 = vrot.lane.b32.xlu1 %v5865_v18, %s5017_s7  ;;  %s4877_s7 = scalar_lea.vmem %s4876_s8, 256 }
 0xa05   : > { %p4879_p3 = scmp.lt.s32.totalorder %s4877_s7, %s4871_s27 }
 0xa07   : > { %p4880_p10 = por %p4879_p3, %p4878_p2 }
 0xa09   : > { %p4881_p4 = pnand %p4880_p10, %p4874_p0 }
 0xa78   : > { %v1806_v27 = vpop.xlane.xlu0 %1805 }
 0xa79   : > { %v1807_v28 = vsub.f32 %v1798_v15, %v1806_v27  ;;  %v4127_v27 = vld [vmem:[#allocation26 + $0x7c] ss:$12 sps:$4 sm:$0xff]  }
 0xa7b   : > { %v1808_v29 = vmul.f32 1.442695, %v1807_v28  ;;  %v4125_v28 = vld [vmem:[#allocation26 + $0x78] ss:$12 sps:$4 sm:$0xff]  }
 0xa7d   : > { %4201 = vpow2.f32 %v1808_v29  ;;  %v4128_v29 = vld [vmem:[#allocation26 + $0x80] ss:$12 sps:$4 sm:$0xff]  }
 0xa80   : > { %v1977_v30 = vpop.xlane.xlu1 %1976 }
 0xa81   : > { %v1978_v31 = vsub.f32 %v1969_v22, %v1977_v30  ;;  %v4117_v22 = vld [vmem:[#allocation26 + $0x48] ss:$12 sps:$4 sm:$0xff]  }
 0xa82   : > { %v4131_v30 = vld [vmem:[#allocation26 + $0x94] ss:$12 sps:$4 sm:$0xff]  }
 0xa83   : > { %v1979_v32 = vmul.f32 1.442695, %v1978_v31  ;;  %v5018_v31 = vmov 0  }
 0xa84   : > { %v1987_v33 = vpop.permute.xlu1 %1986 }
 0xa85   : > { %4203 = vpow2.f32 %v1979_v32  ;;  %v1992_v34 = vand.u32 %v1987_v33, %v5867_v19  ;;  %v4129_v32 = vld [vmem:[#allocation26 + $0x90] ss:$12 sps:$4 sm:$0xff]   ;;  %v4132_v33 = vld [vmem:[#allocation26 + $0x98] ss:$12 sps:$4 sm:$0xff]  }
 0xa87   : > { %v4202_v35 = vpop.eup %4201  ;;  %3711 = vmatpush3.bf16.msra.mxu0 %v1992_v34  ;;  %v4135_v34 = vld [vmem:[#allocation26 + $0xac] ss:$12 sps:$4 sm:$0xff]  }
 0xa88   : > { %v1810_v36 = vsel %vm1455_vm5, %v4202_v35, 0.0  ;;  %v1814_v37 = vpack.c.bf16 %v4202_v35, %v4202_v35  ;;  %2303 = vmatprep.subr.bf16.mxu0 %v4107_v7  ;;  %v4133_v35 = vld [vmem:[#allocation26 + $0xa8] ss:$12 sps:$4 sm:$0xff]   ;;  %v4165_v7 = vld [vmem:[#allocation29 + $0xa8] ss:$12 sps:$4 sm:$0xff]  }
 0xa89   : > { %1811 = vadd.xlane.f32.xlu1 %v1810_v36  ;;  %v4136_v36 = vld [vmem:[#allocation26 + $0xb0] ss:$12 sps:$4 sm:$0xff]  }
 0xa8a   : > { %3693 = vmatmul.mubr.msk.bf16.vlgmr.msra.gmra.mrb[20].mxu1 %vm1467_vm6, %v1814_v37  ;;  %v4139_v37 = vld [vmem:[#allocation29 + $0x4] ss:$12 sps:$4 sm:$0xff]  }
 0xa8b   : > { %3700 = vmatprep.mubr.msk.bf16.mxu1 %vm5011_vm1, %v5010_v4  ;;  %3697 = vmatpush3.bf16.msra.mxu1 %v4101_v40 }
 0xa8c   : > { %3698 = vmatprep.subr.bf16.mxu1 %v5010_v4 }
 0xa8f   : > { %v4204_v18 = vpop.eup %4203  ;;  %3699 = vmatpush3.bf16.msra.mxu1 %v4102_v41  ;;  %v3401_v41 = vld [vmem:[#allocation23] ss:$0 sm:$0xff] }
 0xa90   : > { %v1981_v38 = vsel %vm1455_vm5, %v4204_v18, 0.0  ;;  %v1985_v39 = vpack.c.bf16 %v4204_v18, %v4204_v18  ;;  %3716 = vmatprep.subr.bf16.mxu1 %v5010_v4 }
 0xa91   : > { %1982 = vadd.xlane.f32.xlu0 %v1981_v38 }
 0xa92   : > { %3713 = vmatmul.mubr.msk.bf16.vlgmr.msra.gmra.mrb[20].mxu0 %vm1467_vm6, %v1985_v39 }
 0xa93   : > { %2304 = vmatpush1.bf16.msra.mxu0 %v4105_v6  ;;  %2335 = vmatprep.mubr.bf16.mxu0 %v5018_v31  ;;  %v4167_v6 = vld [vmem:[#allocation29 + $0xac] ss:$12 sps:$4 sm:$0xff]  }
 0xa94   : > { %2305 = vmatprep.subr.bf16.mxu0 %v4111_v9  ;;  %v2160_v9 = vlaneseq }
 0xa97   : > { %2306 = vmatpush1.bf16.msra.mxu0 %v4109_v11 }
 0xa98   : > { %2307 = vmatprep.subr.bf16.mxu0 %v4115_v0 }
 0xa9b   : > { %2308 = vmatpush1.bf16.msra.mxu0 %v4113_v13 }
 0xa9c   : > { %2309 = vmatprep.subr.bf16.mxu0 %v4119_v21 }
 0xa9f   : > { %2310 = vmatpush1.bf16.msra.mxu0 %v4117_v22 }
 0xaa0   : > { %2311 = vmatprep.subr.bf16.mxu0 %v4123_v25 }
 0xaa3   : > { %2312 = vmatpush1.bf16.msra.mxu0 %v4121_v24 }
 0xaa4   : > { %2313 = vmatprep.subr.bf16.mxu0 %v4127_v27 }
 0xaa7   : > { %2314 = vmatpush1.bf16.msra.mxu0 %v4125_v28 }
 0xaa8   : > { %2315 = vmatprep.subr.bf16.mxu0 %v4131_v30 }
 0xaab   : > { %2316 = vmatpush1.bf16.msra.mxu0 %v4129_v32 }
 0xaac   : > { %2317 = vmatprep.subr.bf16.mxu0 %v4135_v34 }
 0xaaf   : > { %2318 = vmatpush1.bf16.msra.mxu0 %v4133_v35 }
 0xab0   : > { %2561 = vmatprep.subr.bf16.mxu0 %v4139_v37 }
 0xb16   : > { %v1812_v42 = vpop.xlane.xlu1 %1811 }
 0xb17   : > { %4205 = vrcp.f32 %v1812_v42 }
 0xb1e   : > { %v1983_v43 = vpop.xlane.xlu0 %1982 }
 0xb1f   : > { %4207 = vrcp.f32 %v1983_v43  ;;  %v3402_v43 = vld [vmem:[#allocation25] ss:$0 sm:$0xff] }
 0xb21   : > { %v4206_v44 = vpop.eup %4205 }
 0xb29   : > { %v4208_v55 = vpop.eup %4207 }
 0xb5d   : > { %v1857_v45 = vpop.f32.mrb[20].mxu1 }
 0xb5e   : > { %v1863_v46 = vmul.f32 %v4206_v44, %v1857_v45  ;;  %v3694_v47 = vpop.f32.mrb[21].mxu1 }
 0xb5f   : > { %v1860_v48 = vpop.f32.mrb[22].mxu1  ;;  %v4140_v47 = vld [vmem:[#allocation29 + $0x8] ss:$12 sps:$4 sm:$0xff]  }
 0xb60   : > { %v1864_v50 = vpack.c.bf16 %v1863_v46, %v1863_v46  ;;  %v3695_v51 = vpop.f32.mrb[23].mxu1  ;;  %v4137_v46 = vld [vmem:[#allocation29] ss:$12 sps:$4 sm:$0xff]  }
 0xb61   : > { %v4144_v51 = vld [vmem:[#allocation29 + $0x20] ss:$12 sps:$4 sm:$0xff]  }
 0xb62   : > { %3701 = vmatmul.mubr.msk.bf16.vlgmr.msra.gmra.mrb[12].mxu1 %vm1408_vm2, %v1864_v50  ;;  %v4141_v50 = vld [vmem:[#allocation29 + $0x18] ss:$12 sps:$4 sm:$0xff]  }
 0xb63   : > { %3717 = vmatpush3.bf16.msra.mxu1 %v4103_v49  ;;  %3720 = vmatprep.mubr.msk.bf16.mxu1 %vm5011_vm1, %v5010_v4  ;;  %v4143_v49 = vld [vmem:[#allocation29 + $0x1c] ss:$12 sps:$4 sm:$0xff]  }
 0xb64   : > { %3718 = vmatprep.subr.bf16.mxu1 %v5010_v4 }
 0xb65   : > { %v2028_v53 = vpop.f32.mrb[20].mxu0 }
 0xb66   : > { %v3714_v54 = vpop.f32.mrb[21].mxu0  ;;  %v2034_v57 = vmul.f32 %v4208_v55, %v2028_v53  ;;  %v4145_v53 = vld [vmem:[#allocation29 + $0x30] ss:$12 sps:$4 sm:$0xff]   ;;  %v4151_v55 = vld [vmem:[#allocation29 + $0x4c] ss:$12 sps:$4 sm:$0xff]  }
 0xb67   : > { %v2031_v56 = vpop.f32.mrb[22].mxu0  ;;  %3719 = vmatpush3.bf16.msra.mxu1 %v4104_v52  ;;  %v4147_v52 = vld [vmem:[#allocation29 + $0x34] ss:$12 sps:$4 sm:$0xff]   ;;  %v4148_v54 = vld [vmem:[#allocation29 + $0x38] ss:$12 sps:$4 sm:$0xff]  }
 0xb68   : > { %v3715_v58 = vpop.f32.mrb[23].mxu0  ;;  %3724 = vmatprep.subr.bf16.mxu1 %v5010_v4  ;;  %v2035_v59 = vpack.c.bf16 %v2034_v57, %v2034_v57  ;;  %v4149_v56 = vld [vmem:[#allocation29 + $0x48] ss:$12 sps:$4 sm:$0xff]   ;;  %v4152_v57 = vld [vmem:[#allocation29 + $0x50] ss:$12 sps:$4 sm:$0xff]  }
 0xb69   : > { %v4155_v58 = vld [vmem:[#allocation29 + $0x64] ss:$12 sps:$4 sm:$0xff]  }
 0xb6e   : > { %3721 = vmatmul.mubr.msk.bf16.vlgmr.msra.gmra.mrb[12].mxu1 %vm1408_vm2, %v2035_v59  ;;  %v4153_v59 = vld [vmem:[#allocation29 + $0x60] ss:$12 sps:$4 sm:$0xff]  }
 0xb6f   : > { %3740 = vmatprep.mubr.msk.bf16.mxu1 %vm5011_vm1, %v5010_v4  ;;  %3725 = vmatpush3.bf16.msra.mxu1 %v4108_v8  ;;  %v4168_v8 = vld [vmem:[#allocation29 + $0xb0] ss:$12 sps:$4 sm:$0xff]  }
 0xb70   : > { %3726 = vmatprep.subr.bf16.mxu1 %v5010_v4 }
 0xb73   : > { %3727 = vmatpush3.bf16.msra.mxu1 %v4112_v10  ;;  %v2161_v10 = vshrl.u32 %v2160_v9, 7  ;;  %v4172_v9 = vld [vmem:[#allocation35 + $0x8] sm:$0xff]  }
 0xb74   : > { %3728 = vmatprep.subr.bf16.mxu1 %v5010_v4 }
 0xb75   : > { %v5969_v11 = vsub.s32 0, %v2161_v10  ;;  %v5971_v0 = vsub.s32 2, %v2161_v10  ;;  %v5973_v13 = vsub.s32 1, %v2161_v10 }
 0xb77   : > { %3729 = vmatpush3.bf16.msra.mxu1 %v4116_v12  ;;  %v2158_v12 = vld [vmem:[#allocation28] sm:$0x7] }
 0xb78   : > { %3730 = vmatprep.subr.bf16.mxu1 %v5010_v4 }
 0xb7b   : > { %3731 = vmatpush3.bf16.msra.mxu1 %v4120_v23 }
 0xb7c   : > { %3732 = vmatprep.subr.bf16.mxu1 %v5010_v4 }
 0xb7f   : > { %3733 = vmatpush3.bf16.msra.mxu1 %v4124_v26 }
 0xb80   : > { %3734 = vmatprep.subr.bf16.mxu1 %v5010_v4 }
 0xb83   : > { %3735 = vmatpush3.bf16.msra.mxu1 %v4128_v29 }
 0xb84   : > { %3736 = vmatprep.subr.bf16.mxu1 %v5010_v4 }
 0xb87   : > { %3737 = vmatpush3.bf16.msra.mxu1 %v4132_v33 }
 0xb88   : > { %3738 = vmatprep.subr.bf16.mxu1 %v5010_v4 }
 0xb8b   : > { %3739 = vmatpush3.bf16.msra.mxu1 %v4136_v36 }
 0xb8c   : > { %3744 = vmatprep.subr.bf16.mxu1 %v5010_v4 }
 0xc41   : > { %v2089_v62 = vpop.f32.mrb[12].mxu1 }
 0xc42   : > { %v5943_v63 = vadd.f32 %v2089_v62, %v1407_v61  ;;  %v3722_v1 = vpop.f32.mrb[13].mxu1  ;;  %v4159_v61 = vld [vmem:[#allocation29 + $0x7c] ss:$12 sps:$4 sm:$0xff]   ;;  %v4157_v62 = vld [vmem:[#allocation29 + $0x78] ss:$12 sps:$4 sm:$0xff]  }
 0xc43   : > { %v2092_v2 = vpop.f32.mrb[14].mxu1  ;;  %v4160_v1 = vld [vmem:[#allocation29 + $0x80] ss:$12 sps:$4 sm:$0xff]  }
 0xc44   : > { %v3723_v3 = vpop.f32.mrb[15].mxu1  ;;  %v2096_v5 = vsel %vm1020_vm0, %v5943_v63, 0.0  ;;  %v4163_v2 = vld [vmem:[#allocation29 + $0x94] ss:$12 sps:$4 sm:$0xff]  }
 0xc45   : > { %2097 = vadd.xlane.f32.xlu0 %v2096_v5  ;;  %v4161_v3 = vld [vmem:[#allocation29 + $0x90] ss:$12 sps:$4 sm:$0xff]   ;;  %v4164_v5 = vld [vmem:[#allocation29 + $0x98] ss:$12 sps:$4 sm:$0xff]  }
 0xcd2   : > { %v2098_v14 = vpop.xlane.xlu0 %2097 }
 0xcd3   : > { %v2099_v15 = vmul.f32 0.0078125, %v2098_v14  ;;  %v2163_v14 = vrot.slane %v2158_v12, %v5969_v11 }
 0xcd5   : > { %v2100_v16 = vsub.f32 %v5943_v63, %v2099_v15  ;;  %v2171_v15 = vrot.slane %v2158_v12, %v5971_v0 }
 0xcd7   : > { %v2101_v17 = vmul.f32 %v2100_v16, %v2100_v16 }
 0xcd9   : > { %v2102_v20 = vsel %vm1020_vm0, %v2101_v17, 0.0 }
 0xcda   : > { %2103 = vadd.xlane.f32.xlu0 %v2102_v20 }
 0xd67   : > { %v2104_v18 = vpop.xlane.xlu0 %2103 }
 0xd68   : > { %v2105_v38 = vmul.f32 0.0078125, %v2104_v18 }
 0xd6a   : > { %v2106_v39 = vadd.f32 1e-06, %v2105_v38  ;;  %v2416_v38 = vld [vmem:[#allocation31] sm:$0x7] }
 0xd6c   : > { %4209 = vrsqrt.f32 %v2106_v39 }
 0xd76   : > { %v4210_v40 = vpop.eup %4209 }
 0xd77   : > { %v2108_v42 = vmul.f32 %v4210_v40, %v2100_v16  ;;  %v2167_v16 = vrot.slane %v2158_v12, %v5973_v13  ;;  %v2421_v40 = vrot.slane %v2416_v38, %v5969_v11 }
 0xd79   : > { %v2116_v44 = vmul.f32 %v3401_v41, %v2108_v42  ;;  %v2429_v41 = vrot.slane %v2416_v38, %v5971_v0 }
 0xd7b   : > { %v2124_v45 = vadd.f32 %v3402_v43, %v2116_v44  ;;  %v2425_v43 = vrot.slane %v2416_v38, %v5973_v13  ;;  %v4185_v38 = vld [vmem:[#allocation35 + $0x70] sm:$0xff]  }
 0xd7d   : > { %v2125_v48 = vpack.c.bf16 %v2124_v45, %v2124_v45 }
 0xd7f   : > { %2336 = vmatmul.mubr.bf16.vlgmr.msra.gmra.mrb[24].mxu0 %v2125_v48  ;;  %3741 = vmatmul.mubr.bf16.vlgmr.msra.gmra.mrb[24].mxu1 %v2125_v48 }
 0xd80   : > { %2562 = vmatpush1.bf16.msra.mxu0 %v4137_v46  ;;  %3745 = vmatpush3.bf16.msra.mxu1 %v4140_v47 }
 0xd81   : > { %2563 = vmatprep.subr.bf16.mxu0 %v4143_v49  ;;  %3746 = vmatprep.subr.bf16.mxu1 %v5010_v4 }
 0xd82   : > { %2593 = vmatprep.mubr.bf16.mxu0 %v5018_v31  ;;  %3760 = vmatprep.mubr.msk.bf16.mxu1 %vm5011_vm1, %v5010_v4 }
 0xd84   : > { %2564 = vmatpush1.bf16.msra.mxu0 %v4141_v50  ;;  %3747 = vmatpush3.bf16.msra.mxu1 %v4144_v51 }
 0xd85   : > { %2565 = vmatprep.subr.bf16.mxu0 %v4147_v52  ;;  %3748 = vmatprep.subr.bf16.mxu1 %v5010_v4 }
 0xd88   : > { %2566 = vmatpush1.bf16.msra.mxu0 %v4145_v53  ;;  %3749 = vmatpush3.bf16.msra.mxu1 %v4148_v54 }
 0xd89   : > { %2567 = vmatprep.subr.bf16.mxu0 %v4151_v55  ;;  %3750 = vmatprep.subr.bf16.mxu1 %v5010_v4 }
 0xd8c   : > { %2568 = vmatpush1.bf16.msra.mxu0 %v4149_v56  ;;  %3751 = vmatpush3.bf16.msra.mxu1 %v4152_v57 }
 0xd8d   : > { %2569 = vmatprep.subr.bf16.mxu0 %v4155_v58  ;;  %3752 = vmatprep.subr.bf16.mxu1 %v5010_v4 }
 0xd90   : > { %2570 = vmatpush1.bf16.msra.mxu0 %v4153_v59  ;;  %3753 = vmatpush3.bf16.msra.mxu1 %v4156_v60 }
 0xd91   : > { %2571 = vmatprep.subr.bf16.mxu0 %v4159_v61  ;;  %3754 = vmatprep.subr.bf16.mxu1 %v5010_v4 }
 0xd94   : > { %2572 = vmatpush1.bf16.msra.mxu0 %v4157_v62  ;;  %3755 = vmatpush3.bf16.msra.mxu1 %v4160_v1 }
 0xd95   : > { %2573 = vmatprep.subr.bf16.mxu0 %v4163_v2  ;;  %3756 = vmatprep.subr.bf16.mxu1 %v5010_v4 }
 0xd98   : > { %2574 = vmatpush1.bf16.msra.mxu0 %v4161_v3  ;;  %3757 = vmatpush3.bf16.msra.mxu1 %v4164_v5 }
 0xd99   : > { %2575 = vmatprep.subr.bf16.mxu0 %v4167_v6  ;;  %3758 = vmatprep.subr.bf16.mxu1 %v5010_v4  ;;  %v4169_v6 = vld [vmem:[#allocation35 + $0x40] sm:$0xff]  }
 0xd9c   : > { %2576 = vmatpush1.bf16.msra.mxu0 %v4165_v7  ;;  %3759 = vmatpush3.bf16.msra.mxu1 %v4168_v8  ;;  %v4170_v7 = vld [vmem:[#allocation35] sm:$0xff]   ;;  %v4171_v8 = vld [vmem:[#allocation35 + $0x48] sm:$0xff]  }
 0xd9d   : > { %3764 = vmatprep.subr.bf16.mxu1 %v5010_v4  ;;  %3555 = vmatprep.subr.bf16.mxu0 %v4169_v6 }
 0xd9f   : > { %2594 = vmatmul.mubr.bf16.vlgmr.msra.gmra.mrb[28].mxu0 %v2125_v48  ;;  %3761 = vmatmul.mubr.bf16.vlgmr.msra.gmra.mrb[28].mxu1 %v2125_v48 }
 0xda0   : > { %3776 = vmatprep.mubr.msk.bf16.mxu1 %vm5011_vm1, %v5010_v4  ;;  %3556 = vmatpush3.bf16.msra.mxu0 %v4170_v7 }
 0xda1   : > { %3557 = vmatprep.subr.bf16.mxu0 %v4171_v8 }
 0xda4   : > { %3558 = vmatpush3.bf16.msra.mxu0 %v4172_v9 }
 0xe52   : > { %v2337_v17 = vpop.f32.mrb[24].mxu0  ;;  %v2378_v20 = vpop.f32.mrb[24].mxu1 }
 0xe53   : > { %v2338_v21 = vadd.f32 %v2337_v17, %v2163_v14  ;;  %v2379_v22 = vadd.f32 %v2378_v20, %v2171_v15  ;;  %v2339_v23 = vpop.f32.mrb[25].mxu0  ;;  %v3742_v24 = vpop.f32.mrb[25].mxu1 }
 0xe54   : > { %v2340_v25 = vadd.f32 %v2339_v23, %v2167_v16  ;;  %v2341_v26 = vpop.f32.mrb[26].mxu0  ;;  %v2381_v27 = vpop.f32.mrb[26].mxu1 }
 0xe55   : > { %v3451_v28 = vmul.f32 -1.442695, %v2338_v21  ;;  %v3453_v29 = vmul.f32 -1.442695, %v2379_v22  ;;  %v2342_v30 = vpop.f32.mrb[27].mxu0  ;;  %v3743_v31 = vpop.f32.mrb[27].mxu1 }
 0xe56   : > { %v3452_v32 = vmul.f32 -1.442695, %v2340_v25  ;;  %v4173_v27 = vld [vmem:[#allocation35 + $0x50] sm:$0xff]   ;;  %v4176_v30 = vld [vmem:[#allocation35 + $0x58] sm:$0xff]   ;;  %v4177_v31 = vld [vmem:[#allocation35 + $0x88] sm:$0xff]  }
 0xe57   : > { %4211 = vpow2.f32 %v3451_v28  ;;  %v4174_v28 = vld [vmem:[#allocation35 + $0x80] sm:$0xff]   ;;  %3559 = vmatprep.subr.bf16.mxu0 %v4173_v27 }
 0xe58   : > { %4213 = vpow2.f32 %v3453_v29  ;;  %v4175_v29 = vld [vmem:[#allocation35 + $0x10] sm:$0xff]   ;;  %3765 = vmatpush3.bf16.msra.mxu1 %v4174_v28 }
 0xe59   : > { %4215 = vpow2.f32 %v3452_v32  ;;  %3560 = vmatpush3.bf16.msra.mxu0 %v4175_v29  ;;  %3766 = vmatprep.subr.bf16.mxu1 %v5010_v4  ;;  %v4178_v32 = vld [vmem:[#allocation35 + $0x18] sm:$0xff]  }
 0xe5a   : > { %3561 = vmatprep.subr.bf16.mxu0 %v4176_v30 }
 0xe5c   : > { %3767 = vmatpush3.bf16.msra.mxu1 %v4177_v31 }
 0xe5d   : > { %3562 = vmatpush3.bf16.msra.mxu0 %v4178_v32  ;;  %3768 = vmatprep.subr.bf16.mxu1 %v5010_v4 }
 0xe61   : > { %v4212_v33 = vpop.eup %4211 }
 0xe62   : > { %v4214_v34 = vpop.eup %4213  ;;  %v2651_v35 = vadd.f32 1.0, %v4212_v33  ;;  %v4179_v33 = vld [vmem:[#allocation35 + $0x60] sm:$0xff]  }
 0xe63   : > { %v4216_v36 = vpop.eup %4215  ;;  %v2653_v37 = vadd.f32 1.0, %v4214_v34  ;;  %v4180_v34 = vld [vmem:[#allocation35 + $0x90] sm:$0xff]   ;;  %3563 = vmatprep.subr.bf16.mxu0 %v4179_v33 }
 0xe64   : > { %v2652_v18 = vadd.f32 1.0, %v4216_v36  ;;  %4217 = vrcp.f32 %v2651_v35  ;;  %v4181_v35 = vld [vmem:[#allocation35 + $0x20] sm:$0xff]   ;;  %v4182_v36 = vld [vmem:[#allocation35 + $0x68] sm:$0xff]   ;;  %3769 = vmatpush3.bf16.msra.mxu1 %v4180_v34 }
 0xe65   : > { %4219 = vrcp.f32 %v2653_v37  ;;  %v4183_v37 = vld [vmem:[#allocation35 + $0x98] sm:$0xff]   ;;  %3564 = vmatpush3.bf16.msra.mxu0 %v4181_v35  ;;  %3770 = vmatprep.subr.bf16.mxu1 %v5010_v4 }
 0xe66   : > { %4221 = vrcp.f32 %v2652_v18  ;;  %v4184_v18 = vld [vmem:[#allocation35 + $0x28] sm:$0xff]   ;;  %3565 = vmatprep.subr.bf16.mxu0 %v4182_v36 }
 0xe68   : > { %3771 = vmatpush3.bf16.msra.mxu1 %v4183_v37 }
 0xe69   : > { %3566 = vmatpush3.bf16.msra.mxu0 %v4184_v18  ;;  %3772 = vmatprep.subr.bf16.mxu1 %v5010_v4 }
 0xe6a   : > { %3567 = vmatprep.subr.bf16.mxu0 %v4185_v38 }
 0xe6e   : > { %v4218_v39 = vpop.eup %4217 }
 0xe6f   : > { %v4220_v42 = vpop.eup %4219  ;;  %v2660_v47 = vmul.f32 %v4218_v39, %v2338_v21  ;;  %v4186_v39 = vld [vmem:[#allocation35 + $0xa0] sm:$0xff]  }
 0xe70   : > { %v4222_v44 = vpop.eup %4221  ;;  %v2662_v48 = vmul.f32 %v4220_v42, %v2379_v22  ;;  %v4188_v42 = vld [vmem:[#allocation35 + $0x78] sm:$0xff]   ;;  %3773 = vmatpush3.bf16.msra.mxu1 %v4186_v39 }
 0xe71   : > { %v2661_v53 = vmul.f32 %v4222_v44, %v2340_v25  ;;  %3774 = vmatprep.subr.bf16.mxu1 %v5010_v4  ;;  %v4190_v44 = vld [vmem:[#allocation35 + $0x38] sm:$0xff]  }
 0xe72   : > { %v2595_v45 = vpop.f32.mrb[28].mxu0  ;;  %v2636_v46 = vpop.f32.mrb[28].mxu1 }
 0xe73   : > { %v2596_v49 = vadd.f32 %v2595_v45, %v2421_v40  ;;  %v2637_v50 = vadd.f32 %v2636_v46, %v2429_v41  ;;  %v2597_v51 = vpop.f32.mrb[29].mxu0  ;;  %v3762_v52 = vpop.f32.mrb[29].mxu1  ;;  %v4189_v40 = vld [vmem:[#allocation35 + $0xa8] ss:$0 sps:$4 sm:$0x77]   ;;  %v4187_v41 = vld [vmem:[#allocation35 + $0x30] sm:$0xff]  }
 0xe74   : > { %v2598_v54 = vadd.f32 %v2597_v51, %v2425_v43  ;;  %v2599_v55 = vpop.f32.mrb[30].mxu0  ;;  %v2639_v56 = vpop.f32.mrb[30].mxu1  ;;  %v2915_v43 = vand.u32 %v4189_v40, %v5867_v19  ;;  %3568 = vmatpush3.bf16.msra.mxu0 %v4187_v41 }
 0xe75   : > { %v2663_v57 = vmul.f32 %v2660_v47, %v2596_v49  ;;  %v2665_v58 = vmul.f32 %v2662_v48, %v2637_v50  ;;  %v2600_v59 = vpop.f32.mrb[31].mxu0  ;;  %v3763_v60 = vpop.f32.mrb[31].mxu1  ;;  %3569 = vmatprep.subr.bf16.mxu0 %v4188_v42  ;;  %v2695_v48 = vld [vmem:[#allocation32] sm:$0x7]  ;;  %v2715_v49 = vld [vmem:[#allocation34] sm:$0x7] }
 0xe76   : > { %v2664_v61 = vmul.f32 %v2661_v53, %v2598_v54  ;;  %3775 = vmatpush3.bf16.msra.mxu1 %v2915_v43  ;;  %v2704_v50 = vrot.slane %v2695_v48, %v5973_v13  ;;  %v2708_v51 = vrot.slane %v2695_v48, %v5971_v0  ;;  %v2700_v52 = vrot.slane %v2695_v48, %v5969_v11 }
 0xe77   : > { %v2666_v62 = vsel %vm1020_vm0, %v2663_v57, 0.0  ;;  %v2670_v3 = vsel %vm2669_vm7, %v2665_v58, 0.0  ;;  %v2724_v53 = vrot.slane %v2715_v49, %v5973_v13  ;;  %v2728_v4 = vrot.slane %v2715_v49, %v5971_v0 }
 0xe78   : > { %v2667_v1 = vsel %vm1020_vm0, %v2664_v61, 0.0  ;;  %3570 = vmatpush3.bf16.msra.mxu0 %v4190_v44 }
 0xe79   : > { %v2668_v2 = vadd.f32 %v2667_v1, %v2666_v62 }
 0xe7b   : > { %v2671_v5 = vadd.f32 %v2670_v3, %v2668_v2 }
 0xe7d   : > { %2672 = vadd.xlane.f32.xlu0 %v2671_v5 }
 0xf0a   : > { %v2673_v10 = vpop.xlane.xlu0 %2672 }
 0xf0b   : > { %v2675_v12 = vmul.f32 0.0029325513, %v2673_v10 }
 0xf0d   : > { %v5984_v14 = vsub.f32 %v2663_v57, %v2675_v12  ;;  %v5986_v15 = vsub.f32 %v2664_v61, %v2675_v12  ;;  %v5988_v16 = vsub.f32 %v2665_v58, %v2675_v12  ;;  %v2720_v57 = vrot.slane %v2715_v49, %v5969_v11 }
 0xf0f   : > { %v2679_v17 = vmul.f32 %v5984_v14, %v5984_v14  ;;  %v2680_v20 = vmul.f32 %v5986_v15, %v5986_v15  ;;  %v2681_v21 = vmul.f32 %v5988_v16, %v5988_v16 }
 0xf11   : > { %v2682_v22 = vsel %vm1020_vm0, %v2679_v17, 0.0  ;;  %v2683_v23 = vsel %vm1020_vm0, %v2680_v20, 0.0  ;;  %v2685_v25 = vsel %vm2669_vm7, %v2681_v21, 0.0 }
 0xf12   : > { %v2684_v24 = vadd.f32 %v2683_v23, %v2682_v22 }
 0xf14   : > { %v2686_v26 = vadd.f32 %v2685_v25, %v2684_v24 }
 0xf16   : > { %2687 = vadd.xlane.f32.xlu0 %v2686_v26 }
 0xfa3   : > { %v2688_v45 = vpop.xlane.xlu0 %2687 }
 0xfa4   : > { %v2689_v46 = vmul.f32 0.0029325513, %v2688_v45 }
 0xfa6   : > { %v2690_v47 = vadd.f32 1e-06, %v2689_v46 }
 0xfa8   : > { %4223 = vrsqrt.f32 %v2690_v47 }
 0xfb2   : > { %v4224_v19 = vpop.eup %4223 }
 0xfb3   : > { %v2693_v54 = vmul.f32 %v4224_v19, %v5986_v15  ;;  %v2694_v55 = vmul.f32 %v4224_v19, %v5988_v16  ;;  %v2692_v56 = vmul.f32 %v4224_v19, %v5984_v14  ;;  %v3477_v15 = vld [vmem:[#allocation37] ss:$0 sm:$0xff] }
 0xfb5   : > { %v2713_v58 = vmul.f32 %v2704_v50, %v2693_v54  ;;  %v2714_v59 = vmul.f32 %v2708_v51, %v2694_v55  ;;  %v2712_v60 = vmul.f32 %v2700_v52, %v2692_v56 }
 0xfb7   : > { %v2733_v61 = vadd.f32 %v2724_v53, %v2713_v58  ;;  %v2734_v62 = vadd.f32 %v2728_v4, %v2714_v59  ;;  %v2732_v1 = vadd.f32 %v2720_v57, %v2712_v60 }
 0xfb9   : > { %v2736_v2 = vpack.c.bf16 %v2733_v61, %v2733_v61  ;;  %v2737_v3 = vpack.c.bf16 %v2734_v62, %v2734_v62  ;;  %v2735_v13 = vpack.c.bf16 %v2732_v1, %v2732_v1 }
 0xfbb   : > { %2949 = vmatprep.mubr.bf16.mxu0 %v2736_v2  ;;  %3777 = vmatmul.mubr.msk.bf16.vlgmr.msra.gmra.mrb[32].mxu1 %vm2910_vm8, %v2737_v3 }
 0xfbc   : > { %2950 = vmatmul.mubr.bf16.vlgmr.msra.gmra.mrb[32].mxu0 %v2735_v13 }
0x108e   : > { %v2991_v0 = vpop.f32.mrb[32].mxu1 }
0x108f   : > { %v3571_v5 = vpop.f32.mrb[32].mxu0  ;;  %v3778_v6 = vpop.f32.mrb[33].mxu1 }
0x1090   : > { %v3572_v7 = vpop.f32.mrb[33].mxu0  ;;  %v2994_v11 = vpop.f32.mrb[34].mxu1 }
0x1091   : > { %v3573_v8 = vadd.f32 %v3572_v7, %v3571_v5  ;;  %v3574_v9 = vpop.f32.mrb[34].mxu0  ;;  %v3779_v10 = vpop.f32.mrb[35].mxu1 }
0x1092   : > { %v3575_v12 = vpop.f32.mrb[35].mxu0 }
0x1093   : > { %v2992_v14 = vadd.f32 %v3573_v8, %v2991_v0 }
0x1095   : > { %v2997_v16 = vadd.f32 %v5943_v63, %v2992_v14 }
0x1097   : > { %v3005_v17 = vadd.f32 %v3477_v15, %v2997_v16 }
0x1099   : > { %3006 = vst [vmem:[%s1014_s9] sm:$0x1f] %v3005_v17 }
0x109a   : > { %4884 = shalt.err (!%p4881_p4)
}
0x109b   : > { %s4885_s11 = scalar_lea.hbm %s6021_s28, 128  ;;  %s4889_s30 = scalar_lea.hbm %s6195_s23, 256 }
0x109c   : > { %p4886_p11 = scmp.ne.s32.totalorder %s6021_s28, %s4885_s11  ;;  %p4890_p7 = scmp.lt.u32.totalorder %s6021_s28, %s6195_s23 }
0x109d   : > { %p4891_p6 = scmp.lt.u32.totalorder %s4889_s30, %s4885_s11  ;;  %p4893_p12 = scmp.lt.u32.totalorder %s4885_s11, %s6021_s28 }
0x109e   : > { %p4887_p8 = pnand %p4886_p11, %p6196_p1 }
0x109f   : > { %p4892_p9 = por %p4891_p6, %p4890_p7 }
0x10a0   : > { %p4888_p5 = pneg %p4887_p8 }
0x10a1   : > { %p4894_p13 = por %p4893_p12, %p4892_p9 }
0x10a3   : > { %p4895_p0 = pnand %p4894_p13, %p4888_p5 }
0x10a5   : > { %4898 = shalt.err (!%p4895_p0)
}
0x10a6   : > { %3883 = dma.vmem_to_hbm [thread:$0]  (%p6196_p1), %s6023_s2, 128, %s6021_s28, %s3008_s29  }
0x10a7 PF: > { %s6197_s27 = sld [smem:[#allocation52_spill]]  ;;  %s6198_s8 = sld [smem:[#allocation55_spill]] }
0x10a8   : > { %p6199_p2 = scmp.ne.s32.totalorder %s6166_s24, 0 }
0x10ad   : > { %s3033_s7 = sand.u32 1, %s6197_s27   ;;  %p6200_p3 = scmp.ge.s32.totalorder %s6198_s8, 2 }
0x10ae   : > { %s3034_s1 = scalar_lea.sflag [#allocation4], %s3033_s7 }
0x10af   : > { %p3957_p10 = pnand %p6200_p3, %p6199_p2 }
0x10b1   : > { %4964 = dma.done.wait (!%p3957_p10), %s3034_s1, 128  }
0x10b2   : > { %4966 = vsyncadd (!%p3957_p10), %s3034_s1, 4294967168  ;;  %s6201_s4 = sld [smem:[#allocation53_spill]]  ;;  %s6202_s30 = sld [smem:[#allocation54_spill]] }
0x10b3   : > { %p47_p4 = scmp.ge.s32.totalorder %s5691_s25, 4   ;;  %s6203_s24 = smov %s5702_s0 }
0x10b5   :  { %49 = sbr.rel (!%p47_p4) target bundleno = 30 (0x1e), region = 245 }
0x10bc   :  { %3039 = vsyncpa [#allocation3], 1 }
0x10bd   :  { %3041 = vsyncpa [#allocation3 + $0x1], 1 }
0x10be   :  { %3042 = vsyncpa [#allocation6], 1 }
0x10bf   :  { %3043 = vsyncpa [#allocation9], 1 }
0x10c0   :  { %3044 = vsyncpa [#allocation12], 1 }
0x10c1   :  { %3045 = vsyncpa [#allocation15], 1 }
0x10c2   :  { %3046 = vsyncpa [#allocation18], 1 }
0x10c3   :  { %3047 = vsyncpa [#allocation21], 1 }
0x10c4   :  { %3048 = vsyncpa [#allocation24], 1 }
0x10c5   :  { %3049 = vsyncpa [#allocation27], 1 }
0x10c6   :  { %3050 = vsyncpa [#allocation30], 1 }
0x10c7   :  { %3051 = vsyncpa [#allocation33], 1 }
0x10c8   :  { %3052 = vsyncpa [#allocation36], 1 }
0x10c9   :  { %3053 = vsyncpa [#allocation4], 1 }
0x10ca   :  { %3055 = vsyncpa [#allocation4 + $0x1], 1 }

</bundles_post_ra>
